<compile_context>
chip_gen: v6e
topology: v6e:2x2x1
jax: 0.10.0
libtpu: 0.0.40
codegen_flags: <defaults>
</compile_context>

<pallas_src>
from functools import partial

import jax
import jax.numpy as jnp
from jax import lax
from jax.experimental import pallas as pl
from jax.experimental.pallas import tpu as pltpu

NEG_SLOPE = 0.01   # nn.LeakyReLU default negative_slope
LN_EPS = 1e-5      # nn.LayerNorm default eps


def simple_rnn_kernel(
    x_ref,        # (S*B_pad, T)   f32   VMEM  all timesteps, pre-layernorm
    vecs_ref,     # (6, T)         f32   VMEM  rows: gamma, beta, b1, b2, b3, w3
    w_ih_ref,     # (T, 4H)        bf16  VMEM  LSTM weight_ih^T
    b_g_ref,      # (1, 4H)        f32   VMEM  b_ih + b_hh
    w_hh_hbm,     # (H, 4H)        bf16  ANY   LSTM weight_hh^T   (prefetched)
    w1_hbm,       # (H, T)         bf16  ANY   classifier W1^T    (prefetched)
    w2_hbm,       # (T, T)         bf16  ANY   classifier W2^T, zero-padded cols
    out_ref,      # (B_pad, T)     f32   VMEM  lane-dense output (real value col 0)
    xp_scr,       # (S*B_pad, 4H)  f32   scratch: hoisted input projection
    w_hh_vmem,    # (H, 4H)        bf16  scratch (DMA target)
    w1_vmem,      # (H, T)         bf16  scratch (DMA target)
    w2_vmem,      # (T, T)         bf16  scratch (DMA target)
    dma_sem,      # (3,)           DMA semaphores
    *, seq_len, batch,
):
    H = w_hh_vmem.shape[0]

    # ---- Kick off async DMA for late-used weights (overlap with LN + proj) ----
    whh_cp = pltpu.make_async_copy(w_hh_hbm, w_hh_vmem, dma_sem.at[0])
    w1_cp = pltpu.make_async_copy(w1_hbm, w1_vmem, dma_sem.at[1])
    w2_cp = pltpu.make_async_copy(w2_hbm, w2_vmem, dma_sem.at[2])
    whh_cp.start()
    w1_cp.start()
    w2_cp.start()

    # ---- LayerNorm over the feature dim for ALL timesteps at once (f32) ----
    x = x_ref[...]                              # (S*B, T) f32
    gamma = vecs_ref[0:1, :]
    beta = vecs_ref[1:2, :]
    mean = jnp.mean(x, axis=-1, keepdims=True)
    var = jnp.mean(jnp.square(x - mean), axis=-1, keepdims=True)
    xn = (x - mean) * lax.rsqrt(var + LN_EPS)
    xn = xn * gamma + beta

    # ---- Input projection hoisted out of the recurrence: one bf16 MXU matmul ----
    xp_scr[...] = (
        jnp.dot(xn.astype(jnp.bfloat16), w_ih_ref[...],
                preferred_element_type=jnp.float32)
        + b_g_ref[...]
    )

    # ---- LSTM recurrence (PyTorch gate order: i, f, g, o), unrolled in-kernel ----
    whh_cp.wait()
    w_hh = w_hh_vmem[...]            # single hoisted bf16 read (weight-stationary)

    def step(s, carry):
        h, c = carry
        start = pl.multiple_of(s * batch, 8)            # aligned, unmasked load
        xp = xp_scr[pl.ds(start, batch), :]             # (B, 4H) f32
        gates = xp + jnp.dot(h.astype(jnp.bfloat16), w_hh,
                             preferred_element_type=jnp.float32)
        i_g = jax.nn.sigmoid(gates[:, 0 * H:1 * H])     # gate math stays f32
        f_g = jax.nn.sigmoid(gates[:, 1 * H:2 * H])
        g_g = jnp.tanh(gates[:, 2 * H:3 * H])
        o_g = jax.nn.sigmoid(gates[:, 3 * H:4 * H])
        c_new = f_g * c + i_g * g_g
        h_new = o_g * jnp.tanh(c_new)
        return h_new, c_new

    h0 = jnp.zeros((batch, H), jnp.float32)
    c0 = jnp.zeros((batch, H), jnp.float32)
    h_last, _ = lax.fori_loop(0, seq_len, step, (h0, c0), unroll=True)

    # ---- Classifier on the final hidden state (dropout = identity in eval) ----
    w1_cp.wait()
    w2_cp.wait()
    b1 = vecs_ref[2:3, :]
    b2 = vecs_ref[3:4, :]            # zero-padded beyond H2
    b3 = vecs_ref[4:5, :]            # scalar broadcast across lanes
    w3_row = vecs_ref[5:6, :]        # Linear3 weight row, zero-padded beyond H2

    h1 = jnp.dot(h_last.astype(jnp.bfloat16), w1_vmem[...],
                 preferred_element_type=jnp.float32) + b1
    h1 = jnp.where(h1 > 0, h1, NEG_SLOPE * h1)
    h2 = jnp.dot(h1.astype(jnp.bfloat16), w2_vmem[...],
                 preferred_element_type=jnp.float32) + b2
    h2 = jnp.where(h2 > 0, h2, NEG_SLOPE * h2)
    # Final Linear(H2 -> 1) as a VPU multiply + lane reduction (no MXU pass, no
    # replicated (T,T) weight slab); broadcast back so the store is lane-dense.
    logit = jnp.sum(h2 * w3_row, axis=-1, keepdims=True)          # (B, 1)
    logits = jnp.broadcast_to(logit, (batch, out_ref.shape[-1])) + b3
    out_ref[...] = jax.nn.sigmoid(logits)


def simple_rnn_forward(x, params):
    """x: (S, 1, B, T) float32, matching the PyTorch module's expected input."""
    x = jnp.squeeze(x, axis=1)                  # the `x.squeeze(1)` glue -> (S, B, T)
    S, B, T = x.shape
    H = params["w_hh_t"].shape[0]
    B_pad = max(8, -(-B // 8) * 8)              # sublane-full batch
    if B_pad != B:
        x = jnp.pad(x, ((0, 0), (0, B_pad - B), (0, 0)))
    x2 = x.reshape(S * B_pad, T)

    # Rough resident VMEM footprint (bytes) -> scoped limit guard with headroom.
    vmem_need = (
        x2.size * 4 + params["vecs"].size * 4
        + params["w_ih_t"].size * 2 + params["b_gates"].size * 4
        + B_pad * T * 4                              # output slab
        + S * B_pad * 4 * H * 4                      # xp scratch
        + params["w_hh_t"].size * 2                  # prefetched W_hh scratch
        + params["w1_t"].size * 2 + params["w2_pad"].size * 2
    )
    vmem_limit = int(min(max(2 * vmem_need, 32 << 20), 64 << 20))

    out = pl.pallas_call(
        partial(simple_rnn_kernel, seq_len=S, batch=B_pad),
        out_shape=jax.ShapeDtypeStruct((B_pad, T), jnp.float32),
        in_specs=[
            pl.BlockSpec(memory_space=pltpu.MemorySpace.VMEM),   # x2
            pl.BlockSpec(memory_space=pltpu.MemorySpace.VMEM),   # vecs
            pl.BlockSpec(memory_space=pltpu.MemorySpace.VMEM),   # w_ih_t
            pl.BlockSpec(memory_space=pltpu.MemorySpace.VMEM),   # b_gates
            pl.BlockSpec(memory_space=pl.ANY),                   # w_hh_t (async prefetch)
            pl.BlockSpec(memory_space=pl.ANY),                   # w1_t   (async prefetch)
            pl.BlockSpec(memory_space=pl.ANY),                   # w2_pad (async prefetch)
        ],
        out_specs=pl.BlockSpec(memory_space=pltpu.MemorySpace.VMEM),
        scratch_shapes=[
            pltpu.VMEM((S * B_pad, 4 * H), jnp.float32),         # xp_scr
            pltpu.VMEM((H, 4 * H), jnp.bfloat16),                # w_hh_vmem
            pltpu.VMEM((H, T), jnp.bfloat16),                    # w1_vmem
            pltpu.VMEM((T, T), jnp.bfloat16),                    # w2_vmem
            pltpu.SemaphoreType.DMA((3,)),                       # dma_sem
        ],
        compiler_params=pltpu.CompilerParams(vmem_limit_bytes=vmem_limit),
    )(x2, params["vecs"], params["w_ih_t"], params["b_gates"],
      params["w_hh_t"], params["w1_t"], params["w2_pad"])

    # column 0 of each (valid) batch row is sigmoid(logit); matches
    # `classifier(...).reshape(1, -1)` followed by Sigmoid in the PyTorch module.
    return out[:B, 0].reshape(1, B)


def init_params(key, time=128):
    """Deterministic parameter init (PyTorch-style uniform bounds), pre-packed."""
    H = 2 * time          # LSTM hidden
    H2 = time // 2        # classifier mid dim
    ks = jax.random.split(key, 10)

    def u(k, shape, fan):
        bound = 1.0 / float(fan) ** 0.5
        return jax.random.uniform(k, shape, jnp.float32, -bound, bound)

    w_ih = u(ks[0], (4 * H, time), H)
    w_hh = u(ks[1], (4 * H, H), H)
    b_ih = u(ks[2], (4 * H,), H)
    b_hh = u(ks[3], (4 * H,), H)
    w1 = u(ks[4], (time, H), H)
    b1 = u(ks[5], (time,), H)
    w2 = u(ks[6], (H2, time), time)
    b2 = u(ks[7], (H2,), time)
    w3 = u(ks[8], (1, H2), H2)
    b3 = u(ks[9], (1,), H2)

    gamma = jnp.ones((time,), jnp.float32)
    beta = jnp.zeros((time,), jnp.float32)

    # Pack the small per-lane vectors into one array (one DMA, one VMEM tile):
    # rows = gamma, beta, b1, b2 (zero-padded), b3 (lane-broadcast), w3 (padded).
    b2_pad = jnp.zeros((time,), jnp.float32).at[:H2].set(b2)
    w3_pad = jnp.zeros((time,), jnp.float32).at[:H2].set(w3.reshape(-1))
    vecs = jnp.stack(
        [gamma, beta, b1, b2_pad, jnp.full((time,), b3[0], jnp.float32), w3_pad],
        axis=0)

    # Classifier Linear 2 padded to lane-dense output columns, stored bf16.
    w2_pad = jnp.zeros((time, time), jnp.float32).at[:, :H2].set(w2.T)

    return dict(
        vecs=vecs,                                    # (6, time)    f32
        w_ih_t=w_ih.T.astype(jnp.bfloat16),           # (time, 4H)   bf16
        w_hh_t=w_hh.T.astype(jnp.bfloat16),           # (H, 4H)      bf16
        b_gates=(b_ih + b_hh).reshape(1, 4 * H),      # (1, 4H)      f32
        w1_t=w1.T.astype(jnp.bfloat16),               # (H, time)    bf16
        w2_pad=w2_pad.astype(jnp.bfloat16),           # (time, time) bf16
    )


if __name__ == "__main__":
    TIME = 128   # module default: hidden=256, hidden2=64
    S, B = 8, 4  # small seq-len / batch

    key = jax.random.PRNGKey(0)
    pkey, xkey = jax.random.split(key)
    params = init_params(pkey, TIME)
    x = jax.random.normal(xkey, (S, 1, B, TIME), jnp.float32)

    fwd = jax.jit(lambda x: simple_rnn_forward(x, params))
    out = jax.block_until_ready(fwd(x))

    assert out.shape == (1, B), out.shape
    assert bool(jnp.all(jnp.isfinite(out)))
    assert bool(jnp.all((out >= 0.0) & (out <= 1.0)))
    print("KERNEL_OK")
</pallas_src>

<mosaic_0001>
module attributes {stable_mosaic.version = 11 : i64} {
  func.func @simple_rnn_kernel(%arg0: memref<64x128xf32, #tpu.memory_space<vmem>>, %arg1: memref<6x128xf32, #tpu.memory_space<vmem>>, %arg2: memref<128x1024xbf16, #tpu.memory_space<vmem>>, %arg3: memref<1x1024xf32, #tpu.memory_space<vmem>>, %arg4: memref<256x1024xbf16, #tpu.memory_space<any>>, %arg5: memref<256x128xbf16, #tpu.memory_space<any>>, %arg6: memref<128x128xbf16, #tpu.memory_space<any>>, %arg7: memref<8x128xf32, #tpu.memory_space<vmem>>, %arg8: memref<64x1024xf32, #tpu.memory_space<vmem>>, %arg9: memref<256x1024xbf16, #tpu.memory_space<vmem>>, %arg10: memref<256x128xbf16, #tpu.memory_space<vmem>>, %arg11: memref<128x128xbf16, #tpu.memory_space<vmem>>, %arg12: memref<3x!tpu.dma_semaphore, #tpu.memory_space<semaphore_mem>>) attributes {dimension_semantics = [], scalar_prefetch = 0 : i64, scratch_operands = 5 : i64, tpu.core_type = #tpu.core_type<tc>} {
    %c0_i32 = arith.constant 0 : i32
    %0 = tpu.memref_slice %arg12[%c0_i32] : memref<3x!tpu.dma_semaphore, #tpu.memory_space<semaphore_mem>> -> memref<1x!tpu.dma_semaphore, #tpu.memory_space<semaphore_mem>>
    %1 = tpu.memref_squeeze %0 : memref<1x!tpu.dma_semaphore, #tpu.memory_space<semaphore_mem>> -> memref<!tpu.dma_semaphore, #tpu.memory_space<semaphore_mem>>
    tpu.enqueue_dma source(%arg4 : memref<256x1024xbf16, #tpu.memory_space<any>>) target(%arg9 : memref<256x1024xbf16, #tpu.memory_space<vmem>>) target_semaphore(%1 : memref<!tpu.dma_semaphore, #tpu.memory_space<semaphore_mem>>)
    %c1_i32 = arith.constant 1 : i32
    %2 = tpu.memref_slice %arg12[%c1_i32] : memref<3x!tpu.dma_semaphore, #tpu.memory_space<semaphore_mem>> -> memref<1x!tpu.dma_semaphore, #tpu.memory_space<semaphore_mem>>
    %3 = tpu.memref_squeeze %2 : memref<1x!tpu.dma_semaphore, #tpu.memory_space<semaphore_mem>> -> memref<!tpu.dma_semaphore, #tpu.memory_space<semaphore_mem>>
    tpu.enqueue_dma source(%arg5 : memref<256x128xbf16, #tpu.memory_space<any>>) target(%arg10 : memref<256x128xbf16, #tpu.memory_space<vmem>>) target_semaphore(%3 : memref<!tpu.dma_semaphore, #tpu.memory_space<semaphore_mem>>)
    %c2_i32 = arith.constant 2 : i32
    %4 = tpu.memref_slice %arg12[%c2_i32] : memref<3x!tpu.dma_semaphore, #tpu.memory_space<semaphore_mem>> -> memref<1x!tpu.dma_semaphore, #tpu.memory_space<semaphore_mem>>
    %5 = tpu.memref_squeeze %4 : memref<1x!tpu.dma_semaphore, #tpu.memory_space<semaphore_mem>> -> memref<!tpu.dma_semaphore, #tpu.memory_space<semaphore_mem>>
    tpu.enqueue_dma source(%arg6 : memref<128x128xbf16, #tpu.memory_space<any>>) target(%arg11 : memref<128x128xbf16, #tpu.memory_space<vmem>>) target_semaphore(%5 : memref<!tpu.dma_semaphore, #tpu.memory_space<semaphore_mem>>)
    %c0 = arith.constant 0 : index
    %c0_0 = arith.constant 0 : index
    %6 = vector.load %arg0[%c0, %c0_0] : memref<64x128xf32, #tpu.memory_space<vmem>>, vector<64x128xf32>
    %c0_1 = arith.constant 0 : index
    %c0_2 = arith.constant 0 : index
    %7 = vector.load %arg1[%c0_1, %c0_2] : memref<6x128xf32, #tpu.memory_space<vmem>>, vector<1x128xf32>
    %c1 = arith.constant 1 : index
    %c0_3 = arith.constant 0 : index
    %8 = vector.load %arg1[%c1, %c0_3] : memref<6x128xf32, #tpu.memory_space<vmem>>, vector<1x128xf32>
    %cst = arith.constant dense<0.000000e+00> : vector<64xf32>
    %9 = vector.multi_reduction <add>, %6, %cst [1] : vector<64x128xf32> to vector<64xf32>
    %10 = vector.shape_cast %9 : vector<64xf32> to vector<64x1xf32>
    %cst_4 = arith.constant 1.280000e+02 : f32
    %11 = vector.broadcast %cst_4 : f32 to vector<64x1xf32>
    %12 = arith.divf %10, %11 : vector<64x1xf32>
    %13 = vector.broadcast %12 : vector<64x1xf32> to vector<64x128xf32>
    %14 = arith.subf %6, %13 : vector<64x128xf32>
    %15 = arith.mulf %14, %14 : vector<64x128xf32>
    %cst_5 = arith.constant dense<0.000000e+00> : vector<64xf32>
    %16 = vector.multi_reduction <add>, %15, %cst_5 [1] : vector<64x128xf32> to vector<64xf32>
    %17 = vector.shape_cast %16 : vector<64xf32> to vector<64x1xf32>
    %cst_6 = arith.constant 1.280000e+02 : f32
    %18 = vector.broadcast %cst_6 : f32 to vector<64x1xf32>
    %19 = arith.divf %17, %18 : vector<64x1xf32>
    %20 = vector.broadcast %12 : vector<64x1xf32> to vector<64x128xf32>
    %21 = arith.subf %6, %20 : vector<64x128xf32>
    %cst_7 = arith.constant 9.99999974E-6 : f32
    %22 = vector.broadcast %cst_7 : f32 to vector<64x1xf32>
    %23 = arith.addf %19, %22 : vector<64x1xf32>
    %24 = math.rsqrt %23 : vector<64x1xf32>
    %25 = vector.broadcast %24 : vector<64x1xf32> to vector<64x128xf32>
    %26 = arith.mulf %21, %25 : vector<64x128xf32>
    %27 = vector.broadcast %7 : vector<1x128xf32> to vector<64x128xf32>
    %28 = arith.mulf %26, %27 : vector<64x128xf32>
    %29 = vector.broadcast %8 : vector<1x128xf32> to vector<64x128xf32>
    %30 = arith.addf %28, %29 : vector<64x128xf32>
    %31 = arith.truncf %30 : vector<64x128xf32> to vector<64x128xbf16>
    %c0_8 = arith.constant 0 : index
    %c0_9 = arith.constant 0 : index
    %32 = vector.load %arg2[%c0_8, %c0_9] : memref<128x1024xbf16, #tpu.memory_space<vmem>>, vector<128x1024xbf16>
    %cst_10 = arith.constant dense<0.000000e+00> : vector<64x1024xf32>
    %33 = tpu.matmul %31, %32, %cst_10 {dimension_numbers = #tpu.dot_dimension_numbers<[1], [0], [0], [1], [0, 0, 1, 1], [], []>} : vector<64x128xbf16>, vector<128x1024xbf16>, vector<64x1024xf32> -> vector<64x1024xf32>
    %c0_11 = arith.constant 0 : index
    %c0_12 = arith.constant 0 : index
    %34 = vector.load %arg3[%c0_11, %c0_12] : memref<1x1024xf32, #tpu.memory_space<vmem>>, vector<1x1024xf32>
    %35 = vector.broadcast %34 : vector<1x1024xf32> to vector<64x1024xf32>
    %36 = arith.addf %33, %35 : vector<64x1024xf32>
    %c0_13 = arith.constant 0 : index
    %c0_14 = arith.constant 0 : index
    %37 = vector.load %arg8[%c0_13, %c0_14] : memref<64x1024xf32, #tpu.memory_space<vmem>>, vector<64x1024xf32>
    tpu.vector_store %arg8[%c0_13, %c0_14], %36 {strides = array<i32>} : memref<64x1024xf32, #tpu.memory_space<vmem>>, vector<64x1024xf32>,
    %c0_i32_15 = arith.constant 0 : i32
    %38 = tpu.memref_slice %arg12[%c0_i32_15] : memref<3x!tpu.dma_semaphore, #tpu.memory_space<semaphore_mem>> -> memref<1x!tpu.dma_semaphore, #tpu.memory_space<semaphore_mem>>
    %39 = tpu.memref_squeeze %38 : memref<1x!tpu.dma_semaphore, #tpu.memory_space<semaphore_mem>> -> memref<!tpu.dma_semaphore, #tpu.memory_space<semaphore_mem>>
    tpu.wait_dma2 semaphore(%39 : memref<!tpu.dma_semaphore, #tpu.memory_space<semaphore_mem>>) src(%arg4 : memref<256x1024xbf16, #tpu.memory_space<any>>) dst(%arg9 : memref<256x1024xbf16, #tpu.memory_space<vmem>>)
    %c0_16 = arith.constant 0 : index
    %c0_17 = arith.constant 0 : index
    %40 = vector.load %arg9[%c0_16, %c0_17] : memref<256x1024xbf16, #tpu.memory_space<vmem>>, vector<256x1024xbf16>
    %cst_18 = arith.constant 0.000000e+00 : f32
    %41 = vector.broadcast %cst_18 : f32 to vector<8x256xf32>
    %cst_19 = arith.constant 0.000000e+00 : f32
    %42 = vector.broadcast %cst_19 : f32 to vector<8x256xf32>
    %c0_i32_20 = arith.constant 0 : i32
    %c8_i32 = arith.constant 8 : i32
    %43 = arith.muli %c0_i32_20, %c8_i32 : i32
    %44 = tpu.assume_multiple %43, 8 : i32
    %45 = arith.index_cast %44 : i32 to index
    %c0_21 = arith.constant 0 : index
    %46 = vector.load %arg8[%45, %c0_21] : memref<64x1024xf32, #tpu.memory_space<vmem>>, vector<8x1024xf32>
    %47 = arith.truncf %41 : vector<8x256xf32> to vector<8x256xbf16>
    %cst_22 = arith.constant dense<0.000000e+00> : vector<8x1024xf32>
    %48 = tpu.matmul %47, %40, %cst_22 {dimension_numbers = #tpu.dot_dimension_numbers<[1], [0], [0], [1], [0, 0, 1, 1], [], []>} : vector<8x256xbf16>, vector<256x1024xbf16>, vector<8x1024xf32> -> vector<8x1024xf32>
    %49 = arith.addf %46, %48 : vector<8x1024xf32>
    %50 = vector.extract_strided_slice %49 {offsets = [0, 0], sizes = [8, 256], strides = [1, 1]} : vector<8x1024xf32> to vector<8x256xf32>
    %51 = arith.negf %50 : vector<8x256xf32>
    %52 = math.exp %51 : vector<8x256xf32>
    %cst_23 = arith.constant 1.000000e+00 : f32
    %53 = vector.broadcast %cst_23 : f32 to vector<8x256xf32>
    %54 = arith.addf %53, %52 : vector<8x256xf32>
    %55 = arith.divf %53, %54 : vector<8x256xf32>
    %56 = vector.extract_strided_slice %49 {offsets = [0, 256], sizes = [8, 256], strides = [1, 1]} : vector<8x1024xf32> to vector<8x256xf32>
    %57 = arith.negf %56 : vector<8x256xf32>
    %58 = math.exp %57 : vector<8x256xf32>
    %cst_24 = arith.constant 1.000000e+00 : f32
    %59 = vector.broadcast %cst_24 : f32 to vector<8x256xf32>
    %60 = arith.addf %59, %58 : vector<8x256xf32>
    %61 = arith.divf %59, %60 : vector<8x256xf32>
    %62 = vector.extract_strided_slice %49 {offsets = [0, 512], sizes = [8, 256], strides = [1, 1]} : vector<8x1024xf32> to vector<8x256xf32>
    %63 = math.tanh %62 : vector<8x256xf32>
    %64 = vector.extract_strided_slice %49 {offsets = [0, 768], sizes = [8, 256], strides = [1, 1]} : vector<8x1024xf32> to vector<8x256xf32>
    %65 = arith.negf %64 : vector<8x256xf32>
    %66 = math.exp %65 : vector<8x256xf32>
    %cst_25 = arith.constant 1.000000e+00 : f32
    %67 = vector.broadcast %cst_25 : f32 to vector<8x256xf32>
    %68 = arith.addf %67, %66 : vector<8x256xf32>
    %69 = arith.divf %67, %68 : vector<8x256xf32>
    %70 = arith.mulf %61, %42 : vector<8x256xf32>
    %71 = arith.mulf %55, %63 : vector<8x256xf32>
    %72 = arith.addf %70, %71 : vector<8x256xf32>
    %73 = math.tanh %72 : vector<8x256xf32>
    %74 = arith.mulf %69, %73 : vector<8x256xf32>
    %c1_i32_26 = arith.constant 1 : i32
    %c8_i32_27 = arith.constant 8 : i32
    %75 = arith.muli %c1_i32_26, %c8_i32_27 : i32
    %76 = tpu.assume_multiple %75, 8 : i32
    %77 = arith.index_cast %76 : i32 to index
    %c0_28 = arith.constant 0 : index
    %78 = vector.load %arg8[%77, %c0_28] : memref<64x1024xf32, #tpu.memory_space<vmem>>, vector<8x1024xf32>
    %79 = arith.truncf %74 : vector<8x256xf32> to vector<8x256xbf16>
    %cst_29 = arith.constant dense<0.000000e+00> : vector<8x1024xf32>
    %80 = tpu.matmul %79, %40, %cst_29 {dimension_numbers = #tpu.dot_dimension_numbers<[1], [0], [0], [1], [0, 0, 1, 1], [], []>} : vector<8x256xbf16>, vector<256x1024xbf16>, vector<8x1024xf32> -> vector<8x1024xf32>
    %81 = arith.addf %78, %80 : vector<8x1024xf32>
    %82 = vector.extract_strided_slice %81 {offsets = [0, 0], sizes = [8, 256], strides = [1, 1]} : vector<8x1024xf32> to vector<8x256xf32>
    %83 = arith.negf %82 : vector<8x256xf32>
    %84 = math.exp %83 : vector<8x256xf32>
    %cst_30 = arith.constant 1.000000e+00 : f32
    %85 = vector.broadcast %cst_30 : f32 to vector<8x256xf32>
    %86 = arith.addf %85, %84 : vector<8x256xf32>
    %87 = arith.divf %85, %86 : vector<8x256xf32>
    %88 = vector.extract_strided_slice %81 {offsets = [0, 256], sizes = [8, 256], strides = [1, 1]} : vector<8x1024xf32> to vector<8x256xf32>
    %89 = arith.negf %88 : vector<8x256xf32>
    %90 = math.exp %89 : vector<8x256xf32>
    %cst_31 = arith.constant 1.000000e+00 : f32
    %91 = vector.broadcast %cst_31 : f32 to vector<8x256xf32>
    %92 = arith.addf %91, %90 : vector<8x256xf32>
    %93 = arith.divf %91, %92 : vector<8x256xf32>
    %94 = vector.extract_strided_slice %81 {offsets = [0, 512], sizes = [8, 256], strides = [1, 1]} : vector<8x1024xf32> to vector<8x256xf32>
    %95 = math.tanh %94 : vector<8x256xf32>
    %96 = vector.extract_strided_slice %81 {offsets = [0, 768], sizes = [8, 256], strides = [1, 1]} : vector<8x1024xf32> to vector<8x256xf32>
    %97 = arith.negf %96 : vector<8x256xf32>
    %98 = math.exp %97 : vector<8x256xf32>
    %cst_32 = arith.constant 1.000000e+00 : f32
    %99 = vector.broadcast %cst_32 : f32 to vector<8x256xf32>
    %100 = arith.addf %99, %98 : vector<8x256xf32>
    %101 = arith.divf %99, %100 : vector<8x256xf32>
    %102 = arith.mulf %93, %72 : vector<8x256xf32>
    %103 = arith.mulf %87, %95 : vector<8x256xf32>
    %104 = arith.addf %102, %103 : vector<8x256xf32>
    %105 = math.tanh %104 : vector<8x256xf32>
    %106 = arith.mulf %101, %105 : vector<8x256xf32>
    %c2_i32_33 = arith.constant 2 : i32
    %c8_i32_34 = arith.constant 8 : i32
    %107 = arith.muli %c2_i32_33, %c8_i32_34 : i32
    %108 = tpu.assume_multiple %107, 8 : i32
    %109 = arith.index_cast %108 : i32 to index
    %c0_35 = arith.constant 0 : index
    %110 = vector.load %arg8[%109, %c0_35] : memref<64x1024xf32, #tpu.memory_space<vmem>>, vector<8x1024xf32>
    %111 = arith.truncf %106 : vector<8x256xf32> to vector<8x256xbf16>
    %cst_36 = arith.constant dense<0.000000e+00> : vector<8x1024xf32>
    %112 = tpu.matmul %111, %40, %cst_36 {dimension_numbers = #tpu.dot_dimension_numbers<[1], [0], [0], [1], [0, 0, 1, 1], [], []>} : vector<8x256xbf16>, vector<256x1024xbf16>, vector<8x1024xf32> -> vector<8x1024xf32>
    %113 = arith.addf %110, %112 : vector<8x1024xf32>
    %114 = vector.extract_strided_slice %113 {offsets = [0, 0], sizes = [8, 256], strides = [1, 1]} : vector<8x1024xf32> to vector<8x256xf32>
    %115 = arith.negf %114 : vector<8x256xf32>
    %116 = math.exp %115 : vector<8x256xf32>
    %cst_37 = arith.constant 1.000000e+00 : f32
    %117 = vector.broadcast %cst_37 : f32 to vector<8x256xf32>
    %118 = arith.addf %117, %116 : vector<8x256xf32>
    %119 = arith.divf %117, %118 : vector<8x256xf32>
    %120 = vector.extract_strided_slice %113 {offsets = [0, 256], sizes = [8, 256], strides = [1, 1]} : vector<8x1024xf32> to vector<8x256xf32>
    %121 = arith.negf %120 : vector<8x256xf32>
    %122 = math.exp %121 : vector<8x256xf32>
    %cst_38 = arith.constant 1.000000e+00 : f32
    %123 = vector.broadcast %cst_38 : f32 to vector<8x256xf32>
    %124 = arith.addf %123, %122 : vector<8x256xf32>
    %125 = arith.divf %123, %124 : vector<8x256xf32>
    %126 = vector.extract_strided_slice %113 {offsets = [0, 512], sizes = [8, 256], strides = [1, 1]} : vector<8x1024xf32> to vector<8x256xf32>
    %127 = math.tanh %126 : vector<8x256xf32>
    %128 = vector.extract_strided_slice %113 {offsets = [0, 768], sizes = [8, 256], strides = [1, 1]} : vector<8x1024xf32> to vector<8x256xf32>
    %129 = arith.negf %128 : vector<8x256xf32>
    %130 = math.exp %129 : vector<8x256xf32>
    %cst_39 = arith.constant 1.000000e+00 : f32
    %131 = vector.broadcast %cst_39 : f32 to vector<8x256xf32>
    %132 = arith.addf %131, %130 : vector<8x256xf32>
    %133 = arith.divf %131, %132 : vector<8x256xf32>
    %134 = arith.mulf %125, %104 : vector<8x256xf32>
    %135 = arith.mulf %119, %127 : vector<8x256xf32>
    %136 = arith.addf %134, %135 : vector<8x256xf32>
    %137 = math.tanh %136 : vector<8x256xf32>
    %138 = arith.mulf %133, %137 : vector<8x256xf32>
    %c3_i32 = arith.constant 3 : i32
    %c8_i32_40 = arith.constant 8 : i32
    %139 = arith.muli %c3_i32, %c8_i32_40 : i32
    %140 = tpu.assume_multiple %139, 8 : i32
    %141 = arith.index_cast %140 : i32 to index
    %c0_41 = arith.constant 0 : index
    %142 = vector.load %arg8[%141, %c0_41] : memref<64x1024xf32, #tpu.memory_space<vmem>>, vector<8x1024xf32>
    %143 = arith.truncf %138 : vector<8x256xf32> to vector<8x256xbf16>
    %cst_42 = arith.constant dense<0.000000e+00> : vector<8x1024xf32>
    %144 = tpu.matmul %143, %40, %cst_42 {dimension_numbers = #tpu.dot_dimension_numbers<[1], [0], [0], [1], [0, 0, 1, 1], [], []>} : vector<8x256xbf16>, vector<256x1024xbf16>, vector<8x1024xf32> -> vector<8x1024xf32>
    %145 = arith.addf %142, %144 : vector<8x1024xf32>
    %146 = vector.extract_strided_slice %145 {offsets = [0, 0], sizes = [8, 256], strides = [1, 1]} : vector<8x1024xf32> to vector<8x256xf32>
    %147 = arith.negf %146 : vector<8x256xf32>
    %148 = math.exp %147 : vector<8x256xf32>
    %cst_43 = arith.constant 1.000000e+00 : f32
    %149 = vector.broadcast %cst_43 : f32 to vector<8x256xf32>
    %150 = arith.addf %149, %148 : vector<8x256xf32>
    %151 = arith.divf %149, %150 : vector<8x256xf32>
    %152 = vector.extract_strided_slice %145 {offsets = [0, 256], sizes = [8, 256], strides = [1, 1]} : vector<8x1024xf32> to vector<8x256xf32>
    %153 = arith.negf %152 : vector<8x256xf32>
    %154 = math.exp %153 : vector<8x256xf32>
    %cst_44 = arith.constant 1.000000e+00 : f32
    %155 = vector.broadcast %cst_44 : f32 to vector<8x256xf32>
    %156 = arith.addf %155, %154 : vector<8x256xf32>
    %157 = arith.divf %155, %156 : vector<8x256xf32>
    %158 = vector.extract_strided_slice %145 {offsets = [0, 512], sizes = [8, 256], strides = [1, 1]} : vector<8x1024xf32> to vector<8x256xf32>
    %159 = math.tanh %158 : vector<8x256xf32>
    %160 = vector.extract_strided_slice %145 {offsets = [0, 768], sizes = [8, 256], strides = [1, 1]} : vector<8x1024xf32> to vector<8x256xf32>
    %161 = arith.negf %160 : vector<8x256xf32>
    %162 = math.exp %161 : vector<8x256xf32>
    %cst_45 = arith.constant 1.000000e+00 : f32
    %163 = vector.broadcast %cst_45 : f32 to vector<8x256xf32>
    %164 = arith.addf %163, %162 : vector<8x256xf32>
    %165 = arith.divf %163, %164 : vector<8x256xf32>
    %166 = arith.mulf %157, %136 : vector<8x256xf32>
    %167 = arith.mulf %151, %159 : vector<8x256xf32>
    %168 = arith.addf %166, %167 : vector<8x256xf32>
    %169 = math.tanh %168 : vector<8x256xf32>
    %170 = arith.mulf %165, %169 : vector<8x256xf32>
    %c4_i32 = arith.constant 4 : i32
    %c8_i32_46 = arith.constant 8 : i32
    %171 = arith.muli %c4_i32, %c8_i32_46 : i32
    %172 = tpu.assume_multiple %171, 8 : i32
    %173 = arith.index_cast %172 : i32 to index
    %c0_47 = arith.constant 0 : index
    %174 = vector.load %arg8[%173, %c0_47] : memref<64x1024xf32, #tpu.memory_space<vmem>>, vector<8x1024xf32>
    %175 = arith.truncf %170 : vector<8x256xf32> to vector<8x256xbf16>
    %cst_48 = arith.constant dense<0.000000e+00> : vector<8x1024xf32>
    %176 = tpu.matmul %175, %40, %cst_48 {dimension_numbers = #tpu.dot_dimension_numbers<[1], [0], [0], [1], [0, 0, 1, 1], [], []>} : vector<8x256xbf16>, vector<256x1024xbf16>, vector<8x1024xf32> -> vector<8x1024xf32>
    %177 = arith.addf %174, %176 : vector<8x1024xf32>
    %178 = vector.extract_strided_slice %177 {offsets = [0, 0], sizes = [8, 256], strides = [1, 1]} : vector<8x1024xf32> to vector<8x256xf32>
    %179 = arith.negf %178 : vector<8x256xf32>
    %180 = math.exp %179 : vector<8x256xf32>
    %cst_49 = arith.constant 1.000000e+00 : f32
    %181 = vector.broadcast %cst_49 : f32 to vector<8x256xf32>
    %182 = arith.addf %181, %180 : vector<8x256xf32>
    %183 = arith.divf %181, %182 : vector<8x256xf32>
    %184 = vector.extract_strided_slice %177 {offsets = [0, 256], sizes = [8, 256], strides = [1, 1]} : vector<8x1024xf32> to vector<8x256xf32>
    %185 = arith.negf %184 : vector<8x256xf32>
    %186 = math.exp %185 : vector<8x256xf32>
    %cst_50 = arith.constant 1.000000e+00 : f32
    %187 = vector.broadcast %cst_50 : f32 to vector<8x256xf32>
    %188 = arith.addf %187, %186 : vector<8x256xf32>
    %189 = arith.divf %187, %188 : vector<8x256xf32>
    %190 = vector.extract_strided_slice %177 {offsets = [0, 512], sizes = [8, 256], strides = [1, 1]} : vector<8x1024xf32> to vector<8x256xf32>
    %191 = math.tanh %190 : vector<8x256xf32>
    %192 = vector.extract_strided_slice %177 {offsets = [0, 768], sizes = [8, 256], strides = [1, 1]} : vector<8x1024xf32> to vector<8x256xf32>
    %193 = arith.negf %192 : vector<8x256xf32>
    %194 = math.exp %193 : vector<8x256xf32>
    %cst_51 = arith.constant 1.000000e+00 : f32
    %195 = vector.broadcast %cst_51 : f32 to vector<8x256xf32>
    %196 = arith.addf %195, %194 : vector<8x256xf32>
    %197 = arith.divf %195, %196 : vector<8x256xf32>
    %198 = arith.mulf %189, %168 : vector<8x256xf32>
    %199 = arith.mulf %183, %191 : vector<8x256xf32>
    %200 = arith.addf %198, %199 : vector<8x256xf32>
    %201 = math.tanh %200 : vector<8x256xf32>
    %202 = arith.mulf %197, %201 : vector<8x256xf32>
    %c5_i32 = arith.constant 5 : i32
    %c8_i32_52 = arith.constant 8 : i32
    %203 = arith.muli %c5_i32, %c8_i32_52 : i32
    %204 = tpu.assume_multiple %203, 8 : i32
    %205 = arith.index_cast %204 : i32 to index
    %c0_53 = arith.constant 0 : index
    %206 = vector.load %arg8[%205, %c0_53] : memref<64x1024xf32, #tpu.memory_space<vmem>>, vector<8x1024xf32>
    %207 = arith.truncf %202 : vector<8x256xf32> to vector<8x256xbf16>
    %cst_54 = arith.constant dense<0.000000e+00> : vector<8x1024xf32>
    %208 = tpu.matmul %207, %40, %cst_54 {dimension_numbers = #tpu.dot_dimension_numbers<[1], [0], [0], [1], [0, 0, 1, 1], [], []>} : vector<8x256xbf16>, vector<256x1024xbf16>, vector<8x1024xf32> -> vector<8x1024xf32>
    %209 = arith.addf %206, %208 : vector<8x1024xf32>
    %210 = vector.extract_strided_slice %209 {offsets = [0, 0], sizes = [8, 256], strides = [1, 1]} : vector<8x1024xf32> to vector<8x256xf32>
    %211 = arith.negf %210 : vector<8x256xf32>
    %212 = math.exp %211 : vector<8x256xf32>
    %cst_55 = arith.constant 1.000000e+00 : f32
    %213 = vector.broadcast %cst_55 : f32 to vector<8x256xf32>
    %214 = arith.addf %213, %212 : vector<8x256xf32>
    %215 = arith.divf %213, %214 : vector<8x256xf32>
    %216 = vector.extract_strided_slice %209 {offsets = [0, 256], sizes = [8, 256], strides = [1, 1]} : vector<8x1024xf32> to vector<8x256xf32>
    %217 = arith.negf %216 : vector<8x256xf32>
    %218 = math.exp %217 : vector<8x256xf32>
    %cst_56 = arith.constant 1.000000e+00 : f32
    %219 = vector.broadcast %cst_56 : f32 to vector<8x256xf32>
    %220 = arith.addf %219, %218 : vector<8x256xf32>
    %221 = arith.divf %219, %220 : vector<8x256xf32>
    %222 = vector.extract_strided_slice %209 {offsets = [0, 512], sizes = [8, 256], strides = [1, 1]} : vector<8x1024xf32> to vector<8x256xf32>
    %223 = math.tanh %222 : vector<8x256xf32>
    %224 = vector.extract_strided_slice %209 {offsets = [0, 768], sizes = [8, 256], strides = [1, 1]} : vector<8x1024xf32> to vector<8x256xf32>
    %225 = arith.negf %224 : vector<8x256xf32>
    %226 = math.exp %225 : vector<8x256xf32>
    %cst_57 = arith.constant 1.000000e+00 : f32
    %227 = vector.broadcast %cst_57 : f32 to vector<8x256xf32>
    %228 = arith.addf %227, %226 : vector<8x256xf32>
    %229 = arith.divf %227, %228 : vector<8x256xf32>
    %230 = arith.mulf %221, %200 : vector<8x256xf32>
    %231 = arith.mulf %215, %223 : vector<8x256xf32>
    %232 = arith.addf %230, %231 : vector<8x256xf32>
    %233 = math.tanh %232 : vector<8x256xf32>
    %234 = arith.mulf %229, %233 : vector<8x256xf32>
    %c6_i32 = arith.constant 6 : i32
    %c8_i32_58 = arith.constant 8 : i32
    %235 = arith.muli %c6_i32, %c8_i32_58 : i32
    %236 = tpu.assume_multiple %235, 8 : i32
    %237 = arith.index_cast %236 : i32 to index
    %c0_59 = arith.constant 0 : index
    %238 = vector.load %arg8[%237, %c0_59] : memref<64x1024xf32, #tpu.memory_space<vmem>>, vector<8x1024xf32>
    %239 = arith.truncf %234 : vector<8x256xf32> to vector<8x256xbf16>
    %cst_60 = arith.constant dense<0.000000e+00> : vector<8x1024xf32>
    %240 = tpu.matmul %239, %40, %cst_60 {dimension_numbers = #tpu.dot_dimension_numbers<[1], [0], [0], [1], [0, 0, 1, 1], [], []>} : vector<8x256xbf16>, vector<256x1024xbf16>, vector<8x1024xf32> -> vector<8x1024xf32>
    %241 = arith.addf %238, %240 : vector<8x1024xf32>
    %242 = vector.extract_strided_slice %241 {offsets = [0, 0], sizes = [8, 256], strides = [1, 1]} : vector<8x1024xf32> to vector<8x256xf32>
    %243 = arith.negf %242 : vector<8x256xf32>
    %244 = math.exp %243 : vector<8x256xf32>
    %cst_61 = arith.constant 1.000000e+00 : f32
    %245 = vector.broadcast %cst_61 : f32 to vector<8x256xf32>
    %246 = arith.addf %245, %244 : vector<8x256xf32>
    %247 = arith.divf %245, %246 : vector<8x256xf32>
    %248 = vector.extract_strided_slice %241 {offsets = [0, 256], sizes = [8, 256], strides = [1, 1]} : vector<8x1024xf32> to vector<8x256xf32>
    %249 = arith.negf %248 : vector<8x256xf32>
    %250 = math.exp %249 : vector<8x256xf32>
    %cst_62 = arith.constant 1.000000e+00 : f32
    %251 = vector.broadcast %cst_62 : f32 to vector<8x256xf32>
    %252 = arith.addf %251, %250 : vector<8x256xf32>
    %253 = arith.divf %251, %252 : vector<8x256xf32>
    %254 = vector.extract_strided_slice %241 {offsets = [0, 512], sizes = [8, 256], strides = [1, 1]} : vector<8x1024xf32> to vector<8x256xf32>
    %255 = math.tanh %254 : vector<8x256xf32>
    %256 = vector.extract_strided_slice %241 {offsets = [0, 768], sizes = [8, 256], strides = [1, 1]} : vector<8x1024xf32> to vector<8x256xf32>
    %257 = arith.negf %256 : vector<8x256xf32>
    %258 = math.exp %257 : vector<8x256xf32>
    %cst_63 = arith.constant 1.000000e+00 : f32
    %259 = vector.broadcast %cst_63 : f32 to vector<8x256xf32>
    %260 = arith.addf %259, %258 : vector<8x256xf32>
    %261 = arith.divf %259, %260 : vector<8x256xf32>
    %262 = arith.mulf %253, %232 : vector<8x256xf32>
    %263 = arith.mulf %247, %255 : vector<8x256xf32>
    %264 = arith.addf %262, %263 : vector<8x256xf32>
    %265 = math.tanh %264 : vector<8x256xf32>
    %266 = arith.mulf %261, %265 : vector<8x256xf32>
    %c7_i32 = arith.constant 7 : i32
    %c8_i32_64 = arith.constant 8 : i32
    %267 = arith.muli %c7_i32, %c8_i32_64 : i32
    %268 = tpu.assume_multiple %267, 8 : i32
    %269 = arith.index_cast %268 : i32 to index
    %c0_65 = arith.constant 0 : index
    %270 = vector.load %arg8[%269, %c0_65] : memref<64x1024xf32, #tpu.memory_space<vmem>>, vector<8x1024xf32>
    %271 = arith.truncf %266 : vector<8x256xf32> to vector<8x256xbf16>
    %cst_66 = arith.constant dense<0.000000e+00> : vector<8x1024xf32>
    %272 = tpu.matmul %271, %40, %cst_66 {dimension_numbers = #tpu.dot_dimension_numbers<[1], [0], [0], [1], [0, 0, 1, 1], [], []>} : vector<8x256xbf16>, vector<256x1024xbf16>, vector<8x1024xf32> -> vector<8x1024xf32>
    %273 = arith.addf %270, %272 : vector<8x1024xf32>
    %274 = vector.extract_strided_slice %273 {offsets = [0, 0], sizes = [8, 256], strides = [1, 1]} : vector<8x1024xf32> to vector<8x256xf32>
    %275 = arith.negf %274 : vector<8x256xf32>
    %276 = math.exp %275 : vector<8x256xf32>
    %cst_67 = arith.constant 1.000000e+00 : f32
    %277 = vector.broadcast %cst_67 : f32 to vector<8x256xf32>
    %278 = arith.addf %277, %276 : vector<8x256xf32>
    %279 = arith.divf %277, %278 : vector<8x256xf32>
    %280 = vector.extract_strided_slice %273 {offsets = [0, 256], sizes = [8, 256], strides = [1, 1]} : vector<8x1024xf32> to vector<8x256xf32>
    %281 = arith.negf %280 : vector<8x256xf32>
    %282 = math.exp %281 : vector<8x256xf32>
    %cst_68 = arith.constant 1.000000e+00 : f32
    %283 = vector.broadcast %cst_68 : f32 to vector<8x256xf32>
    %284 = arith.addf %283, %282 : vector<8x256xf32>
    %285 = arith.divf %283, %284 : vector<8x256xf32>
    %286 = vector.extract_strided_slice %273 {offsets = [0, 512], sizes = [8, 256], strides = [1, 1]} : vector<8x1024xf32> to vector<8x256xf32>
    %287 = math.tanh %286 : vector<8x256xf32>
    %288 = vector.extract_strided_slice %273 {offsets = [0, 768], sizes = [8, 256], strides = [1, 1]} : vector<8x1024xf32> to vector<8x256xf32>
    %289 = arith.negf %288 : vector<8x256xf32>
    %290 = math.exp %289 : vector<8x256xf32>
    %cst_69 = arith.constant 1.000000e+00 : f32
    %291 = vector.broadcast %cst_69 : f32 to vector<8x256xf32>
    %292 = arith.addf %291, %290 : vector<8x256xf32>
    %293 = arith.divf %291, %292 : vector<8x256xf32>
    %294 = arith.mulf %285, %264 : vector<8x256xf32>
    %295 = arith.mulf %279, %287 : vector<8x256xf32>
    %296 = arith.addf %294, %295 : vector<8x256xf32>
    %297 = math.tanh %296 : vector<8x256xf32>
    %298 = arith.mulf %293, %297 : vector<8x256xf32>
    %c8_i32_70 = arith.constant 8 : i32
    %c1_i32_71 = arith.constant 1 : i32
    %299 = tpu.memref_slice %arg12[%c1_i32_71] : memref<3x!tpu.dma_semaphore, #tpu.memory_space<semaphore_mem>> -> memref<1x!tpu.dma_semaphore, #tpu.memory_space<semaphore_mem>>
    %300 = tpu.memref_squeeze %299 : memref<1x!tpu.dma_semaphore, #tpu.memory_space<semaphore_mem>> -> memref<!tpu.dma_semaphore, #tpu.memory_space<semaphore_mem>>
    tpu.wait_dma2 semaphore(%300 : memref<!tpu.dma_semaphore, #tpu.memory_space<semaphore_mem>>) src(%arg5 : memref<256x128xbf16, #tpu.memory_space<any>>) dst(%arg10 : memref<256x128xbf16, #tpu.memory_space<vmem>>)
    %c2_i32_72 = arith.constant 2 : i32
    %301 = tpu.memref_slice %arg12[%c2_i32_72] : memref<3x!tpu.dma_semaphore, #tpu.memory_space<semaphore_mem>> -> memref<1x!tpu.dma_semaphore, #tpu.memory_space<semaphore_mem>>
    %302 = tpu.memref_squeeze %301 : memref<1x!tpu.dma_semaphore, #tpu.memory_space<semaphore_mem>> -> memref<!tpu.dma_semaphore, #tpu.memory_space<semaphore_mem>>
    tpu.wait_dma2 semaphore(%302 : memref<!tpu.dma_semaphore, #tpu.memory_space<semaphore_mem>>) src(%arg6 : memref<128x128xbf16, #tpu.memory_space<any>>) dst(%arg11 : memref<128x128xbf16, #tpu.memory_space<vmem>>)
    %c2 = arith.constant 2 : index
    %c0_73 = arith.constant 0 : index
    %303 = vector.load %arg1[%c2, %c0_73] : memref<6x128xf32, #tpu.memory_space<vmem>>, vector<1x128xf32>
    %c3 = arith.constant 3 : index
    %c0_74 = arith.constant 0 : index
    %304 = vector.load %arg1[%c3, %c0_74] : memref<6x128xf32, #tpu.memory_space<vmem>>, vector<1x128xf32>
    %c4 = arith.constant 4 : index
    %c0_75 = arith.constant 0 : index
    %305 = vector.load %arg1[%c4, %c0_75] : memref<6x128xf32, #tpu.memory_space<vmem>>, vector<1x128xf32>
    %c5 = arith.constant 5 : index
    %c0_76 = arith.constant 0 : index
    %306 = vector.load %arg1[%c5, %c0_76] : memref<6x128xf32, #tpu.memory_space<vmem>>, vector<1x128xf32>
    %307 = arith.truncf %298 : vector<8x256xf32> to vector<8x256xbf16>
    %c0_77 = arith.constant 0 : index
    %c0_78 = arith.constant 0 : index
    %308 = vector.load %arg10[%c0_77, %c0_78] : memref<256x128xbf16, #tpu.memory_space<vmem>>, vector<256x128xbf16>
    %cst_79 = arith.constant dense<0.000000e+00> : vector<8x128xf32>
    %309 = tpu.matmul %307, %308, %cst_79 {dimension_numbers = #tpu.dot_dimension_numbers<[1], [0], [0], [1], [0, 0, 1, 1], [], []>} : vector<8x256xbf16>, vector<256x128xbf16>, vector<8x128xf32> -> vector<8x128xf32>
    %310 = vector.broadcast %303 : vector<1x128xf32> to vector<8x128xf32>
    %311 = arith.addf %309, %310 : vector<8x128xf32>
    %cst_80 = arith.constant 0.000000e+00 : f32
    %312 = vector.broadcast %cst_80 : f32 to vector<8x128xf32>
    %313 = arith.cmpf ogt, %311, %312 : vector<8x128xf32>
    %cst_81 = arith.constant 0.00999999977 : f32
    %314 = vector.broadcast %cst_81 : f32 to vector<8x128xf32>
    %315 = arith.mulf %314, %311 : vector<8x128xf32>
    %316 = arith.select %313, %311, %315 : vector<8x128xi1>, vector<8x128xf32>
    %317 = arith.truncf %316 : vector<8x128xf32> to vector<8x128xbf16>
    %c0_82 = arith.constant 0 : index
    %c0_83 = arith.constant 0 : index
    %318 = vector.load %arg11[%c0_82, %c0_83] : memref<128x128xbf16, #tpu.memory_space<vmem>>, vector<128x128xbf16>
    %cst_84 = arith.constant dense<0.000000e+00> : vector<8x128xf32>
    %319 = tpu.matmul %317, %318, %cst_84 {dimension_numbers = #tpu.dot_dimension_numbers<[1], [0], [0], [1], [0, 0, 1, 1], [], []>} : vector<8x128xbf16>, vector<128x128xbf16>, vector<8x128xf32> -> vector<8x128xf32>
    %320 = vector.broadcast %304 : vector<1x128xf32> to vector<8x128xf32>
    %321 = arith.addf %319, %320 : vector<8x128xf32>
    %cst_85 = arith.constant 0.000000e+00 : f32
    %322 = vector.broadcast %cst_85 : f32 to vector<8x128xf32>
    %323 = arith.cmpf ogt, %321, %322 : vector<8x128xf32>
    %cst_86 = arith.constant 0.00999999977 : f32
    %324 = vector.broadcast %cst_86 : f32 to vector<8x128xf32>
    %325 = arith.mulf %324, %321 : vector<8x128xf32>
    %326 = arith.select %323, %321, %325 : vector<8x128xi1>, vector<8x128xf32>
    %327 = vector.broadcast %306 : vector<1x128xf32> to vector<8x128xf32>
    %328 = arith.mulf %326, %327 : vector<8x128xf32>
    %cst_87 = arith.constant dense<0.000000e+00> : vector<8xf32>
    %329 = vector.multi_reduction <add>, %328, %cst_87 [1] : vector<8x128xf32> to vector<8xf32>
    %330 = vector.shape_cast %329 : vector<8xf32> to vector<8x1xf32>
    %331 = vector.shape_cast %330 : vector<8x1xf32> to vector<8x1xf32>
    %332 = vector.broadcast %331 : vector<8x1xf32> to vector<8x128xf32>
    %333 = vector.broadcast %305 : vector<1x128xf32> to vector<8x128xf32>
    %334 = arith.addf %332, %333 : vector<8x128xf32>
    %335 = arith.negf %334 : vector<8x128xf32>
    %336 = math.exp %335 : vector<8x128xf32>
    %cst_88 = arith.constant 1.000000e+00 : f32
    %337 = vector.broadcast %cst_88 : f32 to vector<8x128xf32>
    %338 = arith.addf %337, %336 : vector<8x128xf32>
    %339 = arith.divf %337, %338 : vector<8x128xf32>
    %c0_89 = arith.constant 0 : index
    %c0_90 = arith.constant 0 : index
    %340 = vector.load %arg7[%c0_89, %c0_90] : memref<8x128xf32, #tpu.memory_space<vmem>>, vector<8x128xf32>
    tpu.vector_store %arg7[%c0_89, %c0_90], %339 {strides = array<i32>} : memref<8x128xf32, #tpu.memory_space<vmem>>, vector<8x128xf32>,
    return
  }
}

</mosaic_0001>

<bundles_post_ra>
// kernel: _lambda_.1
= control target key start
LH: loop header
LB: loop body
LE: loop exit
PB: predicated region body
PF: predicated region fallthrough
CT: control target
= control target key end

     0   :  { %12 = vsyncpa [#allocation8], 0  ;;  %s4719_s24 = smov [#allocation7]   ;;  %s6636_s0 = inlined_call_operand.vmem [shape: f32[64,128], index: 0, kind: input, shape index: {}]   ;;  %s6637_s1 = inlined_call_operand.vmem [shape: f32[6,128], index: 1, kind: input, shape index: {}]   ;;  %s6638_s2 = inlined_call_operand.hbm [shape: bf16[128,1024], index: 2, kind: input, shape index: {}]   ;;  %s6639_s3 = inlined_call_operand.vmem [shape: f32[1,1024], index: 3, kind: input, shape index: {}]   ;;  %s6640_s4 = inlined_call_operand.hbm [shape: bf16[256,1024], index: 4, kind: input, shape index: {}]   ;;  %s6641_s5 = inlined_call_operand.hbm [shape: bf16[256,128], index: 5, kind: input, shape index: {}]   ;;  %s6642_s6 = inlined_call_operand.vmem [shape: bf16[128,128], index: 6, kind: input, shape index: {}]   ;;  %s6643_s7 = inlined_call_operand.vmem [shape: f32[8,128], index: 7, kind: output, shape index: {}]  }
   0x1   :  { %s22_s25 = sshll.u32 %s4719_s24, 4  ;;  %s23_s25 = int_to_ptr.vmem [resolvable:$true] %s22_s25 }
   0x2   :  { %s4659_s26 = scalar_lea.vmem %s23_s25, 8192  ;;  %p4664_p1 = scmp.lt.s32.totalorder %s23_s25, %s23_s25 }
   0x3   :  { %p4660_p0 = scmp.ne.s32.totalorder %s23_s25, %s4659_s26  ;;  %p4665_p2 = scmp.lt.s32.totalorder %s4659_s26, %s4659_s26 }
   0x5   :  { %p4666_p3 = por %p4665_p2, %p4664_p1 }
   0x7   :  { %p4667_p4 = pnand %p4666_p3, %p4660_p0 }
   0x9   :  { %4670 = shalt.err (!%p4667_p4)
}
   0xa   :  { %s4720_s27 = smov 512   ;;  %s4721_s28 = smov 32  }
   0xb   :  { %28 = dma.hbm_to_vmem [thread:$0]  %s6638_s2, 8192, %s23_s25, [#allocation8], %s4720_s27, %s4720_s27, %s4721_s28  }
   0xc   :  { %4711 = dma.done.wait [#allocation8], 8192  }
   0xd   :  { %4712 = vsyncadd [#allocation8], 4294959104  ;;  %s4722_s8 = smov [#allocation3]   ;;  %s4723_s10 = smov [#allocation4]  }
   0xe   :  { %s42_s9 = sshll.u32 %s4722_s8, 4  ;;  %s54_s11 = sshll.u32 %s4723_s10, 4  ;;  %s43_s9 = int_to_ptr.vmem [resolvable:$true] %s42_s9  ;;  %s55_s11 = int_to_ptr.vmem [resolvable:$true] %s54_s11 }
   0xf   :  { %s4679_s12 = scalar_lea.vmem %s43_s9, 16384  ;;  %p4684_p6 = scmp.lt.s32.totalorder %s43_s9, %s43_s9 }
  0x10   :  { %p4680_p5 = scmp.ne.s32.totalorder %s43_s9, %s4679_s12  ;;  %p4685_p7 = scmp.lt.s32.totalorder %s4679_s12, %s4679_s12 }
  0x12   :  { %p4686_p8 = por %p4685_p7, %p4684_p6 }
  0x14   :  { %p4687_p9 = pnand %p4686_p8, %p4680_p5 }
  0x16   :  { %4690 = shalt.err (!%p4687_p9)  }
  0x17   :  { %45 = dma.hbm_to_vmem [thread:$0]  %s6640_s4, 16384, %s43_s9, [#allocation6] }
  0x18   :  { %s4699_s2 = scalar_lea.vmem %s55_s11, 2048  ;;  %p4704_p11 = scmp.lt.s32.totalorder %s55_s11, %s55_s11 }
  0x19   :  { %p4700_p10 = scmp.ne.s32.totalorder %s55_s11, %s4699_s2  ;;  %p4705_p12 = scmp.lt.s32.totalorder %s4699_s2, %s4699_s2 }
  0x1b   :  { %p4706_p13 = por %p4705_p12, %p4704_p11 }
  0x1d   :  { %p4707_p0 = pnand %p4706_p13, %p4700_p10 }
  0x1f   :  { %4710 = shalt.err (!%p4707_p0)  }
  0x20   :  { %57 = dma.hbm_to_vmem [thread:$0]  %s6641_s5, 2048, %s55_s11, [#allocation6 + $0x1]  ;;  %v92_v0 = vld [vmem:[%s6642_s6] sm:$0xff]  ;;  %v94_v1 = vld [vmem:[%s6642_s6 + $0x8] sm:$0xff]  ;;  %v96_v2 = vld [vmem:[%s6642_s6 + $0x10] sm:$0xff] }
  0x21   :  { %93 = vst [vmem:[#allocation5] sm:$0xff] %v92_v0  ;;  %95 = vst [vmem:[#allocation5 + $0x8] sm:$0xff] %v94_v1  ;;  %v98_v3 = vld [vmem:[%s6642_s6 + $0x18] sm:$0xff]  ;;  %v100_v4 = vld [vmem:[%s6642_s6 + $0x20] sm:$0xff] }
  0x22   :  { %97 = vst [vmem:[#allocation5 + $0x10] sm:$0xff] %v96_v2  ;;  %v102_v5 = vld [vmem:[%s6642_s6 + $0x28] sm:$0xff]  ;;  %99 = vst [vmem:[#allocation5 + $0x18] sm:$0xff] %v98_v3  ;;  %v104_v6 = vld [vmem:[%s6642_s6 + $0x30] sm:$0xff] }
  0x23   :  { %101 = vst [vmem:[#allocation5 + $0x20] sm:$0xff] %v100_v4  ;;  %103 = vst [vmem:[#allocation5 + $0x28] sm:$0xff] %v102_v5  ;;  %v106_v7 = vld [vmem:[%s6642_s6 + $0x38] sm:$0xff]  ;;  %v116_v8 = vld [vmem:[%s6636_s0] sm:$0xff] }
  0x24   :  { %105 = vst [vmem:[#allocation5 + $0x30] sm:$0xff] %v104_v6  ;;  %107 = vst [vmem:[#allocation5 + $0x38] sm:$0xff] %v106_v7  ;;  %v118_v9 = vld [vmem:[%s6636_s0 + $0x10] sm:$0xff]  ;;  %126 = vadd.xlane.f32.xlu0 %v116_v8  ;;  %v117_v10 = vld [vmem:[%s6636_s0 + $0x8] sm:$0xff] }
  0x25   :  { %130 = vadd.xlane.f32.xlu1 %v118_v9  ;;  %v119_v11 = vld [vmem:[%s6636_s0 + $0x18] sm:$0xff] }
  0x26   :  { %115 = vsyncadd [#allocation6 + $0x2], 1024  ;;  %v120_v12 = vld [vmem:[%s6636_s0 + $0x20] sm:$0xff]  ;;  %v121_v13 = vld [vmem:[%s6636_s0 + $0x28] sm:$0xff] }
  0x27   :  { %v122_v14 = vld [vmem:[%s6636_s0 + $0x30] sm:$0xff]  ;;  %v123_v15 = vld [vmem:[%s6636_s0 + $0x38] sm:$0xff]  ;;  %v299_v16 = vld [vmem:[#allocation7 + $0x1c0] sm:$0xff] }
  0x28   :  { %128 = vadd.xlane.f32.xlu0 %v117_v10  ;;  %v303_v17 = vld [vmem:[#allocation7 + $0x1e0] sm:$0xff]  ;;  %v300_v18 = vld [vmem:[#allocation7 + $0x1c8] sm:$0xff] }
  0x29   :  { %132 = vadd.xlane.f32.xlu1 %v119_v11  ;;  %v4077_v19 = vcombine.high %v299_v16, %v303_v17  ;;  %v304_v20 = vld [vmem:[#allocation7 + $0x1e8] sm:$0xff]  ;;  %v4076_v21 = vcombine.low %v299_v16, %v303_v17  ;;  %v291_v54 = vld [vmem:[#allocation7 + $0x180] sm:$0xff] }
  0x2a   :  { %v4079_v22 = vcombine.high %v300_v18, %v304_v20  ;;  %v4078_v23 = vcombine.low %v300_v18, %v304_v20  ;;  %v295_v55 = vld [vmem:[#allocation7 + $0x1a0] sm:$0xff]  ;;  %v292_v56 = vld [vmem:[#allocation7 + $0x188] sm:$0xff] }
  0x2b   :  { %669 = vmatprep.subr.bf16.mxu0 %v4077_v19  ;;  %v4069_v58 = vcombine.high %v291_v54, %v295_v55  ;;  %v296_v59 = vld [vmem:[#allocation7 + $0x1a8] sm:$0xff]  ;;  %v4068_v61 = vcombine.low %v291_v54, %v295_v55  ;;  %v283_v0 = vld [vmem:[#allocation7 + $0x140] sm:$0xff]  ;;  %v4858_v54 = vld [vmem:[#allocation7 + $0x1d0] sm:$0xff] }
  0x2c   :  { %134 = vadd.xlane.f32.xlu0 %v120_v12  ;;  %742 = vmatprep.subr.bf16.mxu1 %v4079_v22  ;;  %v4071_v60 = vcombine.high %v292_v56, %v296_v59  ;;  %v4070_v62 = vcombine.low %v292_v56, %v296_v59  ;;  %v287_v1 = vld [vmem:[#allocation7 + $0x160] sm:$0xff]  ;;  %v284_v2 = vld [vmem:[#allocation7 + $0x148] sm:$0xff]  ;;  %v4860_v56 = vld [vmem:[#allocation7 + $0x1f0] sm:$0xff] }
  0x2d   :  { %136 = vadd.xlane.f32.xlu1 %v121_v13  ;;  %670 = vmatpush1.bf16.msra.mxu0 %v4076_v21  ;;  %v4061_v3 = vcombine.high %v283_v0, %v287_v1  ;;  %v288_v4 = vld [vmem:[#allocation7 + $0x168] sm:$0xff]  ;;  %v4060_v6 = vcombine.low %v283_v0, %v287_v1  ;;  %v267_v16 = vld [vmem:[#allocation7 + $0xc0] sm:$0xff] }
  0x2e   :  { %743 = vmatpush1.bf16.msra.mxu1 %v4078_v23  ;;  %671 = vmatprep.subr.bf16.mxu0 %v4069_v58  ;;  %v4063_v5 = vcombine.high %v284_v2, %v288_v4  ;;  %v4062_v7 = vcombine.low %v284_v2, %v288_v4  ;;  %v271_v17 = vld [vmem:[#allocation7 + $0xe0] sm:$0xff]  ;;  %v268_v18 = vld [vmem:[#allocation7 + $0xc8] sm:$0xff]  ;;  %v4864_v58 = vld [vmem:[#allocation7 + $0x1f8] sm:$0xff] }
  0x2f   :  { %744 = vmatprep.subr.bf16.mxu1 %v4071_v60  ;;  %v4045_v19 = vcombine.high %v267_v16, %v271_v17  ;;  %v272_v20 = vld [vmem:[#allocation7 + $0xe8] sm:$0xff]  ;;  %v4044_v22 = vcombine.low %v267_v16, %v271_v17  ;;  %v4080_v60 = vcombine.low %v4858_v54, %v4860_v56 }
  0x30   :  { %138 = vadd.xlane.f32.xlu0 %v122_v14  ;;  %v4047_v21 = vcombine.high %v268_v18, %v272_v20  ;;  %v4046_v23 = vcombine.low %v268_v18, %v272_v20 }
  0x31   :  { %140 = vadd.xlane.f32.xlu1 %v123_v15  ;;  %672 = vmatpush1.bf16.msra.mxu0 %v4068_v61 }
  0x32   :  { %745 = vmatpush1.bf16.msra.mxu1 %v4070_v62  ;;  %673 = vmatprep.subr.bf16.mxu0 %v4061_v3 }
  0x33   :  { %746 = vmatprep.subr.bf16.mxu1 %v4063_v5 }
  0x35   :  { %674 = vmatpush1.bf16.msra.mxu0 %v4060_v6 }
  0x36   :  { %747 = vmatpush1.bf16.msra.mxu1 %v4062_v7 }
  0xad   :  { %v127_v24 = vpop.xlane.xlu0 %126 }
  0xae   :  { %v131_v25 = vpop.xlane.xlu1 %130  ;;  %v143_v26 = vmul.f32 0.0078125, %v127_v24  ;;  %v259_v24 = vld [vmem:[#allocation7 + $0x80] sm:$0xff] }
  0xaf   :  { %v145_v27 = vmul.f32 0.0078125, %v131_v25  ;;  %v263_v25 = vld [vmem:[#allocation7 + $0xa0] sm:$0xff] }
  0xb0   :  { %v4824_v28 = vsub.f32 %v116_v8, %v143_v26  ;;  %v275_v8 = vld [vmem:[#allocation7 + $0x100] sm:$0xff]  ;;  %v260_v26 = vld [vmem:[#allocation7 + $0x88] sm:$0xff] }
  0xb1   :  { %v4826_v29 = vsub.f32 %v118_v9, %v145_v27  ;;  %v129_v30 = vpop.xlane.xlu0 %128  ;;  %v279_v9 = vld [vmem:[#allocation7 + $0x120] sm:$0xff]  ;;  %v4037_v27 = vcombine.high %v259_v24, %v263_v25 }
  0xb2   :  { %v133_v31 = vpop.xlane.xlu1 %132  ;;  %v144_v32 = vmul.f32 0.0078125, %v129_v30  ;;  %v159_v33 = vmul.f32 %v4824_v28, %v4824_v28  ;;  %v264_v30 = vld [vmem:[#allocation7 + $0xa8] sm:$0xff] }
  0xb3   :  { %v146_v34 = vmul.f32 0.0078125, %v133_v31  ;;  %v161_v37 = vmul.f32 %v4826_v29, %v4826_v29  ;;  %v4039_v31 = vcombine.high %v260_v26, %v264_v30 }
  0xb4   :  { %v4830_v35 = vsub.f32 %v117_v10, %v144_v32  ;;  %167 = vadd.xlane.f32.xlu0 %v159_v33  ;;  %v276_v10 = vld [vmem:[#allocation7 + $0x108] sm:$0xff]  ;;  %v4036_v32 = vcombine.low %v259_v24, %v263_v25  ;;  %v4038_v33 = vcombine.low %v260_v26, %v264_v30  ;;  %v4878_v25 = vld [vmem:[%s6637_s1] ss:$0 sm:$0xff] }
  0xb5   :  { %v4832_v36 = vsub.f32 %v119_v11, %v146_v34  ;;  %v135_v38 = vpop.xlane.xlu0 %134  ;;  %v4053_v11 = vcombine.high %v275_v8, %v279_v9  ;;  %v251_v34 = vld [vmem:[#allocation7 + $0x40] sm:$0xff] }
  0xb6   :  { %v137_v39 = vpop.xlane.xlu1 %136  ;;  %v147_v40 = vmul.f32 0.0078125, %v135_v38  ;;  %v160_v41 = vmul.f32 %v4830_v35, %v4830_v35  ;;  %v252_v38 = vld [vmem:[#allocation7 + $0x48] sm:$0xff] }
  0xb7   :  { %v148_v42 = vmul.f32 0.0078125, %v137_v39  ;;  %v162_v45 = vmul.f32 %v4832_v36, %v4832_v36  ;;  %675 = vmatprep.subr.bf16.mxu0 %v4053_v11 }
  0xb8   :  { %v4838_v43 = vsub.f32 %v120_v12, %v147_v40  ;;  %171 = vadd.xlane.f32.xlu0 %v161_v37  ;;  %169 = vadd.xlane.f32.xlu1 %v160_v41  ;;  %v280_v12 = vld [vmem:[#allocation7 + $0x128] sm:$0xff]  ;;  %v255_v37 = vld [vmem:[#allocation7 + $0x60] sm:$0xff] }
  0xb9   :  { %v4840_v44 = vsub.f32 %v121_v13, %v148_v42  ;;  %v139_v46 = vpop.xlane.xlu0 %138  ;;  %v4055_v13 = vcombine.high %v276_v10, %v280_v12  ;;  %v4029_v39 = vcombine.high %v251_v34, %v255_v37  ;;  %v256_v40 = vld [vmem:[#allocation7 + $0x68] sm:$0xff]  ;;  %v4028_v41 = vcombine.low %v251_v34, %v255_v37  ;;  %v243_v42 = vld [vmem:[#allocation7] sm:$0xff]  ;;  %v293_v37 = vld [vmem:[#allocation7 + $0x190] sm:$0xff] }
  0xba   :  { %v141_v47 = vpop.xlane.xlu1 %140  ;;  %v149_v48 = vmul.f32 0.0078125, %v139_v46  ;;  %v163_v49 = vmul.f32 %v4838_v43, %v4838_v43  ;;  %v6644_v46 = vmov 0   ;;  %v4885_v34 = vld [vmem:[%s6637_s1 + $0x1] ss:$0 sm:$0xff] }
  0xbb   :  { %v150_v50 = vmul.f32 0.0078125, %v141_v47  ;;  %v164_v53 = vmul.f32 %v4840_v44, %v4840_v44  ;;  %748 = vmatprep.subr.bf16.mxu1 %v4055_v13  ;;  %701 = vmatprep.mubr.bf16.mxu0 %v6644_v46  ;;  %v4031_v47 = vcombine.high %v252_v38, %v256_v40 }
  0xbc   :  { %v4846_v51 = vsub.f32 %v122_v14, %v149_v48  ;;  %173 = vadd.xlane.f32.xlu1 %v162_v45  ;;  %175 = vadd.xlane.f32.xlu0 %v163_v49  ;;  %v4052_v14 = vcombine.low %v275_v8, %v279_v9  ;;  %v247_v45 = vld [vmem:[#allocation7 + $0x20] sm:$0xff]  ;;  %v4030_v48 = vcombine.low %v252_v38, %v256_v40  ;;  %v294_v40 = vld [vmem:[#allocation7 + $0x198] sm:$0xff] }
  0xbd   :  { %v4848_v52 = vsub.f32 %v123_v15, %v150_v50  ;;  %v4054_v15 = vcombine.low %v276_v10, %v280_v12  ;;  %v4021_v49 = vcombine.high %v243_v42, %v247_v45  ;;  %v244_v50 = vld [vmem:[#allocation7 + $0x8] sm:$0xff]  ;;  %774 = vmatprep.mubr.bf16.mxu1 %v6644_v46  ;;  %v4020_v59 = vcombine.low %v243_v42, %v247_v45 }
  0xbe   :  { %v165_v57 = vmul.f32 %v4846_v51, %v4846_v51  ;;  %676 = vmatpush1.bf16.msra.mxu0 %v4052_v14 }
  0xbf   :  { %v166_v63 = vmul.f32 %v4848_v52, %v4848_v52  ;;  %749 = vmatpush1.bf16.msra.mxu1 %v4054_v15  ;;  %677 = vmatprep.subr.bf16.mxu0 %v4045_v19 }
  0xc0   :  { %177 = vadd.xlane.f32.xlu1 %v164_v53  ;;  %179 = vadd.xlane.f32.xlu0 %v165_v57  ;;  %v248_v53 = vld [vmem:[#allocation7 + $0x28] sm:$0xff]  ;;  %v4862_v57 = vld [vmem:[#allocation7 + $0x1d8] sm:$0xff] }
  0xc1   :  { %750 = vmatprep.subr.bf16.mxu1 %v4047_v21  ;;  %v4023_v55 = vcombine.high %v244_v50, %v248_v53  ;;  %v4082_v61 = vcombine.low %v4862_v57, %v4864_v58  ;;  %v4022_v62 = vcombine.low %v244_v50, %v248_v53  ;;  %v4083_v0 = vcombine.high %v4862_v57, %v4864_v58  ;;  %v285_v53 = vld [vmem:[#allocation7 + $0x150] sm:$0xff] }
  0xc2   :  { %678 = vmatpush1.bf16.msra.mxu0 %v4044_v22 }
  0xc3   :  { %751 = vmatpush1.bf16.msra.mxu1 %v4046_v23  ;;  %679 = vmatprep.subr.bf16.mxu0 %v4037_v27 }
  0xc4   :  { %181 = vadd.xlane.f32.xlu1 %v166_v63  ;;  %752 = vmatprep.subr.bf16.mxu1 %v4039_v31  ;;  %v4081_v63 = vcombine.high %v4858_v54, %v4860_v56  ;;  %v278_v54 = vld [vmem:[#allocation7 + $0x118] sm:$0xff] }
  0xc5   :  { %v282_v56 = vld [vmem:[#allocation7 + $0x138] sm:$0xff] }
  0xc6   :  { %680 = vmatpush1.bf16.msra.mxu0 %v4036_v32 }
  0xc7   :  { %753 = vmatpush1.bf16.msra.mxu1 %v4038_v33  ;;  %681 = vmatprep.subr.bf16.mxu0 %v4029_v39  ;;  %v297_v39 = vld [vmem:[#allocation7 + $0x1b0] sm:$0xff] }
  0xc8   :  { %754 = vmatprep.subr.bf16.mxu1 %v4031_v47 }
  0xca   :  { %682 = vmatpush1.bf16.msra.mxu0 %v4028_v41  ;;  %v298_v41 = vld [vmem:[#allocation7 + $0x1b8] sm:$0xff] }
  0xcb   :  { %755 = vmatpush1.bf16.msra.mxu1 %v4030_v48  ;;  %683 = vmatprep.subr.bf16.mxu0 %v4021_v49  ;;  %v4073_v49 = vcombine.high %v293_v37, %v297_v39  ;;  %v4075_v50 = vcombine.high %v294_v40, %v298_v41 }
  0xcc   :  { %756 = vmatprep.subr.bf16.mxu1 %v4023_v55  ;;  %v289_v55 = vld [vmem:[#allocation7 + $0x170] sm:$0xff] }
  0xce   :  { %684 = vmatpush1.bf16.msra.mxu0 %v4020_v59 }
  0xcf   :  { %757 = vmatpush1.bf16.msra.mxu1 %v4022_v62  ;;  %815 = vmatprep.subr.bf16.mxu0 %v4081_v63  ;;  %v286_v63 = vld [vmem:[#allocation7 + $0x158] sm:$0xff] }
  0xd0   :  { %888 = vmatprep.subr.bf16.mxu1 %v4083_v0  ;;  %v290_v0 = vld [vmem:[#allocation7 + $0x178] sm:$0xff] }
 0x13d   :  { %v168_v1 = vpop.xlane.xlu0 %167 }
 0x13e   :  { %v183_v2 = vmul.f32 0.0078125, %v168_v1 }
 0x140   :  { %v191_v3 = vadd.f32 1e-05, %v183_v2  ;;  %v4074_v2 = vcombine.low %v294_v40, %v298_v41  ;;  %v257_v41 = vld [vmem:[#allocation7 + $0x70] sm:$0xff] }
 0x141   :  { %v170_v4 = vpop.xlane.xlu1 %169  ;;  %v172_v5 = vpop.xlane.xlu0 %171 }
 0x142   :  { %4351 = vrsqrt.f32 %v191_v3  ;;  %v184_v6 = vmul.f32 0.0078125, %v170_v4  ;;  %v185_v7 = vmul.f32 0.0078125, %v172_v5  ;;  %v4065_v3 = vcombine.high %v285_v53, %v289_v55 }
 0x143   :  { %v4067_v4 = vcombine.high %v286_v63, %v290_v0 }
 0x144   :  { %v192_v8 = vadd.f32 1e-05, %v184_v6  ;;  %v193_v9 = vadd.f32 1e-05, %v185_v7  ;;  %v277_v6 = vld [vmem:[#allocation7 + $0x110] sm:$0xff] }
 0x145   :  { %v174_v10 = vpop.xlane.xlu1 %173  ;;  %v176_v11 = vpop.xlane.xlu0 %175  ;;  %v281_v7 = vld [vmem:[#allocation7 + $0x130] sm:$0xff] }
 0x146   :  { %4353 = vrsqrt.f32 %v192_v8  ;;  %v186_v12 = vmul.f32 0.0078125, %v174_v10  ;;  %v187_v14 = vmul.f32 0.0078125, %v176_v11  ;;  %v269_v11 = vld [vmem:[#allocation7 + $0xd0] sm:$0xff] }
 0x147   :  { %4355 = vrsqrt.f32 %v193_v9  ;;  %v4057_v9 = vcombine.high %v277_v6, %v281_v7 }
 0x148   :  { %v194_v13 = vadd.f32 1e-05, %v186_v12  ;;  %v195_v17 = vadd.f32 1e-05, %v187_v14  ;;  %v273_v12 = vld [vmem:[#allocation7 + $0xf0] sm:$0xff] }
 0x149   :  { %v178_v15 = vpop.xlane.xlu1 %177  ;;  %v180_v19 = vpop.xlane.xlu0 %179 }
 0x14a   :  { %4357 = vrsqrt.f32 %v194_v13  ;;  %v188_v16 = vmul.f32 0.0078125, %v178_v15  ;;  %v189_v23 = vmul.f32 0.0078125, %v180_v19  ;;  %v270_v15 = vld [vmem:[#allocation7 + $0xd8] sm:$0xff]  ;;  %v4058_v19 = vcombine.low %v278_v54, %v282_v56 }
 0x14c   :  { %v196_v18 = vadd.f32 1e-05, %v188_v16  ;;  %v197_v30 = vadd.f32 1e-05, %v189_v23  ;;  %v274_v16 = vld [vmem:[#allocation7 + $0xf8] sm:$0xff]  ;;  %v261_v23 = vld [vmem:[#allocation7 + $0x90] sm:$0xff] }
 0x14d   :  { %v182_v20 = vpop.xlane.xlu1 %181 }
 0x14e   :  { %4359 = vrsqrt.f32 %v196_v18  ;;  %v190_v21 = vmul.f32 0.0078125, %v182_v20  ;;  %v4056_v18 = vcombine.low %v277_v6, %v281_v7  ;;  %v4049_v20 = vcombine.high %v269_v11, %v273_v12  ;;  %v4947_v7 = vld [vmem:[%s6639_s3] sm:$0xff] }
 0x14f   :  { %v4352_v22 = vpop.eup %4351  ;;  %4361 = vrsqrt.f32 %v195_v17 }
 0x150   :  { %v207_v24 = vmul.f32 %v4352_v22, %v4824_v28  ;;  %v198_v26 = vadd.f32 1e-05, %v190_v21  ;;  %v4051_v21 = vcombine.high %v270_v15, %v274_v16 }
 0x152   :  { %v219_v32 = vmul.f32 %v4878_v25, %v207_v24  ;;  %4363 = vrsqrt.f32 %v198_v26  ;;  %v265_v24 = vld [vmem:[#allocation7 + $0xb0] sm:$0xff] }
 0x153   :  { %v4354_v27 = vpop.eup %4353  ;;  %4365 = vrsqrt.f32 %v197_v30  ;;  %v266_v30 = vld [vmem:[#allocation7 + $0xb8] sm:$0xff] }
 0x154   :  { %v208_v31 = vmul.f32 %v4354_v27, %v4830_v35  ;;  %v4356_v33 = vpop.eup %4355  ;;  %v231_v42 = vadd.f32 %v4885_v34, %v219_v32  ;;  %v262_v27 = vld [vmem:[#allocation7 + $0x98] sm:$0xff] }
 0x155   :  { %v209_v45 = vmul.f32 %v4356_v33, %v4826_v29  ;;  %v4048_v33 = vcombine.low %v269_v11, %v273_v12 }
 0x156   :  { %v220_v28 = vmul.f32 %v4878_v25, %v208_v31 }
 0x157   :  { %v4358_v38 = vpop.eup %4357  ;;  %v221_v1 = vmul.f32 %v4878_v25, %v209_v45 }
 0x158   :  { %v232_v35 = vadd.f32 %v4885_v34, %v220_v28  ;;  %v210_v47 = vmul.f32 %v4358_v38, %v4832_v36  ;;  %v4072_v36 = vcombine.low %v293_v37, %v297_v39  ;;  %v4050_v28 = vcombine.low %v270_v15, %v274_v16 }
 0x159   :  { %v233_v57 = vadd.f32 %v4885_v34, %v221_v1  ;;  %v4041_v37 = vcombine.high %v261_v23, %v265_v24  ;;  %v4043_v39 = vcombine.high %v262_v27, %v266_v30 }
 0x15a   :  { %v4892_v48 = vpack.c.bf16 %v232_v35, %v231_v42  ;;  %v222_v59 = vmul.f32 %v4878_v25, %v210_v47  ;;  %v254_v42 = vld [vmem:[#allocation7 + $0x58] sm:$0xff]  ;;  %v4042_v47 = vcombine.low %v262_v27, %v266_v30 }
 0x15b   :  { %v4360_v62 = vpop.eup %4359  ;;  %v258_v35 = vld [vmem:[#allocation7 + $0x78] sm:$0xff] }
 0x15c   :  { %702 = vmatmul.mubr.bf16.vlgmr.msra.gmra.mxu0 %v4892_v48  ;;  %775 = vmatmul.mubr.bf16.vlgmr.msra.gmra.mxu1 %v4892_v48  ;;  %v4362_v29 = vpop.eup %4361  ;;  %v234_v5 = vadd.f32 %v4885_v34, %v222_v59  ;;  %v212_v8 = vmul.f32 %v4360_v62, %v4840_v44  ;;  %v4059_v44 = vcombine.high %v278_v54, %v282_v56  ;;  %v249_v59 = vld [vmem:[#allocation7 + $0x30] sm:$0xff]  ;;  %v246_v62 = vld [vmem:[#allocation7 + $0x18] sm:$0xff] }
 0x15d   :  { %816 = vmatpush1.bf16.msra.mxu0 %v4080_v60  ;;  %889 = vmatpush1.bf16.msra.mxu1 %v4082_v61  ;;  %v211_v58 = vmul.f32 %v4362_v29, %v4838_v43  ;;  %v4064_v60 = vcombine.low %v285_v53, %v289_v55  ;;  %v4066_v61 = vcombine.low %v286_v63, %v290_v0  ;;  %v245_v55 = vld [vmem:[#allocation7 + $0x10] sm:$0xff]  ;;  %v250_v63 = vld [vmem:[#allocation7 + $0x38] sm:$0xff] }
 0x15e   :  { %817 = vmatprep.subr.bf16.mxu0 %v4073_v49  ;;  %890 = vmatprep.subr.bf16.mxu1 %v4075_v50  ;;  %v4910_v10 = vpack.c.bf16 %v234_v5, %v233_v57  ;;  %v224_v13 = vmul.f32 %v4878_v25, %v212_v8  ;;  %v4035_v50 = vcombine.high %v254_v42, %v258_v35 }
 0x15f   :  { %711 = vmatprep.mubr.bf16.mxu0 %v6644_v46  ;;  %784 = vmatprep.mubr.bf16.mxu1 %v6644_v46  ;;  %v4364_v14 = vpop.eup %4363  ;;  %v223_v43 = vmul.f32 %v4878_v25, %v211_v58  ;;  %v4034_v1 = vcombine.low %v254_v42, %v258_v35 }
 0x160   :  { %v4366_v17 = vpop.eup %4365  ;;  %v236_v22 = vadd.f32 %v4885_v34, %v224_v13  ;;  %v214_v26 = vmul.f32 %v4364_v14, %v4848_v52  ;;  %v253_v52 = vld [vmem:[#allocation7 + $0x50] sm:$0xff] }
 0x161   :  { %818 = vmatpush1.bf16.msra.mxu0 %v4072_v36  ;;  %891 = vmatpush1.bf16.msra.mxu1 %v4074_v2  ;;  %v235_v31 = vadd.f32 %v4885_v34, %v223_v43  ;;  %v213_v32 = vmul.f32 %v4366_v17, %v4846_v51  ;;  %v4040_v51 = vcombine.low %v261_v23, %v265_v24 }
 0x162   :  { %819 = vmatprep.subr.bf16.mxu0 %v4065_v3  ;;  %892 = vmatprep.subr.bf16.mxu1 %v4067_v4  ;;  %v226_v40 = vmul.f32 %v4878_v25, %v214_v26  ;;  %v4033_v49 = vcombine.high %v253_v52, %v257_v41  ;;  %v4032_v0 = vcombine.low %v253_v52, %v257_v41 }
 0x163   :  { %v241_v38 = vpack.c.bf16 %v236_v22, %v235_v31  ;;  %v225_v45 = vmul.f32 %v4878_v25, %v213_v32  ;;  %v4025_v36 = vcombine.high %v245_v55, %v249_v59  ;;  %v4027_v2 = vcombine.high %v246_v62, %v250_v63 }
 0x164   :  { %712 = vmatmul.mubr.bf16.gmra.mxu0 %v4910_v10  ;;  %785 = vmatmul.mubr.bf16.gmra.mxu1 %v4910_v10  ;;  %v238_v53 = vadd.f32 %v4885_v34, %v226_v40  ;;  %v4024_v3 = vcombine.low %v245_v55, %v249_v59  ;;  %v4026_v4 = vcombine.low %v246_v62, %v250_v63 }
 0x165   :  { %820 = vmatpush1.bf16.msra.mxu0 %v4064_v60  ;;  %893 = vmatpush1.bf16.msra.mxu1 %v4066_v61  ;;  %v237_v25 = vadd.f32 %v4885_v34, %v225_v45  ;;  %v309_v34 = vlaneseq }
 0x166   :  { %821 = vmatprep.subr.bf16.mxu0 %v4057_v9  ;;  %894 = vmatprep.subr.bf16.mxu1 %v4059_v44 }
 0x167   :  { %721 = vmatprep.mubr.bf16.mxu0 %v6644_v46  ;;  %794 = vmatprep.mubr.bf16.mxu1 %v6644_v46  ;;  %v242_v29 = vpack.c.bf16 %v238_v53, %v237_v25 }
 0x169   :  { %822 = vmatpush1.bf16.msra.mxu0 %v4056_v18  ;;  %895 = vmatpush1.bf16.msra.mxu1 %v4058_v19 }
 0x16a   :  { %823 = vmatprep.subr.bf16.mxu0 %v4049_v20  ;;  %896 = vmatprep.subr.bf16.mxu1 %v4051_v21 }
 0x16c   :  { %722 = vmatmul.mubr.bf16.gmra.mxu0 %v241_v38  ;;  %795 = vmatmul.mubr.bf16.gmra.mxu1 %v241_v38 }
 0x16d   :  { %824 = vmatpush1.bf16.msra.mxu0 %v4048_v33  ;;  %897 = vmatpush1.bf16.msra.mxu1 %v4050_v28 }
 0x16e   :  { %825 = vmatprep.subr.bf16.mxu0 %v4041_v37  ;;  %898 = vmatprep.subr.bf16.mxu1 %v4043_v39 }
 0x16f   :  { %731 = vmatprep.mubr.bf16.mxu0 %v6644_v46  ;;  %804 = vmatprep.mubr.bf16.mxu1 %v6644_v46 }
 0x171   :  { %826 = vmatpush1.bf16.msra.mxu0 %v4040_v51  ;;  %899 = vmatpush1.bf16.msra.mxu1 %v4042_v47 }
 0x172   :  { %827 = vmatprep.subr.bf16.mxu0 %v4033_v49  ;;  %900 = vmatprep.subr.bf16.mxu1 %v4035_v50 }
 0x174   :  { %732 = vmatmul.mubr.bf16.gmra.mxu0 %v242_v29  ;;  %805 = vmatmul.mubr.bf16.gmra.mxu1 %v242_v29 }
 0x175   :  { %828 = vmatpush1.bf16.msra.mxu0 %v4032_v0  ;;  %901 = vmatpush1.bf16.msra.mxu1 %v4034_v1 }
 0x176   :  { %829 = vmatprep.subr.bf16.mxu0 %v4025_v36  ;;  %902 = vmatprep.subr.bf16.mxu1 %v4027_v2 }
 0x177   :  { %847 = vmatprep.mubr.bf16.mxu0 %v6644_v46  ;;  %920 = vmatprep.mubr.bf16.mxu1 %v6644_v46 }
 0x179   :  { %830 = vmatpush1.bf16.msra.mxu0 %v4024_v3  ;;  %903 = vmatpush1.bf16.msra.mxu1 %v4026_v4 }
 0x17c   :  { %848 = vmatmul.mubr.bf16.vlgmr.msra.gmra.mxu0 %v4892_v48  ;;  %921 = vmatmul.mubr.bf16.vlgmr.msra.gmra.mxu1 %v4892_v48  ;;  %v4940_v48 = vshrl.u32 %v309_v34, 7 }
 0x17d   :  { %857 = vmatprep.mubr.bf16.mxu0 %v6644_v46  ;;  %930 = vmatprep.mubr.bf16.mxu1 %v6644_v46 }
 0x17e   :  { %v311_v5 = vsub.s32 0, %v4940_v48  ;;  %v319_v6 = vsub.s32 2, %v4940_v48  ;;  %v315_v8 = vsub.s32 1, %v4940_v48  ;;  %v323_v54 = vsub.s32 3, %v4940_v48 }
 0x17f   :  { %v327_v34 = vsub.s32 4, %v4940_v48 }
 0x180   :  { %v4952_v56 = vrot.slane %v4947_v7, %v311_v5  ;;  %v4955_v57 = vrot.slane %v4947_v7, %v319_v6  ;;  %v4958_v58 = vrot.slane %v4947_v7, %v315_v8  ;;  %v4961_v60 = vrot.slane %v4947_v7, %v323_v54 }
 0x181   :  { %v335_v5 = vsub.s32 6, %v4940_v48 }
 0x184   :  { %858 = vmatmul.mubr.bf16.gmra.mxu0 %v4910_v10  ;;  %931 = vmatmul.mubr.bf16.gmra.mxu1 %v4910_v10 }
 0x185   :  { %867 = vmatprep.mubr.bf16.mxu0 %v6644_v46  ;;  %940 = vmatprep.mubr.bf16.mxu1 %v6644_v46 }
 0x18c   :  { %868 = vmatmul.mubr.bf16.gmra.mxu0 %v241_v38  ;;  %941 = vmatmul.mubr.bf16.gmra.mxu1 %v241_v38 }
 0x18d   :  { %877 = vmatprep.mubr.bf16.mxu0 %v6644_v46  ;;  %950 = vmatprep.mubr.bf16.mxu1 %v6644_v46 }
 0x194   :  { %878 = vmatmul.mubr.bf16.gmra.mxu0 %v242_v29  ;;  %951 = vmatmul.mubr.bf16.gmra.mxu1 %v242_v29 }
 0x21c   :  { %v703_v61 = vpop.f32.mrf.mxu0  ;;  %v776_v9 = vpop.f32.mrf.mxu1 }
 0x21d   :  { %v4964_v10 = vadd.f32 %v703_v61, %v4952_v56  ;;  %v4967_v44 = vadd.f32 %v776_v9, %v4955_v57  ;;  %v331_v9 = vsub.s32 5, %v4940_v48 }
 0x21e   :  { %v705_v11 = vpop.f32.mrf.mxu0  ;;  %v778_v12 = vpop.f32.mrf.mxu1 }
 0x21f   :  { %6910 = vst [vmem:[#allocation20_spill] sm:$0xff] %v4964_v10  ;;  %6911 = vst [vmem:[#allocation21_spill] sm:$0xff] %v4967_v44  ;;  %v4970_v13 = vadd.f32 %v705_v11, %v4958_v58  ;;  %v4973_v14 = vadd.f32 %v778_v12, %v4961_v60  ;;  %v339_v11 = vsub.s32 7, %v4940_v48 }
 0x220   :  { %v707_v15 = vpop.f32.mrf.mxu0  ;;  %v780_v16 = vpop.f32.mrf.mxu1 }
 0x221   :  { %6912 = vst [vmem:[#allocation22_spill] sm:$0xff] %v4970_v13  ;;  %6913 = vst [vmem:[#allocation23_spill] sm:$0xff] %v4973_v14  ;;  %v4976_v17 = vadd.f32 %v707_v15, %v4952_v56  ;;  %v4979_v43 = vadd.f32 %v780_v16, %v4955_v57 }
 0x222   :  { %v709_v18 = vpop.f32.mrf.mxu0  ;;  %v782_v19 = vpop.f32.mrf.mxu1 }
 0x223   :  { %6914 = vst [vmem:[#allocation24_spill] sm:$0xff] %v4976_v17  ;;  %6915 = vst [vmem:[#allocation25_spill] sm:$0xff] %v4979_v43  ;;  %v4982_v20 = vadd.f32 %v709_v18, %v4958_v58  ;;  %v4985_v21 = vadd.f32 %v782_v19, %v4961_v60  ;;  %v5058_v19 = vrot.slane %v4947_v7, %v327_v34 }
 0x224   :  { %v713_v22 = vpop.f32.mrf.mxu0  ;;  %v786_v23 = vpop.f32.mrf.mxu1 }
 0x225   :  { %6916 = vst [vmem:[#allocation26_spill] sm:$0xff] %v4982_v20  ;;  %6917 = vst [vmem:[#allocation27_spill] sm:$0xff] %v4985_v21  ;;  %v4988_v24 = vadd.f32 %v713_v22, %v4952_v56  ;;  %v4991_v26 = vadd.f32 %v786_v23, %v4955_v57  ;;  %v5061_v22 = vrot.slane %v4947_v7, %v335_v5 }
 0x226   :  { %v715_v27 = vpop.f32.mrf.mxu0  ;;  %v788_v30 = vpop.f32.mrf.mxu1 }
 0x227   :  { %6918 = vst [vmem:[#allocation28_spill] sm:$0xff] %v4988_v24  ;;  %6919 = vst [vmem:[#allocation29_spill] sm:$0xff] %v4991_v26  ;;  %v4994_v31 = vadd.f32 %v715_v27, %v4958_v58  ;;  %v4997_v32 = vadd.f32 %v788_v30, %v4961_v60 }
 0x228   :  { %v717_v33 = vpop.f32.mrf.mxu0  ;;  %v790_v28 = vpop.f32.mrf.mxu1 }
 0x229   :  { %6920 = vst [vmem:[#allocation30_spill] sm:$0xff] %v4994_v31  ;;  %6921 = vst [vmem:[#allocation31_spill] sm:$0xff] %v4997_v32  ;;  %v5000_v37 = vadd.f32 %v717_v33, %v4952_v56  ;;  %v5003_v38 = vadd.f32 %v790_v28, %v4955_v57 }
 0x22a   :  { %v719_v39 = vpop.f32.mrf.mxu0  ;;  %v792_v52 = vpop.f32.mrf.mxu1 }
 0x22b   :  { %6922 = vst [vmem:[#allocation32_spill] sm:$0xff] %v5000_v37  ;;  %6923 = vst [vmem:[#allocation33_spill] sm:$0xff] %v5003_v38  ;;  %v5006_v40 = vadd.f32 %v719_v39, %v4958_v58  ;;  %v5009_v41 = vadd.f32 %v792_v52, %v4961_v60 }
 0x22c   :  { %v723_v42 = vpop.f32.mrf.mxu0  ;;  %v796_v35 = vpop.f32.mrf.mxu1 }
 0x22d   :  { %6924 = vst [vmem:[#allocation34_spill] sm:$0xff] %v5006_v40  ;;  %6925 = vst [vmem:[#allocation35_spill] sm:$0xff] %v5009_v41  ;;  %v5012_v45 = vadd.f32 %v723_v42, %v4952_v56  ;;  %v5015_v51 = vadd.f32 %v796_v35, %v4955_v57 }
 0x22e   :  { %v725_v47 = vpop.f32.mrf.mxu0  ;;  %v798_v49 = vpop.f32.mrf.mxu1 }
 0x22f   :  { %6926 = vst [vmem:[#allocation36_spill] sm:$0xff] %v5012_v45  ;;  %6927 = vst [vmem:[#allocation37_spill] sm:$0xff] %v5015_v51  ;;  %v5018_v50 = vadd.f32 %v725_v47, %v4958_v58  ;;  %v5021_v53 = vadd.f32 %v798_v49, %v4961_v60 }
 0x230   :  { %v727_v55 = vpop.f32.mrf.mxu0  ;;  %v800_v59 = vpop.f32.mrf.mxu1 }
 0x231   :  { %6928 = vst [vmem:[#allocation38_spill] sm:$0xff] %v5018_v50  ;;  %6929 = vst [vmem:[#allocation39_spill] sm:$0xff] %v5021_v53  ;;  %v5024_v62 = vadd.f32 %v727_v55, %v4952_v56  ;;  %v5027_v63 = vadd.f32 %v800_v59, %v4955_v57 }
 0x232   :  { %v729_v25 = vpop.f32.mrf.mxu0  ;;  %v802_v0 = vpop.f32.mrf.mxu1 }
 0x233   :  { %6930 = vst [vmem:[#allocation40_spill] sm:$0xff] %v5024_v62  ;;  %6931 = vst [vmem:[#allocation41_spill] sm:$0xff] %v5027_v63  ;;  %v5030_v1 = vadd.f32 %v729_v25, %v4958_v58  ;;  %v5033_v29 = vadd.f32 %v802_v0, %v4961_v60 }
 0x234   :  { %v733_v36 = vpop.f32.mrf.mxu0  ;;  %v806_v2 = vpop.f32.mrf.mxu1 }
 0x235   :  { %6932 = vst [vmem:[#allocation42_spill] sm:$0xff] %v5030_v1  ;;  %6933 = vst [vmem:[#allocation43_spill] sm:$0xff] %v5033_v29  ;;  %v5036_v3 = vadd.f32 %v733_v36, %v4952_v56  ;;  %v5039_v4 = vadd.f32 %v806_v2, %v4955_v57 }
 0x236   :  { %v735_v6 = vpop.f32.mrf.mxu0  ;;  %v808_v8 = vpop.f32.mrf.mxu1 }
 0x237   :  { %6934 = vst [vmem:[#allocation44_spill] sm:$0xff] %v5036_v3  ;;  %6935 = vst [vmem:[#allocation45_spill] sm:$0xff] %v5039_v4  ;;  %v5044_v54 = vadd.f32 %v735_v6, %v4958_v58  ;;  %v5047_v61 = vadd.f32 %v808_v8, %v4961_v60 }
 0x238   :  { %v737_v12 = vpop.f32.mrf.mxu0  ;;  %v810_v15 = vpop.f32.mrf.mxu1 }
 0x239   :  { %6936 = vst [vmem:[#allocation46_spill] sm:$0xff] %v5044_v54  ;;  %6937 = vst [vmem:[#allocation47_spill] sm:$0xff] %v5047_v61  ;;  %v5052_v16 = vadd.f32 %v737_v12, %v4952_v56  ;;  %v5055_v18 = vadd.f32 %v810_v15, %v4955_v57  ;;  %v5070_v56 = vrot.slane %v4947_v7, %v331_v9 }
 0x23a   :  { %v739_v23 = vpop.f32.mrf.mxu0  ;;  %v812_v27 = vpop.f32.mrf.mxu1  ;;  %v5073_v57 = vrot.slane %v4947_v7, %v339_v11 }
 0x23b   :  { %6938 = vst [vmem:[#allocation48_spill] sm:$0xff] %v5052_v16  ;;  %6939 = vst [vmem:[#allocation49_spill] sm:$0xff] %v5055_v18  ;;  %v5064_v30 = vadd.f32 %v739_v23, %v4958_v58  ;;  %v5067_v48 = vadd.f32 %v812_v27, %v4961_v60 }
 0x23c   :  { %v849_v33 = vpop.f32.mrf.mxu0  ;;  %v922_v28 = vpop.f32.mrf.mxu1 }
 0x23d   :  { %6940 = vst [vmem:[#allocation50_spill] sm:$0xff] %v5064_v30  ;;  %6941 = vst [vmem:[#allocation51_spill] sm:$0xff] %v5067_v48  ;;  %v5076_v39 = vadd.f32 %v849_v33, %v5058_v19  ;;  %v5079_v52 = vadd.f32 %v922_v28, %v5061_v22 }
 0x23e   :  { %v851_v42 = vpop.f32.mrf.mxu0  ;;  %v924_v58 = vpop.f32.mrf.mxu1 }
 0x23f   :  { %6942 = vst [vmem:[#allocation52_spill] sm:$0xff] %v5076_v39  ;;  %6943 = vst [vmem:[#allocation53_spill] sm:$0xff] %v5079_v52  ;;  %v5082_v35 = vadd.f32 %v851_v42, %v5070_v56  ;;  %v5085_v60 = vadd.f32 %v924_v58, %v5073_v57 }
 0x240   :  { %v853_v47 = vpop.f32.mrf.mxu0  ;;  %v926_v49 = vpop.f32.mrf.mxu1 }
 0x241   :  { %6944 = vst [vmem:[#allocation54_spill] sm:$0xff] %v5082_v35  ;;  %6945 = vst [vmem:[#allocation55_spill] sm:$0xff] %v5085_v60  ;;  %v5088_v7 = vadd.f32 %v853_v47, %v5058_v19  ;;  %v5091_v55 = vadd.f32 %v926_v49, %v5061_v22 }
 0x242   :  { %v855_v59 = vpop.f32.mrf.mxu0  ;;  %v928_v25 = vpop.f32.mrf.mxu1 }
 0x243   :  { %6946 = vst [vmem:[#allocation56_spill] sm:$0xff] %v5088_v7  ;;  %6947 = vst [vmem:[#allocation57_spill] sm:$0xff] %v5091_v55  ;;  %v5094_v0 = vadd.f32 %v855_v59, %v5070_v56  ;;  %v5097_v36 = vadd.f32 %v928_v25, %v5073_v57 }
 0x244   :  { %v859_v2 = vpop.f32.mrf.mxu0  ;;  %v932_v34 = vpop.f32.mrf.mxu1 }
 0x245   :  { %6948 = vst [vmem:[#allocation58_spill] sm:$0xff] %v5094_v0  ;;  %6949 = vst [vmem:[#allocation59_spill] sm:$0xff] %v5097_v36  ;;  %v5100_v5 = vadd.f32 %v859_v2, %v5058_v19  ;;  %v5103_v6 = vadd.f32 %v932_v34, %v5061_v22 }
 0x246   :  { %v861_v8 = vpop.f32.mrf.mxu0  ;;  %v934_v9 = vpop.f32.mrf.mxu1 }
 0x247   :  { %6950 = vst [vmem:[#allocation60_spill] sm:$0xff] %v5100_v5  ;;  %6951 = vst [vmem:[#allocation61_spill] sm:$0xff] %v5103_v6  ;;  %v5106_v11 = vadd.f32 %v861_v8, %v5070_v56  ;;  %v5109_v12 = vadd.f32 %v934_v9, %v5073_v57 }
 0x248   :  { %v863_v15 = vpop.f32.mrf.mxu0  ;;  %v936_v23 = vpop.f32.mrf.mxu1 }
 0x249   :  { %6952 = vst [vmem:[#allocation62_spill] sm:$0xff] %v5106_v11  ;;  %6953 = vst [vmem:[#allocation63_spill] sm:$0xff] %v5109_v12  ;;  %v5112_v27 = vadd.f32 %v863_v15, %v5058_v19  ;;  %v5115_v33 = vadd.f32 %v936_v23, %v5061_v22 }
 0x24a   :  { %v865_v28 = vpop.f32.mrf.mxu0  ;;  %v938_v42 = vpop.f32.mrf.mxu1 }
 0x24b   :  { %6954 = vst [vmem:[#allocation64_spill] sm:$0xff] %v5112_v27  ;;  %6955 = vst [vmem:[#allocation65_spill] sm:$0xff] %v5115_v33  ;;  %v5118_v58 = vadd.f32 %v865_v28, %v5070_v56  ;;  %v5121_v47 = vadd.f32 %v938_v42, %v5073_v57 }
 0x24c   :  { %v869_v49 = vpop.f32.mrf.mxu0  ;;  %v942_v59 = vpop.f32.mrf.mxu1 }
 0x24d   :  { %6956 = vst [vmem:[#allocation66_spill] sm:$0xff] %v5118_v58  ;;  %6957 = vst [vmem:[#allocation67_spill] sm:$0xff] %v5121_v47  ;;  %v5124_v25 = vadd.f32 %v869_v49, %v5058_v19  ;;  %v5127_v2 = vadd.f32 %v942_v59, %v5061_v22 }
 0x24e   :  { %v871_v34 = vpop.f32.mrf.mxu0  ;;  %v944_v8 = vpop.f32.mrf.mxu1 }
 0x24f   :  { %6958 = vst [vmem:[#allocation68_spill] sm:$0xff] %v5124_v25  ;;  %6959 = vst [vmem:[#allocation69_spill] sm:$0xff] %v5127_v2  ;;  %v5130_v9 = vadd.f32 %v871_v34, %v5070_v56  ;;  %v5133_v15 = vadd.f32 %v944_v8, %v5073_v57 }
 0x250   :  { %v873_v23 = vpop.f32.mrf.mxu0  ;;  %v946_v28 = vpop.f32.mrf.mxu1 }
 0x251   :  { %6960 = vst [vmem:[#allocation70_spill] sm:$0xff] %v5130_v9  ;;  %6961 = vst [vmem:[#allocation71_spill] sm:$0xff] %v5133_v15  ;;  %v5136_v42 = vadd.f32 %v873_v23, %v5058_v19  ;;  %v5139_v46 = vadd.f32 %v946_v28, %v5061_v22 }
 0x252   :  { %v875_v49 = vpop.f32.mrf.mxu0  ;;  %v948_v48 = vpop.f32.mrf.mxu1 }
 0x253   :  { %6962 = vst [vmem:[#allocation72_spill] sm:$0xff] %v5136_v42  ;;  %6963 = vst [vmem:[#allocation73_spill] sm:$0xff] %v5139_v46  ;;  %v5142_v59 = vadd.f32 %v875_v49, %v5070_v56  ;;  %v5145_v30 = vadd.f32 %v948_v48, %v5073_v57 }
 0x254   :  { %v879_v34 = vpop.f32.mrf.mxu0  ;;  %v952_v18 = vpop.f32.mrf.mxu1 }
 0x255   :  { %6964 = vst [vmem:[#allocation74_spill] sm:$0xff] %v5142_v59  ;;  %6965 = vst [vmem:[#allocation75_spill] sm:$0xff] %v5145_v30  ;;  %v5148_v8 = vadd.f32 %v879_v34, %v5058_v19  ;;  %v5151_v16 = vadd.f32 %v952_v18, %v5061_v22 }
 0x256   :  { %v881_v23 = vpop.f32.mrf.mxu0  ;;  %v954_v61 = vpop.f32.mrf.mxu1 }
 0x257   :  { %6966 = vst [vmem:[#allocation76_spill] sm:$0xff] %v5148_v8  ;;  %6967 = vst [vmem:[#allocation77_spill] sm:$0xff] %v5151_v16  ;;  %v5154_v28 = vadd.f32 %v881_v23, %v5070_v56  ;;  %v5157_v54 = vadd.f32 %v954_v61, %v5073_v57 }
 0x258   :  { %v883_v49 = vpop.f32.mrf.mxu0  ;;  %v956_v4 = vpop.f32.mrf.mxu1 }
 0x259   :  { %6968 = vst [vmem:[#allocation78_spill] sm:$0xff] %v5154_v28  ;;  %6969 = vst [vmem:[#allocation79_spill] sm:$0xff] %v5157_v54  ;;  %v5160_v48 = vadd.f32 %v883_v49, %v5058_v19  ;;  %v5163_v3 = vadd.f32 %v956_v4, %v5061_v22 }
 0x25a   :  { %v885_v34 = vpop.f32.mrf.mxu0  ;;  %v958_v8 = vpop.f32.mrf.mxu1 }
 0x25b   :  { %6970 = vst [vmem:[#allocation80_spill] sm:$0xff] %v5160_v48  ;;  %6971 = vst [vmem:[#allocation81_spill] sm:$0xff] %v5163_v3  ;;  %v5166_v18 = vadd.f32 %v885_v34, %v5070_v56  ;;  %v5169_v16 = vadd.f32 %v958_v8, %v5073_v57 }
 0x25d   :  { %6972 = vst [vmem:[#allocation82_spill] sm:$0xff] %v5166_v18  ;;  %6973 = vst [vmem:[#allocation83_spill] sm:$0xff] %v5169_v16 }
 0x25e   :  { %4713 = dma.done.wait [#allocation6], 16384 }
 0x25f   :  { %4714 = vsyncadd [#allocation6], 4294950912  ;;  %v6974_v61 = vmov 0   ;;  %v1085_v23 = vld [vmem:[#allocation3 + $0x1c0] sm:$0xff]  ;;  %v1086_v49 = vld [vmem:[#allocation3 + $0x1c8] sm:$0xff] }
 0x260   :  { %1840 = vmatprep.mubr.bf16.mxu0 %v6974_v61  ;;  %1881 = vmatprep.mubr.bf16.mxu1 %v6974_v61  ;;  %v1089_v19 = vld [vmem:[#allocation3 + $0x1e0] sm:$0xff]  ;;  %v1090_v4 = vld [vmem:[#allocation3 + $0x1e8] sm:$0xff] }
 0x261   :  { %v5173_v48 = vcombine.high %v1085_v23, %v1089_v19  ;;  %v5175_v22 = vcombine.low %v1085_v23, %v1089_v19  ;;  %v1077_v3 = vld [vmem:[#allocation3 + $0x180] sm:$0xff]  ;;  %v5177_v34 = vcombine.high %v1086_v49, %v1090_v4  ;;  %v5179_v57 = vcombine.low %v1086_v49, %v1090_v4  ;;  %v1078_v16 = vld [vmem:[#allocation3 + $0x188] sm:$0xff] }
 0x262   :  { %v1081_v56 = vld [vmem:[#allocation3 + $0x1a0] sm:$0xff]  ;;  %v1082_v18 = vld [vmem:[#allocation3 + $0x1a8] sm:$0xff] }
 0x263   :  { %6975 = vst [vmem:[#allocation84_spill] sm:$0xff] %v5173_v48  ;;  %6976 = vst [vmem:[#allocation85_spill] sm:$0xff] %v5175_v22  ;;  %v5181_v8 = vcombine.high %v1077_v3, %v1081_v56  ;;  %v1069_v54 = vld [vmem:[#allocation3 + $0x140] sm:$0xff]  ;;  %1808 = vmatprep.subr.bf16.mxu0 %v5173_v48  ;;  %v5184_v28 = vcombine.high %v1078_v16, %v1082_v18  ;;  %v1070_v59 = vld [vmem:[#allocation3 + $0x148] sm:$0xff]  ;;  %1849 = vmatprep.subr.bf16.mxu1 %v5177_v34 }
 0x264   :  { %6977 = vst [vmem:[#allocation86_spill] sm:$0xff] %v5177_v34  ;;  %6978 = vst [vmem:[#allocation87_spill] sm:$0xff] %v5179_v57  ;;  %v1073_v30 = vld [vmem:[#allocation3 + $0x160] sm:$0xff]  ;;  %v1074_v46 = vld [vmem:[#allocation3 + $0x168] sm:$0xff]  ;;  %1809 = vmatpush1.bf16.msra.mxu0 %v5175_v22  ;;  %v5188_v23 = vcombine.low %v1077_v3, %v1081_v56  ;;  %1850 = vmatpush1.bf16.msra.mxu1 %v5179_v57  ;;  %v5192_v19 = vcombine.low %v1078_v16, %v1082_v18 }
 0x265   :  { %6979 = vst [vmem:[#allocation88_spill] sm:$0xff] %v5181_v8  ;;  %6980 = vst [vmem:[#allocation89_spill] sm:$0xff] %v5184_v28  ;;  %1810 = vmatprep.subr.bf16.mxu0 %v5181_v8  ;;  %v5194_v49 = vcombine.high %v1069_v54, %v1073_v30  ;;  %1851 = vmatprep.subr.bf16.mxu1 %v5184_v28  ;;  %v5197_v4 = vcombine.high %v1070_v59, %v1074_v46  ;;  %v1061_v42 = vld [vmem:[#allocation3 + $0x100] sm:$0xff]  ;;  %v1062_v1 = vld [vmem:[#allocation3 + $0x108] sm:$0xff] }
 0x266   :  { %6981 = vst [vmem:[#allocation90_spill] sm:$0xff] %v5188_v23  ;;  %6982 = vst [vmem:[#allocation91_spill] sm:$0xff] %v5192_v19  ;;  %v1065_v29 = vld [vmem:[#allocation3 + $0x120] sm:$0xff]  ;;  %v1066_v63 = vld [vmem:[#allocation3 + $0x128] sm:$0xff]  ;;  %v5200_v3 = vcombine.low %v1069_v54, %v1073_v30  ;;  %v5204_v16 = vcombine.low %v1070_v59, %v1074_v46 }
 0x267   :  { %6983 = vst [vmem:[#allocation92_spill] sm:$0xff] %v5194_v49  ;;  %6984 = vst [vmem:[#allocation93_spill] sm:$0xff] %v5197_v4  ;;  %v5206_v18 = vcombine.high %v1061_v42, %v1065_v29  ;;  %v5209_v56 = vcombine.high %v1062_v1, %v1066_v63  ;;  %v1053_v62 = vld [vmem:[#allocation3 + $0xc0] sm:$0xff]  ;;  %v1054_v9 = vld [vmem:[#allocation3 + $0xc8] sm:$0xff]  ;;  %v5212_v54 = vcombine.low %v1061_v42, %v1065_v29 }
 0x268   :  { %1811 = vmatpush1.bf16.msra.mxu0 %v5188_v23  ;;  %6985 = vst [vmem:[#allocation94_spill] sm:$0xff] %v5200_v3  ;;  %1852 = vmatpush1.bf16.msra.mxu1 %v5192_v19  ;;  %6986 = vst [vmem:[#allocation95_spill] sm:$0xff] %v5204_v16  ;;  %v1057_v15 = vld [vmem:[#allocation3 + $0xe0] sm:$0xff]  ;;  %v1058_v2 = vld [vmem:[#allocation3 + $0xe8] sm:$0xff]  ;;  %v5216_v46 = vcombine.low %v1062_v1, %v1066_v63 }
 0x269   :  { %1812 = vmatprep.subr.bf16.mxu0 %v5194_v49  ;;  %6987 = vst [vmem:[#allocation96_spill] sm:$0xff] %v5206_v18  ;;  %1853 = vmatprep.subr.bf16.mxu1 %v5197_v4  ;;  %6988 = vst [vmem:[#allocation97_spill] sm:$0xff] %v5209_v56  ;;  %v5218_v30 = vcombine.high %v1053_v62, %v1057_v15  ;;  %v5221_v59 = vcombine.high %v1054_v9, %v1058_v2  ;;  %v1045_v25 = vld [vmem:[#allocation3 + $0x80] sm:$0xff]  ;;  %v1046_v50 = vld [vmem:[#allocation3 + $0x88] sm:$0xff] }
 0x26a   :  { %6989 = vst [vmem:[#allocation98_spill] sm:$0xff] %v5212_v54  ;;  %6990 = vst [vmem:[#allocation99_spill] sm:$0xff] %v5216_v46  ;;  %v1049_v53 = vld [vmem:[#allocation3 + $0xa0] sm:$0xff]  ;;  %v1050_v51 = vld [vmem:[#allocation3 + $0xa8] sm:$0xff]  ;;  %v5224_v29 = vcombine.low %v1053_v62, %v1057_v15  ;;  %v5228_v63 = vcombine.low %v1054_v9, %v1058_v2 }
 0x26b   :  { %6991 = vst [vmem:[#allocation100_spill] sm:$0xff] %v5218_v30  ;;  %6992 = vst [vmem:[#allocation101_spill] sm:$0xff] %v5221_v59  ;;  %v5230_v1 = vcombine.high %v1045_v25, %v1049_v53  ;;  %v5233_v42 = vcombine.high %v1046_v50, %v1050_v51  ;;  %v1037_v45 = vld [vmem:[#allocation3 + $0x40] sm:$0xff]  ;;  %v1038_v58 = vld [vmem:[#allocation3 + $0x48] sm:$0xff]  ;;  %v5236_v62 = vcombine.low %v1045_v25, %v1049_v53 }
 0x26c   :  { %1813 = vmatpush1.bf16.msra.mxu0 %v5200_v3  ;;  %1854 = vmatpush1.bf16.msra.mxu1 %v5204_v16  ;;  %6993 = vst [vmem:[#allocation102_spill] sm:$0xff] %v5224_v29  ;;  %6994 = vst [vmem:[#allocation103_spill] sm:$0xff] %v5228_v63  ;;  %v1041_v47 = vld [vmem:[#allocation3 + $0x60] sm:$0xff]  ;;  %v1042_v33 = vld [vmem:[#allocation3 + $0x68] sm:$0xff]  ;;  %v5240_v2 = vcombine.low %v1046_v50, %v1050_v51 }
 0x26d   :  { %1814 = vmatprep.subr.bf16.mxu0 %v5206_v18  ;;  %1855 = vmatprep.subr.bf16.mxu1 %v5209_v56  ;;  %6995 = vst [vmem:[#allocation104_spill] sm:$0xff] %v5230_v1  ;;  %6996 = vst [vmem:[#allocation105_spill] sm:$0xff] %v5233_v42  ;;  %v5242_v9 = vcombine.high %v1037_v45, %v1041_v47  ;;  %v5245_v15 = vcombine.high %v1038_v58, %v1042_v33  ;;  %v1029_v27 = vld [vmem:[#allocation3] sm:$0xff]  ;;  %v1030_v40 = vld [vmem:[#allocation3 + $0x8] sm:$0xff] }
 0x26e   :  { %6997 = vst [vmem:[#allocation106_spill] sm:$0xff] %v5236_v62  ;;  %6998 = vst [vmem:[#allocation107_spill] sm:$0xff] %v5240_v2  ;;  %v1033_v41 = vld [vmem:[#allocation3 + $0x20] sm:$0xff]  ;;  %v1034_v38 = vld [vmem:[#allocation3 + $0x28] sm:$0xff]  ;;  %v5248_v53 = vcombine.low %v1037_v45, %v1041_v47  ;;  %v5252_v51 = vcombine.low %v1038_v58, %v1042_v33 }
 0x26f   :  { %6999 = vst [vmem:[#allocation108_spill] sm:$0xff] %v5242_v9  ;;  %7000 = vst [vmem:[#allocation109_spill] sm:$0xff] %v5245_v15  ;;  %v5254_v50 = vcombine.high %v1029_v27, %v1033_v41  ;;  %v5257_v25 = vcombine.high %v1030_v40, %v1034_v38  ;;  %v1149_v37 = vld [vmem:[#allocation3 + $0x3c0] sm:$0xff]  ;;  %v1150_v11 = vld [vmem:[#allocation3 + $0x3c8] sm:$0xff]  ;;  %v5260_v45 = vcombine.low %v1029_v27, %v1033_v41 }
 0x270   :  { %1815 = vmatpush1.bf16.msra.mxu0 %v5212_v54  ;;  %1856 = vmatpush1.bf16.msra.mxu1 %v5216_v46  ;;  %7001 = vst [vmem:[#allocation110_spill] sm:$0xff] %v5248_v53  ;;  %7002 = vst [vmem:[#allocation111_spill] sm:$0xff] %v5252_v51  ;;  %v1153_v12 = vld [vmem:[#allocation3 + $0x3e0] sm:$0xff]  ;;  %v1154_v6 = vld [vmem:[#allocation3 + $0x3e8] sm:$0xff]  ;;  %v5264_v33 = vcombine.low %v1030_v40, %v1034_v38 }
 0x271   :  { %1816 = vmatprep.subr.bf16.mxu0 %v5218_v30  ;;  %1857 = vmatprep.subr.bf16.mxu1 %v5221_v59  ;;  %7003 = vst [vmem:[#allocation112_spill] sm:$0xff] %v5254_v50  ;;  %7004 = vst [vmem:[#allocation113_spill] sm:$0xff] %v5257_v25  ;;  %v5266_v58 = vcombine.high %v1149_v37, %v1153_v12  ;;  %v5269_v47 = vcombine.high %v1150_v11, %v1154_v6  ;;  %v1141_v5 = vld [vmem:[#allocation3 + $0x380] sm:$0xff]  ;;  %v1142_v31 = vld [vmem:[#allocation3 + $0x388] sm:$0xff] }
 0x272   :  { %7005 = vst [vmem:[#allocation114_spill] sm:$0xff] %v5260_v45  ;;  %7006 = vst [vmem:[#allocation115_spill] sm:$0xff] %v5264_v33  ;;  %v1145_v32 = vld [vmem:[#allocation3 + $0x3a0] sm:$0xff]  ;;  %v1146_v26 = vld [vmem:[#allocation3 + $0x3a8] sm:$0xff]  ;;  %v5272_v41 = vcombine.low %v1149_v37, %v1153_v12  ;;  %v5276_v38 = vcombine.low %v1150_v11, %v1154_v6 }
 0x273   :  { %7007 = vst [vmem:[#allocation116_spill] sm:$0xff] %v5266_v58  ;;  %7008 = vst [vmem:[#allocation117_spill] sm:$0xff] %v5269_v47  ;;  %v5278_v40 = vcombine.high %v1141_v5, %v1145_v32  ;;  %v5281_v27 = vcombine.high %v1142_v31, %v1146_v26  ;;  %v1133_v24 = vld [vmem:[#allocation3 + $0x340] sm:$0xff]  ;;  %v1134_v0 = vld [vmem:[#allocation3 + $0x348] sm:$0xff]  ;;  %v5284_v37 = vcombine.low %v1141_v5, %v1145_v32 }
 0x274   :  { %1817 = vmatpush1.bf16.msra.mxu0 %v5224_v29  ;;  %1858 = vmatpush1.bf16.msra.mxu1 %v5228_v63  ;;  %7009 = vst [vmem:[#allocation118_spill] sm:$0xff] %v5272_v41  ;;  %7010 = vst [vmem:[#allocation119_spill] sm:$0xff] %v5276_v38  ;;  %v1137_v36 = vld [vmem:[#allocation3 + $0x360] sm:$0xff]  ;;  %v1138_v55 = vld [vmem:[#allocation3 + $0x368] sm:$0xff]  ;;  %v5288_v6 = vcombine.low %v1142_v31, %v1146_v26 }
 0x275   :  { %1818 = vmatprep.subr.bf16.mxu0 %v5230_v1  ;;  %1859 = vmatprep.subr.bf16.mxu1 %v5233_v42  ;;  %7011 = vst [vmem:[#allocation120_spill] sm:$0xff] %v5278_v40  ;;  %7012 = vst [vmem:[#allocation121_spill] sm:$0xff] %v5281_v27  ;;  %v5290_v11 = vcombine.high %v1133_v24, %v1137_v36  ;;  %v5293_v12 = vcombine.high %v1134_v0, %v1138_v55  ;;  %v1125_v7 = vld [vmem:[#allocation3 + $0x300] sm:$0xff]  ;;  %v1126_v20 = vld [vmem:[#allocation3 + $0x308] sm:$0xff] }
 0x276   :  { %7013 = vst [vmem:[#allocation122_spill] sm:$0xff] %v5284_v37  ;;  %7014 = vst [vmem:[#allocation123_spill] sm:$0xff] %v5288_v6  ;;  %v1129_v21 = vld [vmem:[#allocation3 + $0x320] sm:$0xff]  ;;  %v1130_v43 = vld [vmem:[#allocation3 + $0x328] sm:$0xff]  ;;  %v5296_v32 = vcombine.low %v1133_v24, %v1137_v36  ;;  %v5300_v26 = vcombine.low %v1134_v0, %v1138_v55 }
 0x277   :  { %7015 = vst [vmem:[#allocation124_spill] sm:$0xff] %v5290_v11  ;;  %7016 = vst [vmem:[#allocation125_spill] sm:$0xff] %v5293_v12  ;;  %v5302_v31 = vcombine.high %v1125_v7, %v1129_v21  ;;  %v5305_v5 = vcombine.high %v1126_v20, %v1130_v43  ;;  %v1117_v17 = vld [vmem:[#allocation3 + $0x2c0] sm:$0xff]  ;;  %v1118_v35 = vld [vmem:[#allocation3 + $0x2c8] sm:$0xff]  ;;  %v5308_v24 = vcombine.low %v1125_v7, %v1129_v21 }
 0x278   :  { %1819 = vmatpush1.bf16.msra.mxu0 %v5236_v62  ;;  %1860 = vmatpush1.bf16.msra.mxu1 %v5240_v2  ;;  %7017 = vst [vmem:[#allocation126_spill] sm:$0xff] %v5296_v32  ;;  %7018 = vst [vmem:[#allocation127_spill] sm:$0xff] %v5300_v26  ;;  %v1121_v60 = vld [vmem:[#allocation3 + $0x2e0] sm:$0xff]  ;;  %v1122_v52 = vld [vmem:[#allocation3 + $0x2e8] sm:$0xff]  ;;  %v5312_v55 = vcombine.low %v1126_v20, %v1130_v43 }
 0x279   :  { %1820 = vmatprep.subr.bf16.mxu0 %v5242_v9  ;;  %1861 = vmatprep.subr.bf16.mxu1 %v5245_v15  ;;  %7019 = vst [vmem:[#allocation128_spill] sm:$0xff] %v5302_v31  ;;  %7020 = vst [vmem:[#allocation129_spill] sm:$0xff] %v5305_v5  ;;  %v5314_v0 = vcombine.high %v1117_v17, %v1121_v60  ;;  %v5317_v36 = vcombine.high %v1118_v35, %v1122_v52  ;;  %v1109_v39 = vld [vmem:[#allocation3 + $0x280] sm:$0xff]  ;;  %v1110_v14 = vld [vmem:[#allocation3 + $0x288] sm:$0xff] }
 0x27a   :  { %7021 = vst [vmem:[#allocation130_spill] sm:$0xff] %v5308_v24  ;;  %7022 = vst [vmem:[#allocation131_spill] sm:$0xff] %v5312_v55  ;;  %v1113_v13 = vld [vmem:[#allocation3 + $0x2a0] sm:$0xff]  ;;  %v1114_v44 = vld [vmem:[#allocation3 + $0x2a8] sm:$0xff]  ;;  %v5320_v21 = vcombine.low %v1117_v17, %v1121_v60  ;;  %v5324_v43 = vcombine.low %v1118_v35, %v1122_v52 }
 0x27b   :  { %7023 = vst [vmem:[#allocation132_spill] sm:$0xff] %v5314_v0  ;;  %7024 = vst [vmem:[#allocation133_spill] sm:$0xff] %v5317_v36  ;;  %v5326_v20 = vcombine.high %v1109_v39, %v1113_v13  ;;  %v5329_v7 = vcombine.high %v1110_v14, %v1114_v44  ;;  %v1101_v10 = vld [vmem:[#allocation3 + $0x240] sm:$0xff]  ;;  %v5332_v17 = vcombine.low %v1109_v39, %v1113_v13 }
 0x27c   :  { %1821 = vmatpush1.bf16.msra.mxu0 %v5248_v53  ;;  %1862 = vmatpush1.bf16.msra.mxu1 %v5252_v51  ;;  %7025 = vst [vmem:[#allocation134_spill] sm:$0xff] %v5320_v21  ;;  %7026 = vst [vmem:[#allocation135_spill] sm:$0xff] %v5324_v43  ;;  %v5336_v52 = vcombine.low %v1110_v14, %v1114_v44 }
 0x27d   :  { %1822 = vmatprep.subr.bf16.mxu0 %v5254_v50  ;;  %1863 = vmatprep.subr.bf16.mxu1 %v5257_v25  ;;  %7027 = vst [vmem:[#allocation136_spill] sm:$0xff] %v5326_v20  ;;  %7028 = vst [vmem:[#allocation137_spill] sm:$0xff] %v5329_v7 }
 0x27e   :  { %7029 = vst [vmem:[#allocation138_spill] sm:$0xff] %v5332_v17  ;;  %7030 = vst [vmem:[#allocation139_spill] sm:$0xff] %v5336_v52 }
 0x280   :  { %1823 = vmatpush1.bf16.msra.mxu0 %v5260_v45  ;;  %1864 = vmatpush1.bf16.msra.mxu1 %v5264_v33 }
 0x281   :  { %1824 = vmatprep.subr.bf16.mxu0 %v5266_v58  ;;  %1865 = vmatprep.subr.bf16.mxu1 %v5269_v47 }
 0x284   :  { %1825 = vmatpush2.bf16.msra.mxu0 %v5272_v41  ;;  %1866 = vmatpush2.bf16.msra.mxu1 %v5276_v38 }
 0x285   :  { %1826 = vmatprep.subr.bf16.mxu0 %v5278_v40  ;;  %1867 = vmatprep.subr.bf16.mxu1 %v5281_v27 }
 0x288   :  { %1827 = vmatpush2.bf16.msra.mxu0 %v5284_v37  ;;  %1868 = vmatpush2.bf16.msra.mxu1 %v5288_v6 }
 0x289   :  { %1828 = vmatprep.subr.bf16.mxu0 %v5290_v11  ;;  %1869 = vmatprep.subr.bf16.mxu1 %v5293_v12 }
 0x28c   :  { %1829 = vmatpush2.bf16.msra.mxu0 %v5296_v32  ;;  %1870 = vmatpush2.bf16.msra.mxu1 %v5300_v26  ;;  %v1106_v26 = vld [vmem:[#allocation3 + $0x268] sm:$0xff] }
 0x28d   :  { %1830 = vmatprep.subr.bf16.mxu0 %v5302_v31  ;;  %1871 = vmatprep.subr.bf16.mxu1 %v5305_v5  ;;  %v1105_v5 = vld [vmem:[#allocation3 + $0x260] sm:$0xff]  ;;  %v1102_v31 = vld [vmem:[#allocation3 + $0x248] sm:$0xff] }
 0x28e   :  { %v5338_v35 = vcombine.high %v1101_v10, %v1105_v5  ;;  %v5341_v60 = vcombine.high %v1102_v31, %v1106_v26  ;;  %v5344_v13 = vcombine.low %v1101_v10, %v1105_v5  ;;  %v5348_v44 = vcombine.low %v1102_v31, %v1106_v26 }
 0x290   :  { %1831 = vmatpush2.bf16.msra.mxu0 %v5308_v24  ;;  %1872 = vmatpush2.bf16.msra.mxu1 %v5312_v55  ;;  %7031 = vst [vmem:[#allocation140_spill] sm:$0xff] %v5338_v35  ;;  %7032 = vst [vmem:[#allocation141_spill] sm:$0xff] %v5341_v60  ;;  %v1094_v55 = vld [vmem:[#allocation3 + $0x208] sm:$0xff] }
 0x291   :  { %1832 = vmatprep.subr.bf16.mxu0 %v5314_v0  ;;  %1873 = vmatprep.subr.bf16.mxu1 %v5317_v36  ;;  %v1093_v36 = vld [vmem:[#allocation3 + $0x200] sm:$0xff]  ;;  %v1098_v24 = vld [vmem:[#allocation3 + $0x228] sm:$0xff]  ;;  %7033 = vst [vmem:[#allocation142_spill] sm:$0xff] %v5344_v13  ;;  %7034 = vst [vmem:[#allocation143_spill] sm:$0xff] %v5348_v44 }
 0x292   :  { %v1097_v0 = vld [vmem:[#allocation3 + $0x220] sm:$0xff]  ;;  %v5353_v39 = vcombine.high %v1094_v55, %v1098_v24  ;;  %v5360_v26 = vcombine.low %v1094_v55, %v1098_v24 }
 0x293   :  { %v5350_v14 = vcombine.high %v1093_v36, %v1097_v0  ;;  %v5356_v10 = vcombine.low %v1093_v36, %v1097_v0 }
 0x294   :  { %1833 = vmatpush2.bf16.msra.mxu0 %v5320_v21  ;;  %1874 = vmatpush2.bf16.msra.mxu1 %v5324_v43  ;;  %7036 = vst [vmem:[#allocation145_spill] sm:$0xff] %v5353_v39  ;;  %v1088_v43 = vld [vmem:[#allocation3 + $0x1d8] sm:$0xff]  ;;  %7038 = vst [vmem:[#allocation147_spill] sm:$0xff] %v5360_v26 }
 0x295   :  { %1834 = vmatprep.subr.bf16.mxu0 %v5326_v20  ;;  %1875 = vmatprep.subr.bf16.mxu1 %v5329_v7  ;;  %7035 = vst [vmem:[#allocation144_spill] sm:$0xff] %v5350_v14  ;;  %v1087_v7 = vld [vmem:[#allocation3 + $0x1d0] sm:$0xff]  ;;  %v1092_v21 = vld [vmem:[#allocation3 + $0x1f8] sm:$0xff]  ;;  %7037 = vst [vmem:[#allocation146_spill] sm:$0xff] %v5356_v10 }
 0x296   :  { %v1091_v20 = vld [vmem:[#allocation3 + $0x1f0] sm:$0xff]  ;;  %v5365_v5 = vcombine.high %v1088_v43, %v1092_v21  ;;  %v5372_v24 = vcombine.low %v1088_v43, %v1092_v21 }
 0x297   :  { %v5362_v31 = vcombine.high %v1087_v7, %v1091_v20  ;;  %v5368_v0 = vcombine.low %v1087_v7, %v1091_v20 }
 0x298   :  { %1835 = vmatpush2.bf16.msra.mxu0 %v5332_v17  ;;  %1876 = vmatpush2.bf16.msra.mxu1 %v5336_v52  ;;  %7040 = vst [vmem:[#allocation149_spill] sm:$0xff] %v5365_v5  ;;  %v1080_v52 = vld [vmem:[#allocation3 + $0x198] sm:$0xff]  ;;  %7042 = vst [vmem:[#allocation151_spill] sm:$0xff] %v5372_v24 }
 0x299   :  { %1836 = vmatprep.subr.bf16.mxu0 %v5338_v35  ;;  %1877 = vmatprep.subr.bf16.mxu1 %v5341_v60  ;;  %7039 = vst [vmem:[#allocation148_spill] sm:$0xff] %v5362_v31  ;;  %v1079_v60 = vld [vmem:[#allocation3 + $0x190] sm:$0xff]  ;;  %v1084_v17 = vld [vmem:[#allocation3 + $0x1b8] sm:$0xff]  ;;  %7041 = vst [vmem:[#allocation150_spill] sm:$0xff] %v5368_v0 }
 0x29a   :  { %v1083_v35 = vld [vmem:[#allocation3 + $0x1b0] sm:$0xff]  ;;  %v5377_v36 = vcombine.high %v1080_v52, %v1084_v17  ;;  %v5386_v21 = vcombine.low %v1080_v52, %v1084_v17 }
 0x29b   :  { %v5374_v55 = vcombine.high %v1079_v60, %v1083_v35  ;;  %v5382_v20 = vcombine.low %v1079_v60, %v1083_v35 }
 0x29c   :  { %1837 = vmatpush2.bf16.msra.mxu0 %v5344_v13  ;;  %1878 = vmatpush2.bf16.msra.mxu1 %v5348_v44  ;;  %7044 = vst [vmem:[#allocation153_spill] sm:$0xff] %v5377_v36  ;;  %v1072_v44 = vld [vmem:[#allocation3 + $0x158] sm:$0xff]  ;;  %7046 = vst [vmem:[#allocation155_spill] sm:$0xff] %v5386_v21 }
 0x29d   :  { %1838 = vmatprep.subr.bf16.mxu0 %v5350_v14  ;;  %1879 = vmatprep.subr.bf16.mxu1 %v5353_v39  ;;  %7043 = vst [vmem:[#allocation152_spill] sm:$0xff] %v5374_v55  ;;  %v1071_v39 = vld [vmem:[#allocation3 + $0x150] sm:$0xff]  ;;  %7045 = vst [vmem:[#allocation154_spill] sm:$0xff] %v5382_v20  ;;  %v1060_v13 = vld [vmem:[#allocation3 + $0xf8] sm:$0xff] }
 0x29e   :  { %v1075_v14 = vld [vmem:[#allocation3 + $0x170] sm:$0xff] }
 0x29f   :  { %v5388_v43 = vcombine.high %v1071_v39, %v1075_v14  ;;  %v5396_v35 = vcombine.low %v1071_v39, %v1075_v14 }
 0x2a0   :  { %1839 = vmatpush2.bf16.msra.mxu0 %v5356_v10  ;;  %1880 = vmatpush2.bf16.msra.mxu1 %v5360_v26  ;;  %v1076_v10 = vld [vmem:[#allocation3 + $0x178] sm:$0xff] }
 0x2a1   :  { %1890 = vmatprep.subr.bf16.mxu0 %v5362_v31  ;;  %1931 = vmatprep.subr.bf16.mxu1 %v5365_v5  ;;  %7047 = vst [vmem:[#allocation156_spill] sm:$0xff] %v5388_v43  ;;  %v5391_v7 = vcombine.high %v1072_v44, %v1076_v10  ;;  %v1063_v5 = vld [vmem:[#allocation3 + $0x110] sm:$0xff]  ;;  %v1064_v26 = vld [vmem:[#allocation3 + $0x118] sm:$0xff]  ;;  %7049 = vst [vmem:[#allocation158_spill] sm:$0xff] %v5396_v35  ;;  %v5400_v17 = vcombine.low %v1072_v44, %v1076_v10 }
 0x2a2   :  { %v1067_v31 = vld [vmem:[#allocation3 + $0x130] sm:$0xff] }
 0x2a3   :  { %1841 = vmatmul.mubr.bf16.vlgmr.msra.gmra.mxu0 %v6974_v61  ;;  %1882 = vmatmul.mubr.bf16.vlgmr.msra.gmra.mxu1 %v6974_v61  ;;  %7048 = vst [vmem:[#allocation157_spill] sm:$0xff] %v5391_v7  ;;  %7050 = vst [vmem:[#allocation159_spill] sm:$0xff] %v5400_v17  ;;  %v5402_v52 = vcombine.high %v1063_v5, %v1067_v31  ;;  %v5408_v14 = vcombine.low %v1063_v5, %v1067_v31 }
 0x2a4   :  { %1891 = vmatpush1.bf16.msra.mxu0 %v5368_v0  ;;  %1932 = vmatpush1.bf16.msra.mxu1 %v5372_v24  ;;  %v1068_v0 = vld [vmem:[#allocation3 + $0x138] sm:$0xff] }
 0x2a5   :  { %1892 = vmatprep.subr.bf16.mxu0 %v5374_v55  ;;  %1933 = vmatprep.subr.bf16.mxu1 %v5377_v36  ;;  %7051 = vst [vmem:[#allocation160_spill] sm:$0xff] %v5402_v52  ;;  %v5405_v60 = vcombine.high %v1064_v26, %v1068_v0  ;;  %v1055_v36 = vld [vmem:[#allocation3 + $0xd0] sm:$0xff]  ;;  %v1056_v24 = vld [vmem:[#allocation3 + $0xd8] sm:$0xff]  ;;  %7053 = vst [vmem:[#allocation162_spill] sm:$0xff] %v5408_v14  ;;  %v5412_v44 = vcombine.low %v1064_v26, %v1068_v0 }
 0x2a6   :  { %1922 = vmatprep.mubr.bf16.mxu0 %v6974_v61  ;;  %1963 = vmatprep.mubr.bf16.mxu1 %v6974_v61  ;;  %v1059_v55 = vld [vmem:[#allocation3 + $0xf0] sm:$0xff]  ;;  %v5417_v10 = vcombine.high %v1056_v24, %v1060_v13  ;;  %v5424_v26 = vcombine.low %v1056_v24, %v1060_v13 }
 0x2a7   :  { %7052 = vst [vmem:[#allocation161_spill] sm:$0xff] %v5405_v60  ;;  %7054 = vst [vmem:[#allocation163_spill] sm:$0xff] %v5412_v44  ;;  %v5414_v39 = vcombine.high %v1055_v36, %v1059_v55  ;;  %v5420_v31 = vcombine.low %v1055_v36, %v1059_v55 }
 0x2a8   :  { %1893 = vmatpush1.bf16.msra.mxu0 %v5382_v20  ;;  %1934 = vmatpush1.bf16.msra.mxu1 %v5386_v21  ;;  %7056 = vst [vmem:[#allocation165_spill] sm:$0xff] %v5417_v10  ;;  %v1048_v21 = vld [vmem:[#allocation3 + $0x98] sm:$0xff]  ;;  %7058 = vst [vmem:[#allocation167_spill] sm:$0xff] %v5424_v26 }
 0x2a9   :  { %1894 = vmatprep.subr.bf16.mxu0 %v5388_v43  ;;  %1935 = vmatprep.subr.bf16.mxu1 %v5391_v7  ;;  %7055 = vst [vmem:[#allocation164_spill] sm:$0xff] %v5414_v39  ;;  %v1047_v7 = vld [vmem:[#allocation3 + $0x90] sm:$0xff]  ;;  %v1052_v20 = vld [vmem:[#allocation3 + $0xb8] sm:$0xff]  ;;  %7057 = vst [vmem:[#allocation166_spill] sm:$0xff] %v5420_v31 }
 0x2aa   :  { %v1051_v43 = vld [vmem:[#allocation3 + $0xb0] sm:$0xff]  ;;  %v5429_v0 = vcombine.high %v1048_v21, %v1052_v20  ;;  %v5436_v13 = vcombine.low %v1048_v21, %v1052_v20 }
 0x2ab   :  { %v5426_v5 = vcombine.high %v1047_v7, %v1051_v43  ;;  %v5432_v55 = vcombine.low %v1047_v7, %v1051_v43 }
 0x2ac   :  { %1895 = vmatpush1.bf16.msra.mxu0 %v5396_v35  ;;  %1936 = vmatpush1.bf16.msra.mxu1 %v5400_v17  ;;  %7060 = vst [vmem:[#allocation169_spill] sm:$0xff] %v5429_v0  ;;  %v1040_v17 = vld [vmem:[#allocation3 + $0x58] sm:$0xff]  ;;  %7062 = vst [vmem:[#allocation171_spill] sm:$0xff] %v5436_v13 }
 0x2ad   :  { %1896 = vmatprep.subr.bf16.mxu0 %v5402_v52  ;;  %1937 = vmatprep.subr.bf16.mxu1 %v5405_v60  ;;  %7059 = vst [vmem:[#allocation168_spill] sm:$0xff] %v5426_v5  ;;  %v1039_v60 = vld [vmem:[#allocation3 + $0x50] sm:$0xff]  ;;  %v1044_v35 = vld [vmem:[#allocation3 + $0x78] sm:$0xff]  ;;  %7061 = vst [vmem:[#allocation170_spill] sm:$0xff] %v5432_v55 }
 0x2ae   :  { %v1043_v52 = vld [vmem:[#allocation3 + $0x70] sm:$0xff]  ;;  %v5441_v36 = vcombine.high %v1040_v17, %v1044_v35  ;;  %v5448_v20 = vcombine.low %v1040_v17, %v1044_v35 }
 0x2af   :  { %v5438_v24 = vcombine.high %v1039_v60, %v1043_v52  ;;  %v5444_v43 = vcombine.low %v1039_v60, %v1043_v52 }
 0x2b0   :  { %1897 = vmatpush1.bf16.msra.mxu0 %v5408_v14  ;;  %1938 = vmatpush1.bf16.msra.mxu1 %v5412_v44  ;;  %7064 = vst [vmem:[#allocation173_spill] sm:$0xff] %v5441_v36  ;;  %v1032_v44 = vld [vmem:[#allocation3 + $0x18] sm:$0xff]  ;;  %7066 = vst [vmem:[#allocation175_spill] sm:$0xff] %v5448_v20 }
 0x2b1   :  { %1898 = vmatprep.subr.bf16.mxu0 %v5414_v39  ;;  %1939 = vmatprep.subr.bf16.mxu1 %v5417_v10  ;;  %7063 = vst [vmem:[#allocation172_spill] sm:$0xff] %v5438_v24  ;;  %v1031_v10 = vld [vmem:[#allocation3 + $0x10] sm:$0xff]  ;;  %v1036_v14 = vld [vmem:[#allocation3 + $0x38] sm:$0xff]  ;;  %7065 = vst [vmem:[#allocation174_spill] sm:$0xff] %v5444_v43 }
 0x2b2   :  { %v1035_v39 = vld [vmem:[#allocation3 + $0x30] sm:$0xff]  ;;  %v5453_v7 = vcombine.high %v1032_v44, %v1036_v14  ;;  %v5460_v35 = vcombine.low %v1032_v44, %v1036_v14 }
 0x2b3   :  { %v5450_v21 = vcombine.high %v1031_v10, %v1035_v39  ;;  %v5456_v52 = vcombine.low %v1031_v10, %v1035_v39 }
 0x2b4   :  { %1899 = vmatpush1.bf16.msra.mxu0 %v5420_v31  ;;  %1940 = vmatpush1.bf16.msra.mxu1 %v5424_v26  ;;  %7068 = vst [vmem:[#allocation177_spill] sm:$0xff] %v5453_v7  ;;  %v1152_v26 = vld [vmem:[#allocation3 + $0x3d8] sm:$0xff]  ;;  %7070 = vst [vmem:[#allocation179_spill] sm:$0xff] %v5460_v35 }
 0x2b5   :  { %1900 = vmatprep.subr.bf16.mxu0 %v5426_v5  ;;  %1941 = vmatprep.subr.bf16.mxu1 %v5429_v0  ;;  %7067 = vst [vmem:[#allocation176_spill] sm:$0xff] %v5450_v21  ;;  %v1151_v0 = vld [vmem:[#allocation3 + $0x3d0] sm:$0xff]  ;;  %v1156_v31 = vld [vmem:[#allocation3 + $0x3f8] sm:$0xff]  ;;  %7069 = vst [vmem:[#allocation178_spill] sm:$0xff] %v5456_v52 }
 0x2b6   :  { %v1155_v5 = vld [vmem:[#allocation3 + $0x3f0] sm:$0xff]  ;;  %v5465_v60 = vcombine.high %v1152_v26, %v1156_v31  ;;  %v5472_v14 = vcombine.low %v1152_v26, %v1156_v31 }
 0x2b7   :  { %v5462_v17 = vcombine.high %v1151_v0, %v1155_v5  ;;  %v5468_v39 = vcombine.low %v1151_v0, %v1155_v5 }
 0x2b8   :  { %1901 = vmatpush1.bf16.msra.mxu0 %v5432_v55  ;;  %1942 = vmatpush1.bf16.msra.mxu1 %v5436_v13  ;;  %7072 = vst [vmem:[#allocation181_spill] sm:$0xff] %v5465_v60  ;;  %v1144_v13 = vld [vmem:[#allocation3 + $0x398] sm:$0xff]  ;;  %7074 = vst [vmem:[#allocation183_spill] sm:$0xff] %v5472_v14 }
 0x2b9   :  { %1902 = vmatprep.subr.bf16.mxu0 %v5438_v24  ;;  %1943 = vmatprep.subr.bf16.mxu1 %v5441_v36  ;;  %7071 = vst [vmem:[#allocation180_spill] sm:$0xff] %v5462_v17  ;;  %v1143_v36 = vld [vmem:[#allocation3 + $0x390] sm:$0xff]  ;;  %v1148_v55 = vld [vmem:[#allocation3 + $0x3b8] sm:$0xff]  ;;  %7073 = vst [vmem:[#allocation182_spill] sm:$0xff] %v5468_v39 }
 0x2ba   :  { %v1147_v24 = vld [vmem:[#allocation3 + $0x3b0] sm:$0xff]  ;;  %v5477_v10 = vcombine.high %v1144_v13, %v1148_v55  ;;  %v5484_v31 = vcombine.low %v1144_v13, %v1148_v55 }
 0x2bb   :  { %v5474_v44 = vcombine.high %v1143_v36, %v1147_v24  ;;  %v5480_v5 = vcombine.low %v1143_v36, %v1147_v24 }
 0x2bc   :  { %1903 = vmatpush1.bf16.msra.mxu0 %v5444_v43  ;;  %1944 = vmatpush1.bf16.msra.mxu1 %v5448_v20  ;;  %7076 = vst [vmem:[#allocation185_spill] sm:$0xff] %v5477_v10  ;;  %v1136_v20 = vld [vmem:[#allocation3 + $0x358] sm:$0xff]  ;;  %7078 = vst [vmem:[#allocation187_spill] sm:$0xff] %v5484_v31 }
 0x2bd   :  { %1904 = vmatprep.subr.bf16.mxu0 %v5450_v21  ;;  %1945 = vmatprep.subr.bf16.mxu1 %v5453_v7  ;;  %7075 = vst [vmem:[#allocation184_spill] sm:$0xff] %v5474_v44  ;;  %v1135_v7 = vld [vmem:[#allocation3 + $0x350] sm:$0xff]  ;;  %v1140_v43 = vld [vmem:[#allocation3 + $0x378] sm:$0xff]  ;;  %7077 = vst [vmem:[#allocation186_spill] sm:$0xff] %v5480_v5 }
 0x2be   :  { %v1139_v21 = vld [vmem:[#allocation3 + $0x370] sm:$0xff]  ;;  %v5489_v0 = vcombine.high %v1136_v20, %v1140_v43  ;;  %v5496_v55 = vcombine.low %v1136_v20, %v1140_v43 }
 0x2bf   :  { %v5486_v26 = vcombine.high %v1135_v7, %v1139_v21  ;;  %v5492_v24 = vcombine.low %v1135_v7, %v1139_v21 }
 0x2c0   :  { %1905 = vmatpush1.bf16.msra.mxu0 %v5456_v52  ;;  %1946 = vmatpush1.bf16.msra.mxu1 %v5460_v35  ;;  %7080 = vst [vmem:[#allocation189_spill] sm:$0xff] %v5489_v0  ;;  %v1128_v35 = vld [vmem:[#allocation3 + $0x318] sm:$0xff]  ;;  %7082 = vst [vmem:[#allocation191_spill] sm:$0xff] %v5496_v55 }
 0x2c1   :  { %1906 = vmatprep.subr.bf16.mxu0 %v5462_v17  ;;  %1947 = vmatprep.subr.bf16.mxu1 %v5465_v60  ;;  %7079 = vst [vmem:[#allocation188_spill] sm:$0xff] %v5486_v26  ;;  %v1127_v60 = vld [vmem:[#allocation3 + $0x310] sm:$0xff]  ;;  %v1132_v52 = vld [vmem:[#allocation3 + $0x338] sm:$0xff]  ;;  %7081 = vst [vmem:[#allocation190_spill] sm:$0xff] %v5492_v24 }
 0x2c2   :  { %v1131_v17 = vld [vmem:[#allocation3 + $0x330] sm:$0xff]  ;;  %v5501_v36 = vcombine.high %v1128_v35, %v1132_v52  ;;  %v5508_v43 = vcombine.low %v1128_v35, %v1132_v52 }
 0x2c3   :  { %v5498_v13 = vcombine.high %v1127_v60, %v1131_v17  ;;  %v5504_v21 = vcombine.low %v1127_v60, %v1131_v17 }
 0x2c4   :  { %1907 = vmatpush2.bf16.msra.mxu0 %v5468_v39  ;;  %1948 = vmatpush2.bf16.msra.mxu1 %v5472_v14  ;;  %7084 = vst [vmem:[#allocation193_spill] sm:$0xff] %v5501_v36  ;;  %v1120_v14 = vld [vmem:[#allocation3 + $0x2d8] sm:$0xff]  ;;  %7086 = vst [vmem:[#allocation195_spill] sm:$0xff] %v5508_v43 }
 0x2c5   :  { %1908 = vmatprep.subr.bf16.mxu0 %v5474_v44  ;;  %1949 = vmatprep.subr.bf16.mxu1 %v5477_v10  ;;  %7083 = vst [vmem:[#allocation192_spill] sm:$0xff] %v5498_v13  ;;  %v1119_v10 = vld [vmem:[#allocation3 + $0x2d0] sm:$0xff]  ;;  %v1124_v39 = vld [vmem:[#allocation3 + $0x2f8] sm:$0xff]  ;;  %7085 = vst [vmem:[#allocation194_spill] sm:$0xff] %v5504_v21 }
 0x2c6   :  { %v1123_v44 = vld [vmem:[#allocation3 + $0x2f0] sm:$0xff]  ;;  %v5513_v7 = vcombine.high %v1120_v14, %v1124_v39  ;;  %v5520_v52 = vcombine.low %v1120_v14, %v1124_v39 }
 0x2c7   :  { %v5510_v20 = vcombine.high %v1119_v10, %v1123_v44  ;;  %v5516_v17 = vcombine.low %v1119_v10, %v1123_v44 }
 0x2c8   :  { %1909 = vmatpush2.bf16.msra.mxu0 %v5480_v5  ;;  %1950 = vmatpush2.bf16.msra.mxu1 %v5484_v31  ;;  %7088 = vst [vmem:[#allocation197_spill] sm:$0xff] %v5513_v7  ;;  %v1112_v31 = vld [vmem:[#allocation3 + $0x298] sm:$0xff]  ;;  %7090 = vst [vmem:[#allocation199_spill] sm:$0xff] %v5520_v52 }
 0x2c9   :  { %1910 = vmatprep.subr.bf16.mxu0 %v5486_v26  ;;  %1951 = vmatprep.subr.bf16.mxu1 %v5489_v0  ;;  %7087 = vst [vmem:[#allocation196_spill] sm:$0xff] %v5510_v20  ;;  %v1111_v0 = vld [vmem:[#allocation3 + $0x290] sm:$0xff]  ;;  %v1116_v5 = vld [vmem:[#allocation3 + $0x2b8] sm:$0xff]  ;;  %7089 = vst [vmem:[#allocation198_spill] sm:$0xff] %v5516_v17 }
 0x2ca   :  { %v1115_v26 = vld [vmem:[#allocation3 + $0x2b0] sm:$0xff]  ;;  %v5525_v60 = vcombine.high %v1112_v31, %v1116_v5  ;;  %v5532_v39 = vcombine.low %v1112_v31, %v1116_v5 }
 0x2cb   :  { %v5522_v35 = vcombine.high %v1111_v0, %v1115_v26  ;;  %v5528_v44 = vcombine.low %v1111_v0, %v1115_v26 }
 0x2cc   :  { %1911 = vmatpush2.bf16.msra.mxu0 %v5492_v24  ;;  %1952 = vmatpush2.bf16.msra.mxu1 %v5496_v55  ;;  %7092 = vst [vmem:[#allocation201_spill] sm:$0xff] %v5525_v60  ;;  %v1104_v55 = vld [vmem:[#allocation3 + $0x258] sm:$0xff]  ;;  %7094 = vst [vmem:[#allocation203_spill] sm:$0xff] %v5532_v39 }
 0x2cd   :  { %1912 = vmatprep.subr.bf16.mxu0 %v5498_v13  ;;  %1953 = vmatprep.subr.bf16.mxu1 %v5501_v36  ;;  %7091 = vst [vmem:[#allocation200_spill] sm:$0xff] %v5522_v35  ;;  %v1103_v36 = vld [vmem:[#allocation3 + $0x250] sm:$0xff]  ;;  %v1108_v24 = vld [vmem:[#allocation3 + $0x278] sm:$0xff]  ;;  %7093 = vst [vmem:[#allocation202_spill] sm:$0xff] %v5528_v44 }
 0x2ce   :  { %v1107_v13 = vld [vmem:[#allocation3 + $0x270] sm:$0xff]  ;;  %v5537_v10 = vcombine.high %v1104_v55, %v1108_v24  ;;  %v5544_v5 = vcombine.low %v1104_v55, %v1108_v24  ;;  %v7104_v24 = vld [vmem:[#allocation128_spill] sm:$0xff]  ;;  %v7105_v55 = vld [vmem:[#allocation129_spill] sm:$0xff] }
 0x2cf   :  { %v5534_v14 = vcombine.high %v1103_v36, %v1107_v13  ;;  %v5540_v26 = vcombine.low %v1103_v36, %v1107_v13  ;;  %v7106_v36 = vld [vmem:[#allocation130_spill] sm:$0xff] }
 0x2d0   :  { %1913 = vmatpush2.bf16.msra.mxu0 %v5504_v21  ;;  %1954 = vmatpush2.bf16.msra.mxu1 %v5508_v43  ;;  %7096 = vst [vmem:[#allocation205_spill] sm:$0xff] %v5537_v10  ;;  %v1096_v43 = vld [vmem:[#allocation3 + $0x218] sm:$0xff]  ;;  %7098 = vst [vmem:[#allocation207_spill] sm:$0xff] %v5544_v5 }
 0x2d1   :  { %1914 = vmatprep.subr.bf16.mxu0 %v5510_v20  ;;  %1955 = vmatprep.subr.bf16.mxu1 %v5513_v7  ;;  %7095 = vst [vmem:[#allocation204_spill] sm:$0xff] %v5534_v14  ;;  %v1095_v7 = vld [vmem:[#allocation3 + $0x210] sm:$0xff]  ;;  %v1100_v21 = vld [vmem:[#allocation3 + $0x238] sm:$0xff]  ;;  %7097 = vst [vmem:[#allocation206_spill] sm:$0xff] %v5540_v26 }
 0x2d2   :  { %v1099_v20 = vld [vmem:[#allocation3 + $0x230] sm:$0xff]  ;;  %v5549_v0 = vcombine.high %v1096_v43, %v1100_v21  ;;  %v5556_v13 = vcombine.low %v1096_v43, %v1100_v21  ;;  %v7107_v21 = vld [vmem:[#allocation131_spill] sm:$0xff]  ;;  %v7108_v43 = vld [vmem:[#allocation132_spill] sm:$0xff] }
 0x2d3   :  { %v5546_v31 = vcombine.high %v1095_v7, %v1099_v20 }
 0x2d4   :  { %1915 = vmatpush2.bf16.msra.mxu0 %v5516_v17  ;;  %1956 = vmatpush2.bf16.msra.mxu1 %v5520_v52  ;;  %7100 = vst [vmem:[#allocation209_spill] sm:$0xff] %v5549_v0  ;;  %7102 = vst [vmem:[#allocation211_spill] sm:$0xff] %v5556_v13 }
 0x2d5   :  { %1916 = vmatprep.subr.bf16.mxu0 %v5522_v35  ;;  %1957 = vmatprep.subr.bf16.mxu1 %v5525_v60  ;;  %7099 = vst [vmem:[#allocation208_spill] sm:$0xff] %v5546_v31  ;;  %v5552_v60 = vcombine.low %v1095_v7, %v1099_v20  ;;  %v7109_v20 = vld [vmem:[#allocation133_spill] sm:$0xff]  ;;  %v7110_v7 = vld [vmem:[#allocation134_spill] sm:$0xff] }
 0x2d7   :  { %7101 = vst [vmem:[#allocation210_spill] sm:$0xff] %v5552_v60 }
 0x2d8   :  { %1917 = vmatpush2.bf16.msra.mxu0 %v5528_v44  ;;  %1958 = vmatpush2.bf16.msra.mxu1 %v5532_v39 }
 0x2d9   :  { %1918 = vmatprep.subr.bf16.mxu0 %v5534_v14  ;;  %1959 = vmatprep.subr.bf16.mxu1 %v5537_v10 }
 0x2dc   :  { %1919 = vmatpush2.bf16.msra.mxu0 %v5540_v26  ;;  %1960 = vmatpush2.bf16.msra.mxu1 %v5544_v5 }
 0x2dd   :  { %1920 = vmatprep.subr.bf16.mxu0 %v5546_v31  ;;  %1961 = vmatprep.subr.bf16.mxu1 %v5549_v0 }
 0x2e0   :  { %1921 = vmatpush2.bf16.msra.mxu0 %v5552_v60  ;;  %1962 = vmatpush2.bf16.msra.mxu1 %v5556_v13 }
 0x2e1   :  { %2041 = vmatprep.subr.bf16.mxu0 %v5173_v48  ;;  %2082 = vmatprep.subr.bf16.mxu1 %v5177_v34 }
 0x2e3   :  { %1923 = vmatmul.mubr.bf16.vlgmr.msra.gmra.mxu0 %v6974_v61  ;;  %1964 = vmatmul.mubr.bf16.vlgmr.msra.gmra.mxu1 %v6974_v61  ;;  %v7103_v61 = vld [vmem:[#allocation127_spill] sm:$0xff] }
 0x2e4   :  { %2042 = vmatpush1.bf16.msra.mxu0 %v5175_v22  ;;  %2083 = vmatpush1.bf16.msra.mxu1 %v5179_v57 }
 0x2e5   :  { %2043 = vmatprep.subr.bf16.mxu0 %v5181_v8  ;;  %2084 = vmatprep.subr.bf16.mxu1 %v5184_v28 }
 0x2e8   :  { %2044 = vmatpush1.bf16.msra.mxu0 %v5188_v23  ;;  %2085 = vmatpush1.bf16.msra.mxu1 %v5192_v19 }
 0x2e9   :  { %2045 = vmatprep.subr.bf16.mxu0 %v5194_v49  ;;  %2086 = vmatprep.subr.bf16.mxu1 %v5197_v4 }
 0x2ec   :  { %2046 = vmatpush1.bf16.msra.mxu0 %v5200_v3  ;;  %2087 = vmatpush1.bf16.msra.mxu1 %v5204_v16 }
 0x2ed   :  { %2047 = vmatprep.subr.bf16.mxu0 %v5206_v18  ;;  %2088 = vmatprep.subr.bf16.mxu1 %v5209_v56 }
 0x2f0   :  { %2048 = vmatpush1.bf16.msra.mxu0 %v5212_v54  ;;  %2089 = vmatpush1.bf16.msra.mxu1 %v5216_v46 }
 0x2f1   :  { %2049 = vmatprep.subr.bf16.mxu0 %v5218_v30  ;;  %2090 = vmatprep.subr.bf16.mxu1 %v5221_v59 }
 0x2f4   :  { %2050 = vmatpush1.bf16.msra.mxu0 %v5224_v29  ;;  %2091 = vmatpush1.bf16.msra.mxu1 %v5228_v63 }
 0x2f5   :  { %2051 = vmatprep.subr.bf16.mxu0 %v5230_v1  ;;  %2092 = vmatprep.subr.bf16.mxu1 %v5233_v42 }
 0x2f8   :  { %2052 = vmatpush1.bf16.msra.mxu0 %v5236_v62  ;;  %2093 = vmatpush1.bf16.msra.mxu1 %v5240_v2 }
 0x2f9   :  { %2053 = vmatprep.subr.bf16.mxu0 %v5242_v9  ;;  %2094 = vmatprep.subr.bf16.mxu1 %v5245_v15 }
 0x2fc   :  { %2054 = vmatpush1.bf16.msra.mxu0 %v5248_v53  ;;  %2095 = vmatpush1.bf16.msra.mxu1 %v5252_v51 }
 0x2fd   :  { %2055 = vmatprep.subr.bf16.mxu0 %v5254_v50  ;;  %2096 = vmatprep.subr.bf16.mxu1 %v5257_v25 }
 0x300   :  { %2056 = vmatpush1.bf16.msra.mxu0 %v5260_v45  ;;  %2097 = vmatpush1.bf16.msra.mxu1 %v5264_v33 }
 0x301   :  { %2057 = vmatprep.subr.bf16.mxu0 %v5266_v58  ;;  %2098 = vmatprep.subr.bf16.mxu1 %v5269_v47 }
 0x304   :  { %2058 = vmatpush2.bf16.msra.mxu0 %v5272_v41  ;;  %2099 = vmatpush2.bf16.msra.mxu1 %v5276_v38  ;;  %v7127_v38 = vld [vmem:[#allocation21_spill] sm:$0xff]  ;;  %v7128_v41 = vld [vmem:[#allocation23_spill] sm:$0xff] }
 0x305   :  { %2059 = vmatprep.subr.bf16.mxu0 %v5278_v40  ;;  %2100 = vmatprep.subr.bf16.mxu1 %v5281_v27  ;;  %v7126_v40 = vld [vmem:[#allocation20_spill] sm:$0xff] }
 0x308   :  { %2060 = vmatpush2.bf16.msra.mxu0 %v5284_v37  ;;  %2101 = vmatpush2.bf16.msra.mxu1 %v5288_v6 }
 0x309   :  { %2061 = vmatprep.subr.bf16.mxu0 %v5290_v11  ;;  %2102 = vmatprep.subr.bf16.mxu1 %v5293_v12  ;;  %v7111_v11 = vld [vmem:[#allocation135_spill] sm:$0xff]  ;;  %v7112_v12 = vld [vmem:[#allocation136_spill] sm:$0xff] }
 0x30c   :  { %2062 = vmatpush2.bf16.msra.mxu0 %v5296_v32  ;;  %2103 = vmatpush2.bf16.msra.mxu1 %v7103_v61  ;;  %v7113_v32 = vld [vmem:[#allocation137_spill] sm:$0xff]  ;;  %v7114_v61 = vld [vmem:[#allocation138_spill] sm:$0xff] }
 0x30d   :  { %2063 = vmatprep.subr.bf16.mxu0 %v7104_v24  ;;  %2104 = vmatprep.subr.bf16.mxu1 %v7105_v55  ;;  %v7115_v24 = vld [vmem:[#allocation139_spill] sm:$0xff]  ;;  %v7116_v55 = vld [vmem:[#allocation140_spill] sm:$0xff] }
 0x310   :  { %2064 = vmatpush2.bf16.msra.mxu0 %v7106_v36  ;;  %2105 = vmatpush2.bf16.msra.mxu1 %v7107_v21  ;;  %v7117_v36 = vld [vmem:[#allocation141_spill] sm:$0xff]  ;;  %v7118_v21 = vld [vmem:[#allocation142_spill] sm:$0xff] }
 0x311   :  { %2065 = vmatprep.subr.bf16.mxu0 %v7108_v43  ;;  %2106 = vmatprep.subr.bf16.mxu1 %v7109_v20  ;;  %v7119_v43 = vld [vmem:[#allocation143_spill] sm:$0xff]  ;;  %v7120_v20 = vld [vmem:[#allocation144_spill] sm:$0xff] }
 0x314   :  { %2066 = vmatpush2.bf16.msra.mxu0 %v7110_v7  ;;  %2107 = vmatpush2.bf16.msra.mxu1 %v7111_v11  ;;  %v7121_v7 = vld [vmem:[#allocation145_spill] sm:$0xff]  ;;  %v7122_v11 = vld [vmem:[#allocation146_spill] sm:$0xff] }
 0x315   :  { %2067 = vmatprep.subr.bf16.mxu0 %v7112_v12  ;;  %2108 = vmatprep.subr.bf16.mxu1 %v7113_v32  ;;  %v7123_v12 = vld [vmem:[#allocation147_spill] sm:$0xff]  ;;  %v7124_v32 = vld [vmem:[#allocation148_spill] sm:$0xff] }
 0x318   :  { %2068 = vmatpush2.bf16.msra.mxu0 %v7114_v61  ;;  %2109 = vmatpush2.bf16.msra.mxu1 %v7115_v24  ;;  %v7125_v61 = vld [vmem:[#allocation149_spill] sm:$0xff] }
 0x319   :  { %2069 = vmatprep.subr.bf16.mxu0 %v7116_v55  ;;  %2110 = vmatprep.subr.bf16.mxu1 %v7117_v36 }
 0x31c   :  { %2070 = vmatpush2.bf16.msra.mxu0 %v7118_v21  ;;  %2111 = vmatpush2.bf16.msra.mxu1 %v7119_v43 }
 0x31d   :  { %2071 = vmatprep.subr.bf16.mxu0 %v7120_v20  ;;  %2112 = vmatprep.subr.bf16.mxu1 %v7121_v7 }
 0x320   :  { %2072 = vmatpush2.bf16.msra.mxu0 %v7122_v11  ;;  %2113 = vmatpush2.bf16.msra.mxu1 %v7123_v12  ;;  %v7129_v12 = vld [vmem:[#allocation22_spill] sm:$0xff] }
 0x321   :  { %2123 = vmatprep.subr.bf16.mxu0 %v7124_v32  ;;  %2164 = vmatprep.subr.bf16.mxu1 %v7125_v61 }
 0x363   :  { %v1842_v24 = vpop.f32.mrf.mxu0  ;;  %v1883_v55 = vpop.f32.mrf.mxu1 }
 0x364   :  { %v1972_v20 = vadd.f32 %v1842_v24, %v7126_v40  ;;  %v1974_v7 = vadd.f32 %v1883_v55, %v7127_v38  ;;  %v7130_v55 = vld [vmem:[#allocation52_spill] sm:$0xff] }
 0x365   :  { %v1844_v6 = vpop.f32.mrf.mxu0  ;;  %v1885_v36 = vpop.f32.mrf.mxu1 }
 0x366   :  { %v1975_v11 = vadd.f32 %v1885_v36, %v7128_v41  ;;  %v4212_v47 = vmul.f32 -1.442695, %v1972_v20  ;;  %v1973_v58 = vadd.f32 %v1844_v6, %v7129_v12  ;;  %v4214_v32 = vmul.f32 -1.442695, %v1974_v7  ;;  %v7133_v20 = vld [vmem:[#allocation55_spill] sm:$0xff] }
 0x367   :  { %v1846_v37 = vpop.f32.mrf.mxu0  ;;  %v1887_v21 = vpop.f32.mrf.mxu1 }
 0x368   :  { %v4215_v33 = vmul.f32 -1.442695, %v1975_v11  ;;  %4367 = vpow2.f32 %v4212_v47  ;;  %v4213_v61 = vmul.f32 -1.442695, %v1973_v58  ;;  %v7131_v47 = vld [vmem:[#allocation53_spill] sm:$0xff] }
 0x369   :  { %v1847_v27 = vpop.f32.mrf.mxu0  ;;  %v1888_v43 = vpop.f32.mrf.mxu1  ;;  %4369 = vpow2.f32 %v4214_v32 }
 0x36a   :  { %4371 = vpow2.f32 %v4215_v33  ;;  %v7132_v33 = vld [vmem:[#allocation54_spill] sm:$0xff] }
 0x36b   :  { %4373 = vpow2.f32 %v4213_v61 }
 0x375   :  { %v4368_v37 = vpop.eup %4367 }
 0x376   :  { %v4370_v21 = vpop.eup %4369  ;;  %v1986_v43 = vadd.f32 1.0, %v4368_v37 }
 0x377   :  { %v4372_v27 = vpop.eup %4371  ;;  %v1998_v40 = vadd.f32 1.0, %v4370_v21 }
 0x378   :  { %v4374_v45 = vpop.eup %4373  ;;  %v1999_v24 = vadd.f32 1.0, %v4372_v27  ;;  %4375 = vrcp.f32 %v1986_v43 }
 0x379   :  { %v1987_v38 = vadd.f32 1.0, %v4374_v45  ;;  %4377 = vrcp.f32 %v1998_v40 }
 0x37a   :  { %4379 = vrcp.f32 %v1999_v24 }
 0x385   :  { %v4376_v40 = vpop.eup %4375 }
 0x386   :  { %v4378_v24 = vpop.eup %4377 }
 0x3a3   :  { %v1924_v41 = vpop.f32.mrf.mxu0  ;;  %v1965_v12 = vpop.f32.mrf.mxu1 }
 0x3a4   :  { %v1976_v6 = vadd.f32 %v1924_v41, %v7130_v55  ;;  %v1978_v58 = vadd.f32 %v1965_v12, %v7131_v47  ;;  %v4380_v41 = vpop.eup %4379  ;;  %v2018_v12 = vmul.f32 0.0, %v4378_v24 }
 0x3a5   :  { %v1926_v11 = vpop.f32.mrf.mxu0  ;;  %v1967_v61 = vpop.f32.mrf.mxu1 }
 0x3a6   :  { %4381 = vtanh.f32 %v1976_v6  ;;  %v1977_v32 = vadd.f32 %v1926_v11, %v7132_v33  ;;  %v4216_v36 = vmul.f32 -1.442695, %v1978_v58  ;;  %v1979_v7 = vadd.f32 %v1967_v61, %v7133_v20 }
 0x3a7   :  { %4383 = vrcp.f32 %v1987_v38  ;;  %v1928_v37 = vpop.f32.mrf.mxu0  ;;  %v1969_v45 = vpop.f32.mrf.mxu1  ;;  %v2019_v58 = vmul.f32 0.0, %v4380_v41 }
 0x3a8   :  { %4385 = vtanh.f32 %v1977_v32  ;;  %v4217_v21 = vmul.f32 -1.442695, %v1979_v7 }
 0x3a9   :  { %4387 = vpow2.f32 %v4216_v36  ;;  %v1929_v27 = vpop.f32.mrf.mxu0  ;;  %v1970_v43 = vpop.f32.mrf.mxu1 }
 0x3aa   :  { %4389 = vpow2.f32 %v4217_v21 }
 0x3b3   :  { %v4382_v55 = vpop.eup %4381 }
 0x3b4   :  { %v4384_v6 = vpop.eup %4383  ;;  %v2020_v47 = vmul.f32 %v4382_v55, %v4376_v40  ;;  %v7134_v55 = vld [vmem:[#allocation150_spill] sm:$0xff] }
 0x3b5   :  { %v4386_v11 = vpop.eup %4385 }
 0x3b6   :  { %v4388_v38 = vpop.eup %4387  ;;  %v5637_v33 = vadd.f32 %v2020_v47, %v2018_v12  ;;  %v2021_v61 = vmul.f32 %v4386_v11, %v4384_v6  ;;  %v7135_v6 = vld [vmem:[#allocation151_spill] sm:$0xff]  ;;  %v7136_v12 = vld [vmem:[#allocation152_spill] sm:$0xff]  ;;  %v7137_v47 = vld [vmem:[#allocation153_spill] sm:$0xff] }
 0x3b7   :  { %v2012_v32 = vadd.f32 1.0, %v4388_v38  ;;  %v4390_v20 = vpop.eup %4389  ;;  %v7138_v11 = vld [vmem:[#allocation154_spill] sm:$0xff]  ;;  %v7139_v38 = vld [vmem:[#allocation155_spill] sm:$0xff] }
 0x3b8   :  { %4391 = vtanh.f32 %v5637_v33  ;;  %v5640_v36 = vadd.f32 %v2021_v61, %v2019_v58  ;;  %v2013_v7 = vadd.f32 1.0, %v4390_v20  ;;  %v7140_v58 = vld [vmem:[#allocation156_spill] sm:$0xff]  ;;  %v7141_v61 = vld [vmem:[#allocation157_spill] sm:$0xff]  ;;  %v7143_v20 = vld [vmem:[#allocation159_spill] sm:$0xff] }
 0x3b9   :  { %4393 = vrcp.f32 %v2012_v32  ;;  %v7142_v32 = vld [vmem:[#allocation158_spill] sm:$0xff] }
 0x3ba   :  { %4395 = vtanh.f32 %v5640_v36 }
 0x3bb   :  { %4397 = vrcp.f32 %v2013_v7  ;;  %v7144_v7 = vld [vmem:[#allocation160_spill] sm:$0xff] }
 0x3c5   :  { %v4392_v37 = vpop.eup %4391 }
 0x3c6   :  { %v4394_v45 = vpop.eup %4393 }
 0x3c7   :  { %v4396_v21 = vpop.eup %4395  ;;  %v2026_v43 = vmul.f32 %v4394_v45, %v4392_v37  ;;  %v7145_v37 = vld [vmem:[#allocation161_spill] sm:$0xff]  ;;  %v7146_v45 = vld [vmem:[#allocation162_spill] sm:$0xff] }
 0x3c8   :  { %v4398_v27 = vpop.eup %4397 }
 0x3c9   :  { %v2027_v40 = vmul.f32 %v4398_v27, %v4396_v21  ;;  %v5643_v41 = vpack.c.bf16 %v2026_v43, %v2026_v43  ;;  %v7147_v21 = vld [vmem:[#allocation163_spill] sm:$0xff]  ;;  %v7148_v27 = vld [vmem:[#allocation164_spill] sm:$0xff]  ;;  %v7149_v43 = vld [vmem:[#allocation165_spill] sm:$0xff] }
 0x3cb   :  { %v2040_v24 = vpack.c.bf16 %v2027_v40, %v2027_v40  ;;  %v7150_v40 = vld [vmem:[#allocation166_spill] sm:$0xff] }
 0x3cd   :  { %2073 = vmatprep.mubr.bf16.mxu0 %v2040_v24  ;;  %2114 = vmatprep.mubr.bf16.mxu1 %v2040_v24 }
 0x3ce   :  { %2074 = vmatmul.mubr.bf16.vlgmr.msra.gmra.mxu0 %v5643_v41  ;;  %2115 = vmatmul.mubr.bf16.vlgmr.msra.gmra.mxu1 %v5643_v41 }
 0x3cf   :  { %2124 = vmatpush1.bf16.msra.mxu0 %v7134_v55  ;;  %2165 = vmatpush1.bf16.msra.mxu1 %v7135_v6 }
 0x3d0   :  { %2155 = vmatprep.mubr.bf16.mxu0 %v2040_v24  ;;  %2196 = vmatprep.mubr.bf16.mxu1 %v2040_v24  ;;  %v7151_v24 = vld [vmem:[#allocation167_spill] sm:$0xff] }
 0x3d1   :  { %2125 = vmatprep.subr.bf16.mxu0 %v7136_v12  ;;  %2166 = vmatprep.subr.bf16.mxu1 %v7137_v47 }
 0x3d3   :  { %2126 = vmatpush1.bf16.msra.mxu0 %v7138_v11  ;;  %2167 = vmatpush1.bf16.msra.mxu1 %v7139_v38 }
 0x3d4   :  { %2127 = vmatprep.subr.bf16.mxu0 %v7140_v58  ;;  %2168 = vmatprep.subr.bf16.mxu1 %v7141_v61  ;;  %v7152_v61 = vld [vmem:[#allocation168_spill] sm:$0xff] }
 0x3d7   :  { %2128 = vmatpush1.bf16.msra.mxu0 %v7142_v32  ;;  %2169 = vmatpush1.bf16.msra.mxu1 %v7143_v20  ;;  %v7153_v32 = vld [vmem:[#allocation169_spill] sm:$0xff]  ;;  %v7154_v20 = vld [vmem:[#allocation170_spill] sm:$0xff] }
 0x3d8   :  { %2129 = vmatprep.subr.bf16.mxu0 %v7144_v7  ;;  %2170 = vmatprep.subr.bf16.mxu1 %v7145_v37  ;;  %v7155_v7 = vld [vmem:[#allocation171_spill] sm:$0xff]  ;;  %v7156_v37 = vld [vmem:[#allocation172_spill] sm:$0xff] }
 0x3db   :  { %2130 = vmatpush1.bf16.msra.mxu0 %v7146_v45  ;;  %2171 = vmatpush1.bf16.msra.mxu1 %v7147_v21  ;;  %v7157_v45 = vld [vmem:[#allocation173_spill] sm:$0xff]  ;;  %v7158_v21 = vld [vmem:[#allocation174_spill] sm:$0xff] }
 0x3dc   :  { %2131 = vmatprep.subr.bf16.mxu0 %v7148_v27  ;;  %2172 = vmatprep.subr.bf16.mxu1 %v7149_v43  ;;  %v7159_v27 = vld [vmem:[#allocation175_spill] sm:$0xff]  ;;  %v7160_v43 = vld [vmem:[#allocation176_spill] sm:$0xff] }
 0x3df   :  { %2132 = vmatpush1.bf16.msra.mxu0 %v7150_v40  ;;  %2173 = vmatpush1.bf16.msra.mxu1 %v7151_v24  ;;  %v7161_v40 = vld [vmem:[#allocation177_spill] sm:$0xff]  ;;  %v7162_v24 = vld [vmem:[#allocation178_spill] sm:$0xff] }
 0x3e0   :  { %2133 = vmatprep.subr.bf16.mxu0 %v7152_v61  ;;  %2174 = vmatprep.subr.bf16.mxu1 %v7153_v32  ;;  %v7163_v61 = vld [vmem:[#allocation179_spill] sm:$0xff]  ;;  %v7164_v32 = vld [vmem:[#allocation180_spill] sm:$0xff] }
 0x3e3   :  { %2134 = vmatpush1.bf16.msra.mxu0 %v7154_v20  ;;  %2175 = vmatpush1.bf16.msra.mxu1 %v7155_v7  ;;  %v7165_v20 = vld [vmem:[#allocation181_spill] sm:$0xff]  ;;  %v7166_v7 = vld [vmem:[#allocation182_spill] sm:$0xff] }
 0x3e4   :  { %2135 = vmatprep.subr.bf16.mxu0 %v7156_v37  ;;  %2176 = vmatprep.subr.bf16.mxu1 %v7157_v45  ;;  %v7167_v37 = vld [vmem:[#allocation183_spill] sm:$0xff]  ;;  %v7168_v45 = vld [vmem:[#allocation184_spill] sm:$0xff] }
 0x3e7   :  { %2136 = vmatpush1.bf16.msra.mxu0 %v7158_v21  ;;  %2177 = vmatpush1.bf16.msra.mxu1 %v7159_v27  ;;  %v7169_v21 = vld [vmem:[#allocation185_spill] sm:$0xff]  ;;  %v7170_v27 = vld [vmem:[#allocation186_spill] sm:$0xff] }
 0x3e8   :  { %2137 = vmatprep.subr.bf16.mxu0 %v7160_v43  ;;  %2178 = vmatprep.subr.bf16.mxu1 %v7161_v40  ;;  %v7171_v43 = vld [vmem:[#allocation187_spill] sm:$0xff]  ;;  %v7172_v40 = vld [vmem:[#allocation188_spill] sm:$0xff] }
 0x3eb   :  { %2138 = vmatpush1.bf16.msra.mxu0 %v7162_v24  ;;  %2179 = vmatpush1.bf16.msra.mxu1 %v7163_v61  ;;  %v7173_v24 = vld [vmem:[#allocation189_spill] sm:$0xff]  ;;  %v7174_v61 = vld [vmem:[#allocation190_spill] sm:$0xff] }
 0x3ec   :  { %2139 = vmatprep.subr.bf16.mxu0 %v7164_v32  ;;  %2180 = vmatprep.subr.bf16.mxu1 %v7165_v20  ;;  %v7175_v32 = vld [vmem:[#allocation191_spill] sm:$0xff]  ;;  %v7176_v20 = vld [vmem:[#allocation192_spill] sm:$0xff] }
 0x3ef   :  { %2140 = vmatpush2.bf16.msra.mxu0 %v7166_v7  ;;  %2181 = vmatpush2.bf16.msra.mxu1 %v7167_v37  ;;  %v7177_v7 = vld [vmem:[#allocation193_spill] sm:$0xff]  ;;  %v7178_v37 = vld [vmem:[#allocation194_spill] sm:$0xff] }
 0x3f0   :  { %2141 = vmatprep.subr.bf16.mxu0 %v7168_v45  ;;  %2182 = vmatprep.subr.bf16.mxu1 %v7169_v21  ;;  %v7179_v45 = vld [vmem:[#allocation195_spill] sm:$0xff]  ;;  %v7180_v21 = vld [vmem:[#allocation196_spill] sm:$0xff] }
 0x3f3   :  { %2142 = vmatpush2.bf16.msra.mxu0 %v7170_v27  ;;  %2183 = vmatpush2.bf16.msra.mxu1 %v7171_v43  ;;  %v7181_v27 = vld [vmem:[#allocation197_spill] sm:$0xff] }
 0x3f4   :  { %2143 = vmatprep.subr.bf16.mxu0 %v7172_v40  ;;  %2184 = vmatprep.subr.bf16.mxu1 %v7173_v24 }
 0x3f7   :  { %2144 = vmatpush2.bf16.msra.mxu0 %v7174_v61  ;;  %2185 = vmatpush2.bf16.msra.mxu1 %v7175_v32  ;;  %v7182_v61 = vld [vmem:[#allocation201_spill] sm:$0xff] }
 0x3f8   :  { %2145 = vmatprep.subr.bf16.mxu0 %v7176_v20  ;;  %2186 = vmatprep.subr.bf16.mxu1 %v7177_v7 }
 0x3fb   :  { %2146 = vmatpush2.bf16.msra.mxu0 %v7178_v37  ;;  %2187 = vmatpush2.bf16.msra.mxu1 %v7179_v45 }
 0x3fc   :  { %2147 = vmatprep.subr.bf16.mxu0 %v7180_v21  ;;  %2188 = vmatprep.subr.bf16.mxu1 %v7181_v27 }
 0x3ff   :  { %2148 = vmatpush2.bf16.msra.mxu0 %v5516_v17  ;;  %2189 = vmatpush2.bf16.msra.mxu1 %v5520_v52 }
 0x400   :  { %2149 = vmatprep.subr.bf16.mxu0 %v5522_v35  ;;  %2190 = vmatprep.subr.bf16.mxu1 %v7182_v61 }
 0x403   :  { %2150 = vmatpush2.bf16.msra.mxu0 %v5528_v44  ;;  %2191 = vmatpush2.bf16.msra.mxu1 %v5532_v39 }
 0x404   :  { %2151 = vmatprep.subr.bf16.mxu0 %v5534_v14  ;;  %2192 = vmatprep.subr.bf16.mxu1 %v5537_v10 }
 0x407   :  { %2152 = vmatpush2.bf16.msra.mxu0 %v5540_v26  ;;  %2193 = vmatpush2.bf16.msra.mxu1 %v5544_v5 }
 0x408   :  { %2153 = vmatprep.subr.bf16.mxu0 %v5546_v31  ;;  %2194 = vmatprep.subr.bf16.mxu1 %v5549_v0 }
 0x40b   :  { %2154 = vmatpush2.bf16.msra.mxu0 %v5552_v60  ;;  %2195 = vmatpush2.bf16.msra.mxu1 %v5556_v13 }
 0x40c   :  { %2274 = vmatprep.subr.bf16.mxu0 %v5173_v48  ;;  %2315 = vmatprep.subr.bf16.mxu1 %v5177_v34 }
 0x40e   :  { %2156 = vmatmul.mubr.bf16.vlgmr.msra.gmra.mxu0 %v5643_v41  ;;  %2197 = vmatmul.mubr.bf16.vlgmr.msra.gmra.mxu1 %v5643_v41  ;;  %v7183_v41 = vld [vmem:[#allocation114_spill] sm:$0xff] }
 0x40f   :  { %2275 = vmatpush1.bf16.msra.mxu0 %v5175_v22  ;;  %2316 = vmatpush1.bf16.msra.mxu1 %v5179_v57 }
 0x410   :  { %2276 = vmatprep.subr.bf16.mxu0 %v5181_v8  ;;  %2317 = vmatprep.subr.bf16.mxu1 %v5184_v28 }
 0x413   :  { %2277 = vmatpush1.bf16.msra.mxu0 %v5188_v23  ;;  %2318 = vmatpush1.bf16.msra.mxu1 %v5192_v19 }
 0x414   :  { %2278 = vmatprep.subr.bf16.mxu0 %v5194_v49  ;;  %2319 = vmatprep.subr.bf16.mxu1 %v5197_v4 }
 0x417   :  { %2279 = vmatpush1.bf16.msra.mxu0 %v5200_v3  ;;  %2320 = vmatpush1.bf16.msra.mxu1 %v5204_v16 }
 0x418   :  { %2280 = vmatprep.subr.bf16.mxu0 %v5206_v18  ;;  %2321 = vmatprep.subr.bf16.mxu1 %v5209_v56 }
 0x41b   :  { %2281 = vmatpush1.bf16.msra.mxu0 %v5212_v54  ;;  %2322 = vmatpush1.bf16.msra.mxu1 %v5216_v46  ;;  %v7220_v46 = vld [vmem:[#allocation25_spill] sm:$0xff]  ;;  %v7221_v54 = vld [vmem:[#allocation26_spill] sm:$0xff] }
 0x41c   :  { %2282 = vmatprep.subr.bf16.mxu0 %v5218_v30  ;;  %2323 = vmatprep.subr.bf16.mxu1 %v5221_v59  ;;  %v7219_v30 = vld [vmem:[#allocation24_spill] sm:$0xff] }
 0x41f   :  { %2283 = vmatpush1.bf16.msra.mxu0 %v5224_v29  ;;  %2324 = vmatpush1.bf16.msra.mxu1 %v5228_v63 }
 0x420   :  { %2284 = vmatprep.subr.bf16.mxu0 %v5230_v1  ;;  %2325 = vmatprep.subr.bf16.mxu1 %v5233_v42  ;;  %v7184_v1 = vld [vmem:[#allocation115_spill] sm:$0xff]  ;;  %v7185_v42 = vld [vmem:[#allocation116_spill] sm:$0xff] }
 0x423   :  { %2285 = vmatpush1.bf16.msra.mxu0 %v5236_v62  ;;  %2326 = vmatpush1.bf16.msra.mxu1 %v5240_v2  ;;  %v7186_v62 = vld [vmem:[#allocation117_spill] sm:$0xff]  ;;  %v7187_v2 = vld [vmem:[#allocation118_spill] sm:$0xff] }
 0x424   :  { %2286 = vmatprep.subr.bf16.mxu0 %v5242_v9  ;;  %2327 = vmatprep.subr.bf16.mxu1 %v5245_v15  ;;  %v7188_v9 = vld [vmem:[#allocation119_spill] sm:$0xff]  ;;  %v7189_v15 = vld [vmem:[#allocation120_spill] sm:$0xff] }
 0x427   :  { %2287 = vmatpush1.bf16.msra.mxu0 %v5248_v53  ;;  %2328 = vmatpush1.bf16.msra.mxu1 %v5252_v51  ;;  %v7190_v53 = vld [vmem:[#allocation121_spill] sm:$0xff]  ;;  %v7191_v51 = vld [vmem:[#allocation122_spill] sm:$0xff] }
 0x428   :  { %2288 = vmatprep.subr.bf16.mxu0 %v5254_v50  ;;  %2329 = vmatprep.subr.bf16.mxu1 %v5257_v25  ;;  %v7192_v50 = vld [vmem:[#allocation123_spill] sm:$0xff]  ;;  %v7193_v25 = vld [vmem:[#allocation124_spill] sm:$0xff] }
 0x42b   :  { %2289 = vmatpush1.bf16.msra.mxu0 %v7183_v41  ;;  %2330 = vmatpush1.bf16.msra.mxu1 %v7184_v1  ;;  %v7194_v41 = vld [vmem:[#allocation125_spill] sm:$0xff]  ;;  %v7195_v1 = vld [vmem:[#allocation126_spill] sm:$0xff] }
 0x42c   :  { %2290 = vmatprep.subr.bf16.mxu0 %v7185_v42  ;;  %2331 = vmatprep.subr.bf16.mxu1 %v7186_v62  ;;  %v7196_v42 = vld [vmem:[#allocation127_spill] sm:$0xff]  ;;  %v7197_v62 = vld [vmem:[#allocation128_spill] sm:$0xff] }
 0x42f   :  { %2291 = vmatpush2.bf16.msra.mxu0 %v7187_v2  ;;  %2332 = vmatpush2.bf16.msra.mxu1 %v7188_v9  ;;  %v7198_v2 = vld [vmem:[#allocation129_spill] sm:$0xff]  ;;  %v7199_v9 = vld [vmem:[#allocation130_spill] sm:$0xff] }
 0x430   :  { %2292 = vmatprep.subr.bf16.mxu0 %v7189_v15  ;;  %2333 = vmatprep.subr.bf16.mxu1 %v7190_v53  ;;  %v7200_v15 = vld [vmem:[#allocation131_spill] sm:$0xff]  ;;  %v7201_v53 = vld [vmem:[#allocation132_spill] sm:$0xff] }
 0x433   :  { %2293 = vmatpush2.bf16.msra.mxu0 %v7191_v51  ;;  %2334 = vmatpush2.bf16.msra.mxu1 %v7192_v50  ;;  %v7202_v51 = vld [vmem:[#allocation133_spill] sm:$0xff]  ;;  %v7203_v50 = vld [vmem:[#allocation134_spill] sm:$0xff] }
 0x434   :  { %2294 = vmatprep.subr.bf16.mxu0 %v7193_v25  ;;  %2335 = vmatprep.subr.bf16.mxu1 %v7194_v41  ;;  %v7204_v25 = vld [vmem:[#allocation135_spill] sm:$0xff]  ;;  %v7205_v41 = vld [vmem:[#allocation136_spill] sm:$0xff] }
 0x437   :  { %2295 = vmatpush2.bf16.msra.mxu0 %v7195_v1  ;;  %2336 = vmatpush2.bf16.msra.mxu1 %v7196_v42  ;;  %v7206_v1 = vld [vmem:[#allocation137_spill] sm:$0xff]  ;;  %v7207_v42 = vld [vmem:[#allocation138_spill] sm:$0xff] }
 0x438   :  { %2296 = vmatprep.subr.bf16.mxu0 %v7197_v62  ;;  %2337 = vmatprep.subr.bf16.mxu1 %v7198_v2  ;;  %v7208_v62 = vld [vmem:[#allocation139_spill] sm:$0xff]  ;;  %v7209_v2 = vld [vmem:[#allocation140_spill] sm:$0xff] }
 0x43b   :  { %2297 = vmatpush2.bf16.msra.mxu0 %v7199_v9  ;;  %2338 = vmatpush2.bf16.msra.mxu1 %v7200_v15  ;;  %v7210_v9 = vld [vmem:[#allocation141_spill] sm:$0xff]  ;;  %v7211_v15 = vld [vmem:[#allocation142_spill] sm:$0xff] }
 0x43c   :  { %2298 = vmatprep.subr.bf16.mxu0 %v7201_v53  ;;  %2339 = vmatprep.subr.bf16.mxu1 %v7202_v51  ;;  %v7212_v53 = vld [vmem:[#allocation143_spill] sm:$0xff]  ;;  %v7213_v51 = vld [vmem:[#allocation144_spill] sm:$0xff] }
 0x43f   :  { %2299 = vmatpush2.bf16.msra.mxu0 %v7203_v50  ;;  %2340 = vmatpush2.bf16.msra.mxu1 %v7204_v25  ;;  %v7214_v50 = vld [vmem:[#allocation145_spill] sm:$0xff]  ;;  %v7215_v25 = vld [vmem:[#allocation146_spill] sm:$0xff] }
 0x440   :  { %2300 = vmatprep.subr.bf16.mxu0 %v7205_v41  ;;  %2341 = vmatprep.subr.bf16.mxu1 %v7206_v1  ;;  %v7216_v41 = vld [vmem:[#allocation147_spill] sm:$0xff]  ;;  %v7217_v1 = vld [vmem:[#allocation148_spill] sm:$0xff] }
 0x443   :  { %2301 = vmatpush2.bf16.msra.mxu0 %v7207_v42  ;;  %2342 = vmatpush2.bf16.msra.mxu1 %v7208_v62  ;;  %v7218_v42 = vld [vmem:[#allocation149_spill] sm:$0xff] }
 0x444   :  { %2302 = vmatprep.subr.bf16.mxu0 %v7209_v2  ;;  %2343 = vmatprep.subr.bf16.mxu1 %v7210_v9 }
 0x447   :  { %2303 = vmatpush2.bf16.msra.mxu0 %v7211_v15  ;;  %2344 = vmatpush2.bf16.msra.mxu1 %v7212_v53 }
 0x448   :  { %2304 = vmatprep.subr.bf16.mxu0 %v7213_v51  ;;  %2345 = vmatprep.subr.bf16.mxu1 %v7214_v50 }
 0x44b   :  { %2305 = vmatpush2.bf16.msra.mxu0 %v7215_v25  ;;  %2346 = vmatpush2.bf16.msra.mxu1 %v7216_v41  ;;  %v7222_v41 = vld [vmem:[#allocation27_spill] sm:$0xff] }
 0x44c   :  { %2356 = vmatprep.subr.bf16.mxu0 %v7217_v1  ;;  %2397 = vmatprep.subr.bf16.mxu1 %v7218_v42 }
 0x48e   :  { %v2075_v62 = vpop.f32.mrf.mxu0  ;;  %v2116_v2 = vpop.f32.mrf.mxu1 }
 0x48f   :  { %v2205_v51 = vadd.f32 %v2075_v62, %v7219_v30  ;;  %v2207_v50 = vadd.f32 %v2116_v2, %v7220_v46  ;;  %v7223_v2 = vld [vmem:[#allocation56_spill] sm:$0xff] }
 0x490   :  { %v2077_v63 = vpop.f32.mrf.mxu0  ;;  %v2118_v9 = vpop.f32.mrf.mxu1 }
 0x491   :  { %v2206_v25 = vadd.f32 %v2077_v63, %v7221_v54  ;;  %v4218_v56 = vmul.f32 -1.442695, %v2205_v51  ;;  %v2208_v18 = vadd.f32 %v2118_v9, %v7222_v41  ;;  %v4220_v1 = vmul.f32 -1.442695, %v2207_v50  ;;  %v7224_v51 = vld [vmem:[#allocation57_spill] sm:$0xff] }
 0x492   :  { %v2079_v29 = vpop.f32.mrf.mxu0  ;;  %v2120_v15 = vpop.f32.mrf.mxu1 }
 0x493   :  { %v4219_v16 = vmul.f32 -1.442695, %v2206_v25  ;;  %4399 = vpow2.f32 %v4218_v56  ;;  %v4221_v42 = vmul.f32 -1.442695, %v2208_v18  ;;  %v7226_v25 = vld [vmem:[#allocation59_spill] sm:$0xff] }
 0x494   :  { %v2080_v59 = vpop.f32.mrf.mxu0  ;;  %v2121_v53 = vpop.f32.mrf.mxu1  ;;  %4401 = vpow2.f32 %v4220_v1 }
 0x495   :  { %4403 = vpow2.f32 %v4219_v16 }
 0x496   :  { %4405 = vpow2.f32 %v4221_v42  ;;  %v7225_v42 = vld [vmem:[#allocation58_spill] sm:$0xff] }
 0x4a0   :  { %v4400_v29 = vpop.eup %4399 }
 0x4a1   :  { %v4402_v15 = vpop.eup %4401  ;;  %v2219_v53 = vadd.f32 1.0, %v4400_v29 }
 0x4a2   :  { %v4404_v59 = vpop.eup %4403  ;;  %v2231_v30 = vadd.f32 1.0, %v4402_v15 }
 0x4a3   :  { %v4406_v3 = vpop.eup %4405  ;;  %v2220_v62 = vadd.f32 1.0, %v4404_v59  ;;  %4407 = vrcp.f32 %v2219_v53 }
 0x4a4   :  { %v2232_v46 = vadd.f32 1.0, %v4406_v3  ;;  %4409 = vrcp.f32 %v2231_v30 }
 0x4a5   :  { %4411 = vrcp.f32 %v2220_v62 }
 0x4b0   :  { %v4408_v30 = vpop.eup %4407 }
 0x4ce   :  { %v2157_v54 = vpop.f32.mrf.mxu0  ;;  %v2198_v63 = vpop.f32.mrf.mxu1 }
 0x4cf   :  { %v2209_v9 = vadd.f32 %v2157_v54, %v7223_v2  ;;  %v2211_v56 = vadd.f32 %v2198_v63, %v7224_v51  ;;  %v4410_v54 = vpop.eup %4409 }
 0x4d0   :  { %v2159_v18 = vpop.f32.mrf.mxu0  ;;  %v2200_v16 = vpop.f32.mrf.mxu1 }
 0x4d1   :  { %4413 = vtanh.f32 %v2209_v9  ;;  %v4222_v1 = vmul.f32 -1.442695, %v2211_v56  ;;  %v2210_v50 = vadd.f32 %v2159_v18, %v7225_v42  ;;  %v2212_v41 = vadd.f32 %v2200_v16, %v7226_v25  ;;  %v4412_v62 = vpop.eup %4411 }
 0x4d2   :  { %4415 = vrcp.f32 %v2232_v46  ;;  %v2161_v29 = vpop.f32.mrf.mxu0  ;;  %v2202_v15 = vpop.f32.mrf.mxu1  ;;  %v2251_v9 = vmul.f32 %v4410_v54, %v5637_v33 }
 0x4d3   :  { %4417 = vpow2.f32 %v4222_v1  ;;  %v4223_v3 = vmul.f32 -1.442695, %v2212_v41 }
 0x4d4   :  { %4419 = vtanh.f32 %v2210_v50  ;;  %v2162_v59 = vpop.f32.mrf.mxu0  ;;  %v2203_v53 = vpop.f32.mrf.mxu1 }
 0x4d5   :  { %4421 = vpow2.f32 %v4223_v3 }
 0x4de   :  { %v4414_v63 = vpop.eup %4413 }
 0x4df   :  { %v4416_v2 = vpop.eup %4415  ;;  %v2253_v51 = vmul.f32 %v4414_v63, %v4408_v30  ;;  %v7229_v63 = vld [vmem:[#allocation159_spill] sm:$0xff] }
 0x4e0   :  { %v4418_v56 = vpop.eup %4417  ;;  %v2252_v1 = vmul.f32 %v4416_v2, %v5640_v36  ;;  %v7227_v36 = vld [vmem:[#allocation157_spill] sm:$0xff]  ;;  %v7230_v2 = vld [vmem:[#allocation160_spill] sm:$0xff] }
 0x4e1   :  { %v4420_v18 = vpop.eup %4419  ;;  %v5786_v16 = vadd.f32 %v2253_v51, %v2251_v9  ;;  %v2245_v46 = vadd.f32 1.0, %v4418_v56  ;;  %v7231_v9 = vld [vmem:[#allocation161_spill] sm:$0xff]  ;;  %v7232_v51 = vld [vmem:[#allocation162_spill] sm:$0xff]  ;;  %v7233_v56 = vld [vmem:[#allocation163_spill] sm:$0xff] }
 0x4e2   :  { %v4422_v42 = vpop.eup %4421  ;;  %v2254_v50 = vmul.f32 %v4420_v18, %v4412_v62  ;;  %v7228_v62 = vld [vmem:[#allocation158_spill] sm:$0xff]  ;;  %v7234_v18 = vld [vmem:[#allocation164_spill] sm:$0xff] }
 0x4e3   :  { %4423 = vtanh.f32 %v5786_v16  ;;  %v2246_v25 = vadd.f32 1.0, %v4422_v42  ;;  %v7236_v42 = vld [vmem:[#allocation166_spill] sm:$0xff] }
 0x4e4   :  { %4425 = vrcp.f32 %v2245_v46  ;;  %v5790_v41 = vadd.f32 %v2254_v50, %v2252_v1  ;;  %v7235_v46 = vld [vmem:[#allocation165_spill] sm:$0xff]  ;;  %v7237_v1 = vld [vmem:[#allocation167_spill] sm:$0xff]  ;;  %v7238_v50 = vld [vmem:[#allocation168_spill] sm:$0xff] }
 0x4e5   :  { %4427 = vrcp.f32 %v2246_v25  ;;  %v7239_v25 = vld [vmem:[#allocation169_spill] sm:$0xff] }
 0x4e6   :  { %4429 = vtanh.f32 %v5790_v41 }
 0x4f0   :  { %v4424_v33 = vpop.eup %4423 }
 0x4f1   :  { %v4426_v29 = vpop.eup %4425 }
 0x4f2   :  { %v4428_v15 = vpop.eup %4427  ;;  %v2259_v59 = vmul.f32 %v4426_v29, %v4424_v33  ;;  %v7240_v33 = vld [vmem:[#allocation170_spill] sm:$0xff]  ;;  %v7241_v29 = vld [vmem:[#allocation171_spill] sm:$0xff] }
 0x4f3   :  { %v4430_v3 = vpop.eup %4429 }
 0x4f4   :  { %v2260_v53 = vmul.f32 %v4430_v3, %v4428_v15  ;;  %v5793_v54 = vpack.c.bf16 %v2259_v59, %v2259_v59  ;;  %v7242_v15 = vld [vmem:[#allocation172_spill] sm:$0xff]  ;;  %v7243_v3 = vld [vmem:[#allocation173_spill] sm:$0xff]  ;;  %v7244_v59 = vld [vmem:[#allocation174_spill] sm:$0xff] }
 0x4f6   :  { %v2273_v30 = vpack.c.bf16 %v2260_v53, %v2260_v53  ;;  %v7245_v53 = vld [vmem:[#allocation175_spill] sm:$0xff] }
 0x4f8   :  { %2306 = vmatprep.mubr.bf16.mxu0 %v2273_v30  ;;  %2347 = vmatprep.mubr.bf16.mxu1 %v2273_v30 }
 0x4f9   :  { %2307 = vmatmul.mubr.bf16.vlgmr.msra.gmra.mxu0 %v5793_v54  ;;  %2348 = vmatmul.mubr.bf16.vlgmr.msra.gmra.mxu1 %v5793_v54 }
 0x4fa   :  { %2357 = vmatpush1.bf16.msra.mxu0 %v7134_v55  ;;  %2398 = vmatpush1.bf16.msra.mxu1 %v7135_v6 }
 0x4fb   :  { %2388 = vmatprep.mubr.bf16.mxu0 %v2273_v30  ;;  %2429 = vmatprep.mubr.bf16.mxu1 %v2273_v30  ;;  %v7246_v30 = vld [vmem:[#allocation176_spill] sm:$0xff] }
 0x4fc   :  { %2358 = vmatprep.subr.bf16.mxu0 %v7136_v12  ;;  %2399 = vmatprep.subr.bf16.mxu1 %v7137_v47 }
 0x4fe   :  { %2359 = vmatpush1.bf16.msra.mxu0 %v7138_v11  ;;  %2400 = vmatpush1.bf16.msra.mxu1 %v7139_v38 }
 0x4ff   :  { %2360 = vmatprep.subr.bf16.mxu0 %v7140_v58  ;;  %2401 = vmatprep.subr.bf16.mxu1 %v7227_v36 }
 0x502   :  { %2361 = vmatpush1.bf16.msra.mxu0 %v7228_v62  ;;  %2402 = vmatpush1.bf16.msra.mxu1 %v7229_v63 }
 0x503   :  { %2362 = vmatprep.subr.bf16.mxu0 %v7230_v2  ;;  %2403 = vmatprep.subr.bf16.mxu1 %v7231_v9 }
 0x506   :  { %2363 = vmatpush1.bf16.msra.mxu0 %v7232_v51  ;;  %2404 = vmatpush1.bf16.msra.mxu1 %v7233_v56 }
 0x507   :  { %2364 = vmatprep.subr.bf16.mxu0 %v7234_v18  ;;  %2405 = vmatprep.subr.bf16.mxu1 %v7235_v46 }
 0x50a   :  { %2365 = vmatpush1.bf16.msra.mxu0 %v7236_v42  ;;  %2406 = vmatpush1.bf16.msra.mxu1 %v7237_v1  ;;  %v7247_v42 = vld [vmem:[#allocation177_spill] sm:$0xff]  ;;  %v7248_v1 = vld [vmem:[#allocation178_spill] sm:$0xff] }
 0x50b   :  { %2366 = vmatprep.subr.bf16.mxu0 %v7238_v50  ;;  %2407 = vmatprep.subr.bf16.mxu1 %v7239_v25  ;;  %v7249_v50 = vld [vmem:[#allocation179_spill] sm:$0xff]  ;;  %v7250_v25 = vld [vmem:[#allocation180_spill] sm:$0xff] }
 0x50e   :  { %2367 = vmatpush1.bf16.msra.mxu0 %v7240_v33  ;;  %2408 = vmatpush1.bf16.msra.mxu1 %v7241_v29  ;;  %v7251_v33 = vld [vmem:[#allocation181_spill] sm:$0xff]  ;;  %v7252_v29 = vld [vmem:[#allocation182_spill] sm:$0xff] }
 0x50f   :  { %2368 = vmatprep.subr.bf16.mxu0 %v7242_v15  ;;  %2409 = vmatprep.subr.bf16.mxu1 %v7243_v3  ;;  %v7253_v15 = vld [vmem:[#allocation183_spill] sm:$0xff]  ;;  %v7254_v3 = vld [vmem:[#allocation184_spill] sm:$0xff] }
 0x512   :  { %2369 = vmatpush1.bf16.msra.mxu0 %v7244_v59  ;;  %2410 = vmatpush1.bf16.msra.mxu1 %v7245_v53  ;;  %v7255_v59 = vld [vmem:[#allocation185_spill] sm:$0xff]  ;;  %v7256_v53 = vld [vmem:[#allocation186_spill] sm:$0xff] }
 0x513   :  { %2370 = vmatprep.subr.bf16.mxu0 %v7246_v30  ;;  %2411 = vmatprep.subr.bf16.mxu1 %v7247_v42 }
 0x516   :  { %2371 = vmatpush1.bf16.msra.mxu0 %v7248_v1  ;;  %2412 = vmatpush1.bf16.msra.mxu1 %v7249_v50  ;;  %v7257_v50 = vld [vmem:[#allocation190_spill] sm:$0xff] }
 0x517   :  { %2372 = vmatprep.subr.bf16.mxu0 %v7250_v25  ;;  %2413 = vmatprep.subr.bf16.mxu1 %v7251_v33 }
 0x51a   :  { %2373 = vmatpush2.bf16.msra.mxu0 %v7252_v29  ;;  %2414 = vmatpush2.bf16.msra.mxu1 %v7253_v15 }
 0x51b   :  { %2374 = vmatprep.subr.bf16.mxu0 %v7254_v3  ;;  %2415 = vmatprep.subr.bf16.mxu1 %v7255_v59 }
 0x51e   :  { %2375 = vmatpush2.bf16.msra.mxu0 %v7256_v53  ;;  %2416 = vmatpush2.bf16.msra.mxu1 %v7171_v43 }
 0x51f   :  { %2376 = vmatprep.subr.bf16.mxu0 %v7172_v40  ;;  %2417 = vmatprep.subr.bf16.mxu1 %v7173_v24 }
 0x522   :  { %2377 = vmatpush2.bf16.msra.mxu0 %v7257_v50  ;;  %2418 = vmatpush2.bf16.msra.mxu1 %v7175_v32 }
 0x523   :  { %2378 = vmatprep.subr.bf16.mxu0 %v7176_v20  ;;  %2419 = vmatprep.subr.bf16.mxu1 %v7177_v7 }
 0x526   :  { %2379 = vmatpush2.bf16.msra.mxu0 %v7178_v37  ;;  %2420 = vmatpush2.bf16.msra.mxu1 %v7179_v45 }
 0x527   :  { %2380 = vmatprep.subr.bf16.mxu0 %v7180_v21  ;;  %2421 = vmatprep.subr.bf16.mxu1 %v7181_v27 }
 0x52a   :  { %2381 = vmatpush2.bf16.msra.mxu0 %v5516_v17  ;;  %2422 = vmatpush2.bf16.msra.mxu1 %v5520_v52 }
 0x52b   :  { %2382 = vmatprep.subr.bf16.mxu0 %v5522_v35  ;;  %2423 = vmatprep.subr.bf16.mxu1 %v7182_v61 }
 0x52e   :  { %2383 = vmatpush2.bf16.msra.mxu0 %v5528_v44  ;;  %2424 = vmatpush2.bf16.msra.mxu1 %v5532_v39 }
 0x52f   :  { %2384 = vmatprep.subr.bf16.mxu0 %v5534_v14  ;;  %2425 = vmatprep.subr.bf16.mxu1 %v5537_v10 }
 0x532   :  { %2385 = vmatpush2.bf16.msra.mxu0 %v5540_v26  ;;  %2426 = vmatpush2.bf16.msra.mxu1 %v5544_v5  ;;  %v7315_v5 = vld [vmem:[#allocation29_spill] sm:$0xff]  ;;  %v7316_v26 = vld [vmem:[#allocation30_spill] sm:$0xff] }
 0x533   :  { %2386 = vmatprep.subr.bf16.mxu0 %v5546_v31  ;;  %2427 = vmatprep.subr.bf16.mxu1 %v5549_v0  ;;  %v7314_v31 = vld [vmem:[#allocation28_spill] sm:$0xff] }
 0x536   :  { %2387 = vmatpush2.bf16.msra.mxu0 %v5552_v60  ;;  %2428 = vmatpush2.bf16.msra.mxu1 %v5556_v13 }
 0x537   :  { %2507 = vmatprep.subr.bf16.mxu0 %v5173_v48  ;;  %2548 = vmatprep.subr.bf16.mxu1 %v5177_v34  ;;  %v7258_v34 = vld [vmem:[#allocation94_spill] sm:$0xff]  ;;  %v7259_v48 = vld [vmem:[#allocation95_spill] sm:$0xff] }
 0x539   :  { %2389 = vmatmul.mubr.bf16.vlgmr.msra.gmra.mxu0 %v5793_v54  ;;  %2430 = vmatmul.mubr.bf16.vlgmr.msra.gmra.mxu1 %v5793_v54  ;;  %v7260_v54 = vld [vmem:[#allocation96_spill] sm:$0xff] }
 0x53a   :  { %2508 = vmatpush1.bf16.msra.mxu0 %v5175_v22  ;;  %2549 = vmatpush1.bf16.msra.mxu1 %v5179_v57  ;;  %v7261_v22 = vld [vmem:[#allocation97_spill] sm:$0xff]  ;;  %v7262_v57 = vld [vmem:[#allocation98_spill] sm:$0xff] }
 0x53b   :  { %2509 = vmatprep.subr.bf16.mxu0 %v5181_v8  ;;  %2550 = vmatprep.subr.bf16.mxu1 %v5184_v28  ;;  %v7263_v8 = vld [vmem:[#allocation99_spill] sm:$0xff]  ;;  %v7264_v28 = vld [vmem:[#allocation100_spill] sm:$0xff] }
 0x53e   :  { %2510 = vmatpush1.bf16.msra.mxu0 %v5188_v23  ;;  %2551 = vmatpush1.bf16.msra.mxu1 %v5192_v19  ;;  %v7265_v23 = vld [vmem:[#allocation101_spill] sm:$0xff]  ;;  %v7266_v19 = vld [vmem:[#allocation102_spill] sm:$0xff] }
 0x53f   :  { %2511 = vmatprep.subr.bf16.mxu0 %v5194_v49  ;;  %2552 = vmatprep.subr.bf16.mxu1 %v5197_v4  ;;  %v7267_v49 = vld [vmem:[#allocation103_spill] sm:$0xff]  ;;  %v7268_v4 = vld [vmem:[#allocation104_spill] sm:$0xff] }
 0x542   :  { %2512 = vmatpush1.bf16.msra.mxu0 %v7258_v34  ;;  %2553 = vmatpush1.bf16.msra.mxu1 %v7259_v48  ;;  %v7269_v34 = vld [vmem:[#allocation105_spill] sm:$0xff]  ;;  %v7270_v48 = vld [vmem:[#allocation106_spill] sm:$0xff] }
 0x543   :  { %2513 = vmatprep.subr.bf16.mxu0 %v7260_v54  ;;  %2554 = vmatprep.subr.bf16.mxu1 %v7261_v22  ;;  %v7271_v54 = vld [vmem:[#allocation107_spill] sm:$0xff]  ;;  %v7272_v22 = vld [vmem:[#allocation108_spill] sm:$0xff] }
 0x546   :  { %2514 = vmatpush1.bf16.msra.mxu0 %v7262_v57  ;;  %2555 = vmatpush1.bf16.msra.mxu1 %v7263_v8  ;;  %v7273_v57 = vld [vmem:[#allocation109_spill] sm:$0xff]  ;;  %v7274_v8 = vld [vmem:[#allocation110_spill] sm:$0xff] }
 0x547   :  { %2515 = vmatprep.subr.bf16.mxu0 %v7264_v28  ;;  %2556 = vmatprep.subr.bf16.mxu1 %v7265_v23  ;;  %v7275_v28 = vld [vmem:[#allocation111_spill] sm:$0xff]  ;;  %v7276_v23 = vld [vmem:[#allocation112_spill] sm:$0xff] }
 0x54a   :  { %2516 = vmatpush1.bf16.msra.mxu0 %v7266_v19  ;;  %2557 = vmatpush1.bf16.msra.mxu1 %v7267_v49  ;;  %v7277_v19 = vld [vmem:[#allocation113_spill] sm:$0xff]  ;;  %v7278_v49 = vld [vmem:[#allocation114_spill] sm:$0xff] }
 0x54b   :  { %2517 = vmatprep.subr.bf16.mxu0 %v7268_v4  ;;  %2558 = vmatprep.subr.bf16.mxu1 %v7269_v34  ;;  %v7279_v4 = vld [vmem:[#allocation115_spill] sm:$0xff]  ;;  %v7280_v34 = vld [vmem:[#allocation116_spill] sm:$0xff] }
 0x54e   :  { %2518 = vmatpush1.bf16.msra.mxu0 %v7270_v48  ;;  %2559 = vmatpush1.bf16.msra.mxu1 %v7271_v54  ;;  %v7281_v48 = vld [vmem:[#allocation117_spill] sm:$0xff]  ;;  %v7282_v54 = vld [vmem:[#allocation118_spill] sm:$0xff] }
 0x54f   :  { %2519 = vmatprep.subr.bf16.mxu0 %v7272_v22  ;;  %2560 = vmatprep.subr.bf16.mxu1 %v7273_v57  ;;  %v7283_v22 = vld [vmem:[#allocation119_spill] sm:$0xff]  ;;  %v7284_v57 = vld [vmem:[#allocation120_spill] sm:$0xff] }
 0x552   :  { %2520 = vmatpush1.bf16.msra.mxu0 %v7274_v8  ;;  %2561 = vmatpush1.bf16.msra.mxu1 %v7275_v28  ;;  %v7285_v8 = vld [vmem:[#allocation121_spill] sm:$0xff]  ;;  %v7286_v28 = vld [vmem:[#allocation122_spill] sm:$0xff] }
 0x553   :  { %2521 = vmatprep.subr.bf16.mxu0 %v7276_v23  ;;  %2562 = vmatprep.subr.bf16.mxu1 %v7277_v19  ;;  %v7287_v23 = vld [vmem:[#allocation123_spill] sm:$0xff]  ;;  %v7288_v19 = vld [vmem:[#allocation124_spill] sm:$0xff] }
 0x556   :  { %2522 = vmatpush1.bf16.msra.mxu0 %v7278_v49  ;;  %2563 = vmatpush1.bf16.msra.mxu1 %v7279_v4  ;;  %v7289_v49 = vld [vmem:[#allocation125_spill] sm:$0xff]  ;;  %v7290_v4 = vld [vmem:[#allocation126_spill] sm:$0xff] }
 0x557   :  { %2523 = vmatprep.subr.bf16.mxu0 %v7280_v34  ;;  %2564 = vmatprep.subr.bf16.mxu1 %v7281_v48  ;;  %v7291_v34 = vld [vmem:[#allocation127_spill] sm:$0xff]  ;;  %v7292_v48 = vld [vmem:[#allocation128_spill] sm:$0xff] }
 0x55a   :  { %2524 = vmatpush2.bf16.msra.mxu0 %v7282_v54  ;;  %2565 = vmatpush2.bf16.msra.mxu1 %v7283_v22  ;;  %v7293_v54 = vld [vmem:[#allocation129_spill] sm:$0xff]  ;;  %v7294_v22 = vld [vmem:[#allocation130_spill] sm:$0xff] }
 0x55b   :  { %2525 = vmatprep.subr.bf16.mxu0 %v7284_v57  ;;  %2566 = vmatprep.subr.bf16.mxu1 %v7285_v8  ;;  %v7295_v57 = vld [vmem:[#allocation131_spill] sm:$0xff]  ;;  %v7296_v8 = vld [vmem:[#allocation132_spill] sm:$0xff] }
 0x55e   :  { %2526 = vmatpush2.bf16.msra.mxu0 %v7286_v28  ;;  %2567 = vmatpush2.bf16.msra.mxu1 %v7287_v23  ;;  %v7297_v28 = vld [vmem:[#allocation133_spill] sm:$0xff]  ;;  %v7298_v23 = vld [vmem:[#allocation134_spill] sm:$0xff] }
 0x55f   :  { %2527 = vmatprep.subr.bf16.mxu0 %v7288_v19  ;;  %2568 = vmatprep.subr.bf16.mxu1 %v7289_v49  ;;  %v7299_v19 = vld [vmem:[#allocation135_spill] sm:$0xff]  ;;  %v7300_v49 = vld [vmem:[#allocation136_spill] sm:$0xff] }
 0x562   :  { %2528 = vmatpush2.bf16.msra.mxu0 %v7290_v4  ;;  %2569 = vmatpush2.bf16.msra.mxu1 %v7291_v34  ;;  %v7301_v4 = vld [vmem:[#allocation137_spill] sm:$0xff]  ;;  %v7302_v34 = vld [vmem:[#allocation138_spill] sm:$0xff] }
 0x563   :  { %2529 = vmatprep.subr.bf16.mxu0 %v7292_v48  ;;  %2570 = vmatprep.subr.bf16.mxu1 %v7293_v54  ;;  %v7303_v48 = vld [vmem:[#allocation139_spill] sm:$0xff]  ;;  %v7304_v54 = vld [vmem:[#allocation140_spill] sm:$0xff] }
 0x566   :  { %2530 = vmatpush2.bf16.msra.mxu0 %v7294_v22  ;;  %2571 = vmatpush2.bf16.msra.mxu1 %v7295_v57  ;;  %v7305_v22 = vld [vmem:[#allocation141_spill] sm:$0xff]  ;;  %v7306_v57 = vld [vmem:[#allocation142_spill] sm:$0xff] }
 0x567   :  { %2531 = vmatprep.subr.bf16.mxu0 %v7296_v8  ;;  %2572 = vmatprep.subr.bf16.mxu1 %v7297_v28  ;;  %v7307_v8 = vld [vmem:[#allocation143_spill] sm:$0xff]  ;;  %v7308_v28 = vld [vmem:[#allocation144_spill] sm:$0xff] }
 0x56a   :  { %2532 = vmatpush2.bf16.msra.mxu0 %v7298_v23  ;;  %2573 = vmatpush2.bf16.msra.mxu1 %v7299_v19  ;;  %v7309_v23 = vld [vmem:[#allocation145_spill] sm:$0xff]  ;;  %v7310_v19 = vld [vmem:[#allocation146_spill] sm:$0xff] }
 0x56b   :  { %2533 = vmatprep.subr.bf16.mxu0 %v7300_v49  ;;  %2574 = vmatprep.subr.bf16.mxu1 %v7301_v4  ;;  %v7311_v49 = vld [vmem:[#allocation147_spill] sm:$0xff]  ;;  %v7312_v4 = vld [vmem:[#allocation148_spill] sm:$0xff] }
 0x56e   :  { %2534 = vmatpush2.bf16.msra.mxu0 %v7302_v34  ;;  %2575 = vmatpush2.bf16.msra.mxu1 %v7303_v48  ;;  %v7313_v34 = vld [vmem:[#allocation149_spill] sm:$0xff] }
 0x56f   :  { %2535 = vmatprep.subr.bf16.mxu0 %v7304_v54  ;;  %2576 = vmatprep.subr.bf16.mxu1 %v7305_v22 }
 0x572   :  { %2536 = vmatpush2.bf16.msra.mxu0 %v7306_v57  ;;  %2577 = vmatpush2.bf16.msra.mxu1 %v7307_v8 }
 0x573   :  { %2537 = vmatprep.subr.bf16.mxu0 %v7308_v28  ;;  %2578 = vmatprep.subr.bf16.mxu1 %v7309_v23 }
 0x576   :  { %2538 = vmatpush2.bf16.msra.mxu0 %v7310_v19  ;;  %2579 = vmatpush2.bf16.msra.mxu1 %v7311_v49  ;;  %v7317_v49 = vld [vmem:[#allocation31_spill] sm:$0xff] }
 0x577   :  { %2589 = vmatprep.subr.bf16.mxu0 %v7312_v4  ;;  %2630 = vmatprep.subr.bf16.mxu1 %v7313_v34 }
 0x5b9   :  { %v2308_v48 = vpop.f32.mrf.mxu0  ;;  %v2349_v54 = vpop.f32.mrf.mxu1 }
 0x5ba   :  { %v2438_v28 = vadd.f32 %v2308_v48, %v7314_v31  ;;  %v2440_v23 = vadd.f32 %v2349_v54, %v7315_v5 }
 0x5bb   :  { %v2310_v13 = vpop.f32.mrf.mxu0  ;;  %v2351_v22 = vpop.f32.mrf.mxu1 }
 0x5bc   :  { %v2439_v19 = vadd.f32 %v2310_v13, %v7316_v26  ;;  %v4224_v10 = vmul.f32 -1.442695, %v2438_v28  ;;  %v2441_v14 = vadd.f32 %v2351_v22, %v7317_v49  ;;  %v4226_v4 = vmul.f32 -1.442695, %v2440_v23  ;;  %v7318_v22 = vld [vmem:[#allocation60_spill] sm:$0xff]  ;;  %v7321_v13 = vld [vmem:[#allocation63_spill] sm:$0xff] }
 0x5bd   :  { %v2312_v60 = vpop.f32.mrf.mxu0  ;;  %v2353_v57 = vpop.f32.mrf.mxu1 }
 0x5be   :  { %v4225_v39 = vmul.f32 -1.442695, %v2439_v19  ;;  %4431 = vpow2.f32 %v4224_v10  ;;  %v4227_v34 = vmul.f32 -1.442695, %v2441_v14  ;;  %v7319_v19 = vld [vmem:[#allocation61_spill] sm:$0xff]  ;;  %v7320_v14 = vld [vmem:[#allocation62_spill] sm:$0xff] }
 0x5bf   :  { %v2313_v0 = vpop.f32.mrf.mxu0  ;;  %v2354_v8 = vpop.f32.mrf.mxu1  ;;  %4433 = vpow2.f32 %v4226_v4 }
 0x5c0   :  { %4435 = vpow2.f32 %v4225_v39 }
 0x5c1   :  { %4437 = vpow2.f32 %v4227_v34 }
 0x5cb   :  { %v4432_v60 = vpop.eup %4431 }
 0x5cc   :  { %v4434_v57 = vpop.eup %4433  ;;  %v2452_v8 = vadd.f32 1.0, %v4432_v60 }
 0x5cd   :  { %v4436_v0 = vpop.eup %4435  ;;  %v2464_v48 = vadd.f32 1.0, %v4434_v57 }
 0x5ce   :  { %v4438_v44 = vpop.eup %4437  ;;  %v2453_v31 = vadd.f32 1.0, %v4436_v0  ;;  %4439 = vrcp.f32 %v2452_v8 }
 0x5cf   :  { %v2465_v5 = vadd.f32 1.0, %v4438_v44  ;;  %4441 = vrcp.f32 %v2464_v48 }
 0x5d0   :  { %4443 = vrcp.f32 %v2453_v31 }
 0x5db   :  { %v4440_v48 = vpop.eup %4439 }
 0x5f9   :  { %v2390_v26 = vpop.f32.mrf.mxu0  ;;  %v2431_v28 = vpop.f32.mrf.mxu1 }
 0x5fa   :  { %v2442_v23 = vadd.f32 %v2390_v26, %v7318_v22  ;;  %v2444_v49 = vadd.f32 %v2431_v28, %v7319_v19  ;;  %v4442_v26 = vpop.eup %4441 }
 0x5fb   :  { %v2392_v4 = vpop.f32.mrf.mxu0  ;;  %v2433_v39 = vpop.f32.mrf.mxu1 }
 0x5fc   :  { %4445 = vtanh.f32 %v2442_v23  ;;  %v4228_v34 = vmul.f32 -1.442695, %v2444_v49  ;;  %v2443_v10 = vadd.f32 %v2392_v4, %v7320_v14  ;;  %v2445_v54 = vadd.f32 %v2433_v39, %v7321_v13  ;;  %v4444_v31 = vpop.eup %4443 }
 0x5fd   :  { %4447 = vrcp.f32 %v2465_v5  ;;  %v2394_v60 = vpop.f32.mrf.mxu0  ;;  %v2435_v57 = vpop.f32.mrf.mxu1  ;;  %v2484_v23 = vmul.f32 %v4442_v26, %v5786_v16 }
 0x5fe   :  { %4449 = vpow2.f32 %v4228_v34  ;;  %v4229_v44 = vmul.f32 -1.442695, %v2445_v54 }
 0x5ff   :  { %4451 = vtanh.f32 %v2443_v10  ;;  %v2395_v0 = vpop.f32.mrf.mxu0  ;;  %v2436_v8 = vpop.f32.mrf.mxu1 }
 0x600   :  { %4453 = vpow2.f32 %v4229_v44 }
 0x609   :  { %v4446_v28 = vpop.eup %4445 }
 0x60a   :  { %v4448_v22 = vpop.eup %4447  ;;  %v2486_v19 = vmul.f32 %v4446_v28, %v4440_v48  ;;  %v7324_v28 = vld [vmem:[#allocation168_spill] sm:$0xff] }
 0x60b   :  { %v4450_v49 = vpop.eup %4449  ;;  %v2485_v34 = vmul.f32 %v4448_v22, %v5790_v41  ;;  %v7322_v41 = vld [vmem:[#allocation166_spill] sm:$0xff]  ;;  %v7325_v22 = vld [vmem:[#allocation169_spill] sm:$0xff] }
 0x60c   :  { %v4452_v4 = vpop.eup %4451  ;;  %v5936_v39 = vadd.f32 %v2486_v19, %v2484_v23  ;;  %v2478_v5 = vadd.f32 1.0, %v4450_v49  ;;  %v7326_v23 = vld [vmem:[#allocation170_spill] sm:$0xff]  ;;  %v7327_v19 = vld [vmem:[#allocation171_spill] sm:$0xff]  ;;  %v7328_v49 = vld [vmem:[#allocation172_spill] sm:$0xff] }
 0x60d   :  { %v4454_v14 = vpop.eup %4453  ;;  %v2487_v10 = vmul.f32 %v4452_v4, %v4444_v31  ;;  %v7323_v31 = vld [vmem:[#allocation167_spill] sm:$0xff]  ;;  %v7329_v4 = vld [vmem:[#allocation173_spill] sm:$0xff] }
 0x60e   :  { %4455 = vtanh.f32 %v5936_v39  ;;  %v2479_v13 = vadd.f32 1.0, %v4454_v14  ;;  %v7331_v14 = vld [vmem:[#allocation175_spill] sm:$0xff] }
 0x60f   :  { %4457 = vrcp.f32 %v2478_v5  ;;  %v5940_v54 = vadd.f32 %v2487_v10, %v2485_v34  ;;  %v7330_v5 = vld [vmem:[#allocation174_spill] sm:$0xff]  ;;  %v7332_v34 = vld [vmem:[#allocation179_spill] sm:$0xff] }
 0x610   :  { %4459 = vrcp.f32 %v2479_v13  ;;  %v7333_v10 = vld [vmem:[#allocation202_spill] sm:$0xff]  ;;  %v7334_v13 = vld [vmem:[#allocation203_spill] sm:$0xff] }
 0x611   :  { %4461 = vtanh.f32 %v5940_v54 }
 0x61b   :  { %v4456_v16 = vpop.eup %4455 }
 0x61c   :  { %v4458_v60 = vpop.eup %4457 }
 0x61d   :  { %v4460_v57 = vpop.eup %4459  ;;  %v2492_v0 = vmul.f32 %v4458_v60, %v4456_v16  ;;  %v7335_v16 = vld [vmem:[#allocation204_spill] sm:$0xff]  ;;  %v7336_v60 = vld [vmem:[#allocation205_spill] sm:$0xff] }
 0x61e   :  { %v4462_v44 = vpop.eup %4461 }
 0x61f   :  { %v2493_v8 = vmul.f32 %v4462_v44, %v4460_v57  ;;  %v5943_v26 = vpack.c.bf16 %v2492_v0, %v2492_v0  ;;  %v7337_v57 = vld [vmem:[#allocation206_spill] sm:$0xff]  ;;  %v7338_v44 = vld [vmem:[#allocation207_spill] sm:$0xff]  ;;  %v7339_v0 = vld [vmem:[#allocation208_spill] sm:$0xff] }
 0x621   :  { %v2506_v48 = vpack.c.bf16 %v2493_v8, %v2493_v8  ;;  %v7340_v8 = vld [vmem:[#allocation209_spill] sm:$0xff] }
 0x623   :  { %2539 = vmatprep.mubr.bf16.mxu0 %v2506_v48  ;;  %2580 = vmatprep.mubr.bf16.mxu1 %v2506_v48 }
 0x624   :  { %2540 = vmatmul.mubr.bf16.vlgmr.msra.gmra.mxu0 %v5943_v26  ;;  %2581 = vmatmul.mubr.bf16.vlgmr.msra.gmra.mxu1 %v5943_v26 }
 0x625   :  { %2590 = vmatpush1.bf16.msra.mxu0 %v7134_v55  ;;  %2631 = vmatpush1.bf16.msra.mxu1 %v7135_v6 }
 0x626   :  { %2621 = vmatprep.mubr.bf16.mxu0 %v2506_v48  ;;  %2662 = vmatprep.mubr.bf16.mxu1 %v2506_v48  ;;  %v7341_v48 = vld [vmem:[#allocation210_spill] sm:$0xff] }
 0x627   :  { %2591 = vmatprep.subr.bf16.mxu0 %v7136_v12  ;;  %2632 = vmatprep.subr.bf16.mxu1 %v7137_v47 }
 0x629   :  { %2592 = vmatpush1.bf16.msra.mxu0 %v7138_v11  ;;  %2633 = vmatpush1.bf16.msra.mxu1 %v7139_v38 }
 0x62a   :  { %2593 = vmatprep.subr.bf16.mxu0 %v7140_v58  ;;  %2634 = vmatprep.subr.bf16.mxu1 %v7227_v36 }
 0x62d   :  { %2594 = vmatpush1.bf16.msra.mxu0 %v7228_v62  ;;  %2635 = vmatpush1.bf16.msra.mxu1 %v7229_v63 }
 0x62e   :  { %2595 = vmatprep.subr.bf16.mxu0 %v7230_v2  ;;  %2636 = vmatprep.subr.bf16.mxu1 %v7231_v9 }
 0x631   :  { %2596 = vmatpush1.bf16.msra.mxu0 %v7232_v51  ;;  %2637 = vmatpush1.bf16.msra.mxu1 %v7233_v56 }
 0x632   :  { %2597 = vmatprep.subr.bf16.mxu0 %v7234_v18  ;;  %2638 = vmatprep.subr.bf16.mxu1 %v7235_v46 }
 0x635   :  { %2598 = vmatpush1.bf16.msra.mxu0 %v7322_v41  ;;  %2639 = vmatpush1.bf16.msra.mxu1 %v7323_v31 }
 0x636   :  { %2599 = vmatprep.subr.bf16.mxu0 %v7324_v28  ;;  %2640 = vmatprep.subr.bf16.mxu1 %v7325_v22 }
 0x639   :  { %2600 = vmatpush1.bf16.msra.mxu0 %v7326_v23  ;;  %2641 = vmatpush1.bf16.msra.mxu1 %v7327_v19 }
 0x63a   :  { %2601 = vmatprep.subr.bf16.mxu0 %v7328_v49  ;;  %2642 = vmatprep.subr.bf16.mxu1 %v7329_v4 }
 0x63d   :  { %2602 = vmatpush1.bf16.msra.mxu0 %v7330_v5  ;;  %2643 = vmatpush1.bf16.msra.mxu1 %v7331_v14 }
 0x63e   :  { %2603 = vmatprep.subr.bf16.mxu0 %v7246_v30  ;;  %2644 = vmatprep.subr.bf16.mxu1 %v7247_v42 }
 0x641   :  { %2604 = vmatpush1.bf16.msra.mxu0 %v7248_v1  ;;  %2645 = vmatpush1.bf16.msra.mxu1 %v7332_v34 }
 0x642   :  { %2605 = vmatprep.subr.bf16.mxu0 %v7250_v25  ;;  %2646 = vmatprep.subr.bf16.mxu1 %v7251_v33 }
 0x645   :  { %2606 = vmatpush2.bf16.msra.mxu0 %v7252_v29  ;;  %2647 = vmatpush2.bf16.msra.mxu1 %v7253_v15 }
 0x646   :  { %2607 = vmatprep.subr.bf16.mxu0 %v7254_v3  ;;  %2648 = vmatprep.subr.bf16.mxu1 %v7255_v59 }
 0x649   :  { %2608 = vmatpush2.bf16.msra.mxu0 %v7256_v53  ;;  %2649 = vmatpush2.bf16.msra.mxu1 %v7171_v43 }
 0x64a   :  { %2609 = vmatprep.subr.bf16.mxu0 %v7172_v40  ;;  %2650 = vmatprep.subr.bf16.mxu1 %v7173_v24 }
 0x64d   :  { %2610 = vmatpush2.bf16.msra.mxu0 %v7257_v50  ;;  %2651 = vmatpush2.bf16.msra.mxu1 %v7175_v32 }
 0x64e   :  { %2611 = vmatprep.subr.bf16.mxu0 %v7176_v20  ;;  %2652 = vmatprep.subr.bf16.mxu1 %v7177_v7 }
 0x651   :  { %2612 = vmatpush2.bf16.msra.mxu0 %v7178_v37  ;;  %2653 = vmatpush2.bf16.msra.mxu1 %v7179_v45  ;;  %v7411_v45 = vld [vmem:[#allocation34_spill] sm:$0xff] }
 0x652   :  { %2613 = vmatprep.subr.bf16.mxu0 %v7180_v21  ;;  %2654 = vmatprep.subr.bf16.mxu1 %v7181_v27  ;;  %v7409_v27 = vld [vmem:[#allocation32_spill] sm:$0xff]  ;;  %v7410_v21 = vld [vmem:[#allocation33_spill] sm:$0xff] }
 0x655   :  { %2614 = vmatpush2.bf16.msra.mxu0 %v5516_v17  ;;  %2655 = vmatpush2.bf16.msra.mxu1 %v5520_v52 }
 0x656   :  { %2615 = vmatprep.subr.bf16.mxu0 %v5522_v35  ;;  %2656 = vmatprep.subr.bf16.mxu1 %v7182_v61  ;;  %v7342_v35 = vld [vmem:[#allocation211_spill] sm:$0xff]  ;;  %v7343_v61 = vld [vmem:[#allocation84_spill] sm:$0xff] }
 0x659   :  { %2616 = vmatpush2.bf16.msra.mxu0 %v7333_v10  ;;  %2657 = vmatpush2.bf16.msra.mxu1 %v7334_v13  ;;  %v7344_v10 = vld [vmem:[#allocation86_spill] sm:$0xff] }
 0x65a   :  { %2617 = vmatprep.subr.bf16.mxu0 %v7335_v16  ;;  %2658 = vmatprep.subr.bf16.mxu1 %v7336_v60  ;;  %v7345_v60 = vld [vmem:[#allocation85_spill] sm:$0xff]  ;;  %v7354_v16 = vld [vmem:[#allocation95_spill] sm:$0xff] }
 0x65d   :  { %2618 = vmatpush2.bf16.msra.mxu0 %v7337_v57  ;;  %2659 = vmatpush2.bf16.msra.mxu1 %v7338_v44  ;;  %v7346_v57 = vld [vmem:[#allocation87_spill] sm:$0xff]  ;;  %v7347_v44 = vld [vmem:[#allocation88_spill] sm:$0xff] }
 0x65e   :  { %2619 = vmatprep.subr.bf16.mxu0 %v7339_v0  ;;  %2660 = vmatprep.subr.bf16.mxu1 %v7340_v8  ;;  %v7348_v0 = vld [vmem:[#allocation89_spill] sm:$0xff]  ;;  %v7349_v8 = vld [vmem:[#allocation90_spill] sm:$0xff] }
 0x661   :  { %2620 = vmatpush2.bf16.msra.mxu0 %v7341_v48  ;;  %2661 = vmatpush2.bf16.msra.mxu1 %v7342_v35  ;;  %v7350_v48 = vld [vmem:[#allocation91_spill] sm:$0xff]  ;;  %v7351_v35 = vld [vmem:[#allocation92_spill] sm:$0xff] }
 0x662   :  { %2740 = vmatprep.subr.bf16.mxu0 %v7343_v61  ;;  %2781 = vmatprep.subr.bf16.mxu1 %v7344_v10  ;;  %v7352_v61 = vld [vmem:[#allocation93_spill] sm:$0xff]  ;;  %v7353_v10 = vld [vmem:[#allocation94_spill] sm:$0xff] }
 0x664   :  { %2622 = vmatmul.mubr.bf16.vlgmr.msra.gmra.mxu0 %v5943_v26  ;;  %2663 = vmatmul.mubr.bf16.vlgmr.msra.gmra.mxu1 %v5943_v26  ;;  %v7355_v26 = vld [vmem:[#allocation96_spill] sm:$0xff] }
 0x665   :  { %2741 = vmatpush1.bf16.msra.mxu0 %v7345_v60  ;;  %2782 = vmatpush1.bf16.msra.mxu1 %v7346_v57  ;;  %v7356_v60 = vld [vmem:[#allocation97_spill] sm:$0xff]  ;;  %v7357_v57 = vld [vmem:[#allocation98_spill] sm:$0xff] }
 0x666   :  { %2742 = vmatprep.subr.bf16.mxu0 %v7347_v44  ;;  %2783 = vmatprep.subr.bf16.mxu1 %v7348_v0  ;;  %v7358_v44 = vld [vmem:[#allocation99_spill] sm:$0xff]  ;;  %v7359_v0 = vld [vmem:[#allocation100_spill] sm:$0xff] }
 0x669   :  { %2743 = vmatpush1.bf16.msra.mxu0 %v7349_v8  ;;  %2784 = vmatpush1.bf16.msra.mxu1 %v7350_v48  ;;  %v7360_v8 = vld [vmem:[#allocation101_spill] sm:$0xff]  ;;  %v7361_v48 = vld [vmem:[#allocation102_spill] sm:$0xff] }
 0x66a   :  { %2744 = vmatprep.subr.bf16.mxu0 %v7351_v35  ;;  %2785 = vmatprep.subr.bf16.mxu1 %v7352_v61  ;;  %v7362_v35 = vld [vmem:[#allocation103_spill] sm:$0xff]  ;;  %v7363_v61 = vld [vmem:[#allocation104_spill] sm:$0xff] }
 0x66d   :  { %2745 = vmatpush1.bf16.msra.mxu0 %v7353_v10  ;;  %2786 = vmatpush1.bf16.msra.mxu1 %v7354_v16  ;;  %v7364_v10 = vld [vmem:[#allocation105_spill] sm:$0xff]  ;;  %v7365_v16 = vld [vmem:[#allocation106_spill] sm:$0xff] }
 0x66e   :  { %2746 = vmatprep.subr.bf16.mxu0 %v7355_v26  ;;  %2787 = vmatprep.subr.bf16.mxu1 %v7356_v60  ;;  %v7366_v26 = vld [vmem:[#allocation107_spill] sm:$0xff]  ;;  %v7367_v60 = vld [vmem:[#allocation108_spill] sm:$0xff] }
 0x671   :  { %2747 = vmatpush1.bf16.msra.mxu0 %v7357_v57  ;;  %2788 = vmatpush1.bf16.msra.mxu1 %v7358_v44  ;;  %v7368_v57 = vld [vmem:[#allocation109_spill] sm:$0xff]  ;;  %v7369_v44 = vld [vmem:[#allocation110_spill] sm:$0xff] }
 0x672   :  { %2748 = vmatprep.subr.bf16.mxu0 %v7359_v0  ;;  %2789 = vmatprep.subr.bf16.mxu1 %v7360_v8  ;;  %v7370_v0 = vld [vmem:[#allocation111_spill] sm:$0xff]  ;;  %v7371_v8 = vld [vmem:[#allocation112_spill] sm:$0xff] }
 0x675   :  { %2749 = vmatpush1.bf16.msra.mxu0 %v7361_v48  ;;  %2790 = vmatpush1.bf16.msra.mxu1 %v7362_v35  ;;  %v7372_v48 = vld [vmem:[#allocation113_spill] sm:$0xff]  ;;  %v7373_v35 = vld [vmem:[#allocation114_spill] sm:$0xff] }
 0x676   :  { %2750 = vmatprep.subr.bf16.mxu0 %v7363_v61  ;;  %2791 = vmatprep.subr.bf16.mxu1 %v7364_v10  ;;  %v7374_v61 = vld [vmem:[#allocation115_spill] sm:$0xff]  ;;  %v7375_v10 = vld [vmem:[#allocation116_spill] sm:$0xff] }
 0x679   :  { %2751 = vmatpush1.bf16.msra.mxu0 %v7365_v16  ;;  %2792 = vmatpush1.bf16.msra.mxu1 %v7366_v26  ;;  %v7376_v16 = vld [vmem:[#allocation117_spill] sm:$0xff]  ;;  %v7377_v26 = vld [vmem:[#allocation118_spill] sm:$0xff] }
 0x67a   :  { %2752 = vmatprep.subr.bf16.mxu0 %v7367_v60  ;;  %2793 = vmatprep.subr.bf16.mxu1 %v7368_v57  ;;  %v7378_v60 = vld [vmem:[#allocation119_spill] sm:$0xff]  ;;  %v7379_v57 = vld [vmem:[#allocation120_spill] sm:$0xff] }
 0x67d   :  { %2753 = vmatpush1.bf16.msra.mxu0 %v7369_v44  ;;  %2794 = vmatpush1.bf16.msra.mxu1 %v7370_v0  ;;  %v7380_v44 = vld [vmem:[#allocation121_spill] sm:$0xff]  ;;  %v7381_v0 = vld [vmem:[#allocation122_spill] sm:$0xff] }
 0x67e   :  { %2754 = vmatprep.subr.bf16.mxu0 %v7371_v8  ;;  %2795 = vmatprep.subr.bf16.mxu1 %v7372_v48  ;;  %v7382_v8 = vld [vmem:[#allocation123_spill] sm:$0xff]  ;;  %v7383_v48 = vld [vmem:[#allocation124_spill] sm:$0xff] }
 0x681   :  { %2755 = vmatpush1.bf16.msra.mxu0 %v7373_v35  ;;  %2796 = vmatpush1.bf16.msra.mxu1 %v7374_v61  ;;  %v7384_v35 = vld [vmem:[#allocation125_spill] sm:$0xff]  ;;  %v7385_v61 = vld [vmem:[#allocation126_spill] sm:$0xff] }
 0x682   :  { %2756 = vmatprep.subr.bf16.mxu0 %v7375_v10  ;;  %2797 = vmatprep.subr.bf16.mxu1 %v7376_v16  ;;  %v7386_v10 = vld [vmem:[#allocation127_spill] sm:$0xff]  ;;  %v7387_v16 = vld [vmem:[#allocation128_spill] sm:$0xff] }
 0x685   :  { %2757 = vmatpush2.bf16.msra.mxu0 %v7377_v26  ;;  %2798 = vmatpush2.bf16.msra.mxu1 %v7378_v60  ;;  %v7388_v26 = vld [vmem:[#allocation129_spill] sm:$0xff]  ;;  %v7389_v60 = vld [vmem:[#allocation130_spill] sm:$0xff] }
 0x686   :  { %2758 = vmatprep.subr.bf16.mxu0 %v7379_v57  ;;  %2799 = vmatprep.subr.bf16.mxu1 %v7380_v44  ;;  %v7390_v57 = vld [vmem:[#allocation131_spill] sm:$0xff]  ;;  %v7391_v44 = vld [vmem:[#allocation132_spill] sm:$0xff] }
 0x689   :  { %2759 = vmatpush2.bf16.msra.mxu0 %v7381_v0  ;;  %2800 = vmatpush2.bf16.msra.mxu1 %v7382_v8  ;;  %v7392_v0 = vld [vmem:[#allocation133_spill] sm:$0xff]  ;;  %v7393_v8 = vld [vmem:[#allocation134_spill] sm:$0xff] }
 0x68a   :  { %2760 = vmatprep.subr.bf16.mxu0 %v7383_v48  ;;  %2801 = vmatprep.subr.bf16.mxu1 %v7384_v35  ;;  %v7394_v48 = vld [vmem:[#allocation135_spill] sm:$0xff]  ;;  %v7395_v35 = vld [vmem:[#allocation136_spill] sm:$0xff] }
 0x68d   :  { %2761 = vmatpush2.bf16.msra.mxu0 %v7385_v61  ;;  %2802 = vmatpush2.bf16.msra.mxu1 %v7386_v10  ;;  %v7396_v61 = vld [vmem:[#allocation137_spill] sm:$0xff]  ;;  %v7397_v10 = vld [vmem:[#allocation138_spill] sm:$0xff] }
 0x68e   :  { %2762 = vmatprep.subr.bf16.mxu0 %v7387_v16  ;;  %2803 = vmatprep.subr.bf16.mxu1 %v7388_v26  ;;  %v7398_v16 = vld [vmem:[#allocation139_spill] sm:$0xff]  ;;  %v7399_v26 = vld [vmem:[#allocation140_spill] sm:$0xff] }
 0x691   :  { %2763 = vmatpush2.bf16.msra.mxu0 %v7389_v60  ;;  %2804 = vmatpush2.bf16.msra.mxu1 %v7390_v57  ;;  %v7400_v60 = vld [vmem:[#allocation141_spill] sm:$0xff]  ;;  %v7401_v57 = vld [vmem:[#allocation142_spill] sm:$0xff] }
 0x692   :  { %2764 = vmatprep.subr.bf16.mxu0 %v7391_v44  ;;  %2805 = vmatprep.subr.bf16.mxu1 %v7392_v0  ;;  %v7402_v44 = vld [vmem:[#allocation143_spill] sm:$0xff]  ;;  %v7403_v0 = vld [vmem:[#allocation144_spill] sm:$0xff] }
 0x695   :  { %2765 = vmatpush2.bf16.msra.mxu0 %v7393_v8  ;;  %2806 = vmatpush2.bf16.msra.mxu1 %v7394_v48  ;;  %v7404_v8 = vld [vmem:[#allocation145_spill] sm:$0xff]  ;;  %v7405_v48 = vld [vmem:[#allocation146_spill] sm:$0xff] }
 0x696   :  { %2766 = vmatprep.subr.bf16.mxu0 %v7395_v35  ;;  %2807 = vmatprep.subr.bf16.mxu1 %v7396_v61  ;;  %v7406_v35 = vld [vmem:[#allocation147_spill] sm:$0xff]  ;;  %v7407_v61 = vld [vmem:[#allocation148_spill] sm:$0xff] }
 0x699   :  { %2767 = vmatpush2.bf16.msra.mxu0 %v7397_v10  ;;  %2808 = vmatpush2.bf16.msra.mxu1 %v7398_v16  ;;  %v7408_v10 = vld [vmem:[#allocation149_spill] sm:$0xff] }
 0x69a   :  { %2768 = vmatprep.subr.bf16.mxu0 %v7399_v26  ;;  %2809 = vmatprep.subr.bf16.mxu1 %v7400_v60 }
 0x69d   :  { %2769 = vmatpush2.bf16.msra.mxu0 %v7401_v57  ;;  %2810 = vmatpush2.bf16.msra.mxu1 %v7402_v44 }
 0x69e   :  { %2770 = vmatprep.subr.bf16.mxu0 %v7403_v0  ;;  %2811 = vmatprep.subr.bf16.mxu1 %v7404_v8 }
 0x6a1   :  { %2771 = vmatpush2.bf16.msra.mxu0 %v7405_v48  ;;  %2812 = vmatpush2.bf16.msra.mxu1 %v7406_v35  ;;  %v7412_v35 = vld [vmem:[#allocation35_spill] sm:$0xff] }
 0x6a2   :  { %2822 = vmatprep.subr.bf16.mxu0 %v7407_v61  ;;  %2863 = vmatprep.subr.bf16.mxu1 %v7408_v10 }
 0x6e4   :  { %v2541_v16 = vpop.f32.mrf.mxu0  ;;  %v2582_v26 = vpop.f32.mrf.mxu1 }
 0x6e5   :  { %v2671_v0 = vadd.f32 %v2541_v16, %v7409_v27  ;;  %v2673_v8 = vadd.f32 %v2582_v26, %v7410_v21 }
 0x6e6   :  { %v2543_v13 = vpop.f32.mrf.mxu0  ;;  %v2584_v60 = vpop.f32.mrf.mxu1 }
 0x6e7   :  { %v2672_v48 = vadd.f32 %v2543_v13, %v7411_v45  ;;  %v4230_v37 = vmul.f32 -1.442695, %v2671_v0  ;;  %v2674_v7 = vadd.f32 %v2584_v60, %v7412_v35  ;;  %v4232_v61 = vmul.f32 -1.442695, %v2673_v8  ;;  %v7413_v35 = vld [vmem:[#allocation64_spill] sm:$0xff]  ;;  %v7414_v0 = vld [vmem:[#allocation65_spill] sm:$0xff] }
 0x6e8   :  { %v2545_v52 = vpop.f32.mrf.mxu0  ;;  %v2586_v57 = vpop.f32.mrf.mxu1 }
 0x6e9   :  { %v4231_v20 = vmul.f32 -1.442695, %v2672_v48  ;;  %4463 = vpow2.f32 %v4230_v37  ;;  %v4233_v10 = vmul.f32 -1.442695, %v2674_v7  ;;  %v7416_v48 = vld [vmem:[#allocation67_spill] sm:$0xff] }
 0x6ea   :  { %v2546_v17 = vpop.f32.mrf.mxu0  ;;  %v2587_v44 = vpop.f32.mrf.mxu1  ;;  %4465 = vpow2.f32 %v4232_v61 }
 0x6eb   :  { %4467 = vpow2.f32 %v4231_v20 }
 0x6ec   :  { %4469 = vpow2.f32 %v4233_v10  ;;  %v7415_v10 = vld [vmem:[#allocation66_spill] sm:$0xff] }
 0x6f6   :  { %v4464_v52 = vpop.eup %4463 }
 0x6f7   :  { %v4466_v57 = vpop.eup %4465  ;;  %v2685_v44 = vadd.f32 1.0, %v4464_v52 }
 0x6f8   :  { %v4468_v17 = vpop.eup %4467  ;;  %v2697_v27 = vadd.f32 1.0, %v4466_v57 }
 0x6f9   :  { %v4470_v32 = vpop.eup %4469  ;;  %v2686_v16 = vadd.f32 1.0, %v4468_v17  ;;  %4471 = vrcp.f32 %v2685_v44 }
 0x6fa   :  { %v2698_v21 = vadd.f32 1.0, %v4470_v32  ;;  %4473 = vrcp.f32 %v2697_v27 }
 0x6fb   :  { %4475 = vrcp.f32 %v2686_v16 }
 0x706   :  { %v4472_v27 = vpop.eup %4471 }
 0x724   :  { %v2623_v45 = vpop.f32.mrf.mxu0  ;;  %v2664_v13 = vpop.f32.mrf.mxu1 }
 0x725   :  { %v2675_v60 = vadd.f32 %v2623_v45, %v7413_v35  ;;  %v2677_v37 = vadd.f32 %v2664_v13, %v7414_v0  ;;  %v4474_v45 = vpop.eup %4473 }
 0x726   :  { %v2625_v61 = vpop.f32.mrf.mxu0  ;;  %v2666_v20 = vpop.f32.mrf.mxu1 }
 0x727   :  { %4477 = vtanh.f32 %v2675_v60  ;;  %v4234_v7 = vmul.f32 -1.442695, %v2677_v37  ;;  %v2676_v8 = vadd.f32 %v2625_v61, %v7415_v10  ;;  %v2678_v26 = vadd.f32 %v2666_v20, %v7416_v48  ;;  %v4476_v16 = vpop.eup %4475 }
 0x728   :  { %4479 = vrcp.f32 %v2698_v21  ;;  %v2627_v52 = vpop.f32.mrf.mxu0  ;;  %v2668_v57 = vpop.f32.mrf.mxu1  ;;  %v2717_v60 = vmul.f32 %v4474_v45, %v5936_v39 }
 0x729   :  { %4481 = vpow2.f32 %v4234_v7  ;;  %v4235_v32 = vmul.f32 -1.442695, %v2678_v26 }
 0x72a   :  { %4483 = vtanh.f32 %v2676_v8  ;;  %v2628_v17 = vpop.f32.mrf.mxu0  ;;  %v2669_v44 = vpop.f32.mrf.mxu1 }
 0x72b   :  { %4485 = vpow2.f32 %v4235_v32 }
 0x734   :  { %v4478_v13 = vpop.eup %4477 }
 0x735   :  { %v4480_v35 = vpop.eup %4479  ;;  %v2719_v0 = vmul.f32 %v4478_v13, %v4472_v27  ;;  %v7419_v13 = vld [vmem:[#allocation193_spill] sm:$0xff] }
 0x736   :  { %v4482_v37 = vpop.eup %4481  ;;  %v2718_v7 = vmul.f32 %v4480_v35, %v5940_v54  ;;  %v7417_v54 = vld [vmem:[#allocation191_spill] sm:$0xff]  ;;  %v7420_v35 = vld [vmem:[#allocation194_spill] sm:$0xff] }
 0x737   :  { %v4484_v61 = vpop.eup %4483  ;;  %v6086_v20 = vadd.f32 %v2719_v0, %v2717_v60  ;;  %v2711_v21 = vadd.f32 1.0, %v4482_v37  ;;  %v7421_v60 = vld [vmem:[#allocation195_spill] sm:$0xff]  ;;  %v7422_v0 = vld [vmem:[#allocation196_spill] sm:$0xff]  ;;  %v7423_v37 = vld [vmem:[#allocation197_spill] sm:$0xff] }
 0x738   :  { %v4486_v10 = vpop.eup %4485  ;;  %v2720_v8 = vmul.f32 %v4484_v61, %v4476_v16  ;;  %v7418_v16 = vld [vmem:[#allocation192_spill] sm:$0xff]  ;;  %v7424_v61 = vld [vmem:[#allocation198_spill] sm:$0xff] }
 0x739   :  { %4487 = vtanh.f32 %v6086_v20  ;;  %v2712_v48 = vadd.f32 1.0, %v4486_v10  ;;  %v7426_v10 = vld [vmem:[#allocation200_spill] sm:$0xff] }
 0x73a   :  { %4489 = vrcp.f32 %v2711_v21  ;;  %v6090_v26 = vadd.f32 %v2720_v8, %v2718_v7  ;;  %v7425_v21 = vld [vmem:[#allocation199_spill] sm:$0xff]  ;;  %v7427_v7 = vld [vmem:[#allocation201_spill] sm:$0xff]  ;;  %v7428_v8 = vld [vmem:[#allocation202_spill] sm:$0xff] }
 0x73b   :  { %4491 = vrcp.f32 %v2712_v48  ;;  %v7429_v48 = vld [vmem:[#allocation203_spill] sm:$0xff] }
 0x73c   :  { %4493 = vtanh.f32 %v6090_v26 }
 0x746   :  { %v4488_v39 = vpop.eup %4487 }
 0x747   :  { %v4490_v52 = vpop.eup %4489 }
 0x748   :  { %v4492_v57 = vpop.eup %4491  ;;  %v2725_v17 = vmul.f32 %v4490_v52, %v4488_v39  ;;  %v7430_v39 = vld [vmem:[#allocation204_spill] sm:$0xff]  ;;  %v7431_v52 = vld [vmem:[#allocation205_spill] sm:$0xff] }
 0x749   :  { %v4494_v32 = vpop.eup %4493 }
 0x74a   :  { %v2726_v44 = vmul.f32 %v4494_v32, %v4492_v57  ;;  %v6093_v45 = vpack.c.bf16 %v2725_v17, %v2725_v17  ;;  %v7432_v57 = vld [vmem:[#allocation206_spill] sm:$0xff]  ;;  %v7433_v32 = vld [vmem:[#allocation207_spill] sm:$0xff]  ;;  %v7434_v17 = vld [vmem:[#allocation208_spill] sm:$0xff] }
 0x74c   :  { %v2739_v27 = vpack.c.bf16 %v2726_v44, %v2726_v44  ;;  %v7435_v44 = vld [vmem:[#allocation209_spill] sm:$0xff] }
 0x74e   :  { %2772 = vmatprep.mubr.bf16.mxu0 %v2739_v27  ;;  %2813 = vmatprep.mubr.bf16.mxu1 %v2739_v27 }
 0x74f   :  { %2773 = vmatmul.mubr.bf16.vlgmr.msra.gmra.mxu0 %v6093_v45  ;;  %2814 = vmatmul.mubr.bf16.vlgmr.msra.gmra.mxu1 %v6093_v45 }
 0x750   :  { %2823 = vmatpush1.bf16.msra.mxu0 %v7134_v55  ;;  %2864 = vmatpush1.bf16.msra.mxu1 %v7135_v6 }
 0x751   :  { %2854 = vmatprep.mubr.bf16.mxu0 %v2739_v27  ;;  %2895 = vmatprep.mubr.bf16.mxu1 %v2739_v27  ;;  %v7436_v27 = vld [vmem:[#allocation210_spill] sm:$0xff] }
 0x752   :  { %2824 = vmatprep.subr.bf16.mxu0 %v7136_v12  ;;  %2865 = vmatprep.subr.bf16.mxu1 %v7137_v47 }
 0x754   :  { %2825 = vmatpush1.bf16.msra.mxu0 %v7138_v11  ;;  %2866 = vmatpush1.bf16.msra.mxu1 %v7139_v38 }
 0x755   :  { %2826 = vmatprep.subr.bf16.mxu0 %v7140_v58  ;;  %2867 = vmatprep.subr.bf16.mxu1 %v7227_v36 }
 0x758   :  { %2827 = vmatpush1.bf16.msra.mxu0 %v7228_v62  ;;  %2868 = vmatpush1.bf16.msra.mxu1 %v7229_v63 }
 0x759   :  { %2828 = vmatprep.subr.bf16.mxu0 %v7230_v2  ;;  %2869 = vmatprep.subr.bf16.mxu1 %v7231_v9 }
 0x75c   :  { %2829 = vmatpush1.bf16.msra.mxu0 %v7232_v51  ;;  %2870 = vmatpush1.bf16.msra.mxu1 %v7233_v56 }
 0x75d   :  { %2830 = vmatprep.subr.bf16.mxu0 %v7234_v18  ;;  %2871 = vmatprep.subr.bf16.mxu1 %v7235_v46 }
 0x760   :  { %2831 = vmatpush1.bf16.msra.mxu0 %v7322_v41  ;;  %2872 = vmatpush1.bf16.msra.mxu1 %v7323_v31 }
 0x761   :  { %2832 = vmatprep.subr.bf16.mxu0 %v7324_v28  ;;  %2873 = vmatprep.subr.bf16.mxu1 %v7325_v22 }
 0x764   :  { %2833 = vmatpush1.bf16.msra.mxu0 %v7326_v23  ;;  %2874 = vmatpush1.bf16.msra.mxu1 %v7327_v19 }
 0x765   :  { %2834 = vmatprep.subr.bf16.mxu0 %v7328_v49  ;;  %2875 = vmatprep.subr.bf16.mxu1 %v7329_v4 }
 0x768   :  { %2835 = vmatpush1.bf16.msra.mxu0 %v7330_v5  ;;  %2876 = vmatpush1.bf16.msra.mxu1 %v7331_v14 }
 0x769   :  { %2836 = vmatprep.subr.bf16.mxu0 %v7246_v30  ;;  %2877 = vmatprep.subr.bf16.mxu1 %v7247_v42 }
 0x76c   :  { %2837 = vmatpush1.bf16.msra.mxu0 %v7248_v1  ;;  %2878 = vmatpush1.bf16.msra.mxu1 %v7332_v34 }
 0x76d   :  { %2838 = vmatprep.subr.bf16.mxu0 %v7250_v25  ;;  %2879 = vmatprep.subr.bf16.mxu1 %v7251_v33 }
 0x770   :  { %2839 = vmatpush2.bf16.msra.mxu0 %v7252_v29  ;;  %2880 = vmatpush2.bf16.msra.mxu1 %v7253_v15 }
 0x771   :  { %2840 = vmatprep.subr.bf16.mxu0 %v7254_v3  ;;  %2881 = vmatprep.subr.bf16.mxu1 %v7255_v59 }
 0x774   :  { %2841 = vmatpush2.bf16.msra.mxu0 %v7256_v53  ;;  %2882 = vmatpush2.bf16.msra.mxu1 %v7171_v43 }
 0x775   :  { %2842 = vmatprep.subr.bf16.mxu0 %v7172_v40  ;;  %2883 = vmatprep.subr.bf16.mxu1 %v7173_v24 }
 0x778   :  { %2843 = vmatpush2.bf16.msra.mxu0 %v7257_v50  ;;  %2884 = vmatpush2.bf16.msra.mxu1 %v7417_v54 }
 0x779   :  { %2844 = vmatprep.subr.bf16.mxu0 %v7418_v16  ;;  %2885 = vmatprep.subr.bf16.mxu1 %v7419_v13 }
 0x77c   :  { %2845 = vmatpush2.bf16.msra.mxu0 %v7420_v35  ;;  %2886 = vmatpush2.bf16.msra.mxu1 %v7421_v60  ;;  %v7506_v60 = vld [vmem:[#allocation38_spill] sm:$0xff] }
 0x77d   :  { %2846 = vmatprep.subr.bf16.mxu0 %v7422_v0  ;;  %2887 = vmatprep.subr.bf16.mxu1 %v7423_v37  ;;  %v7504_v37 = vld [vmem:[#allocation36_spill] sm:$0xff]  ;;  %v7505_v0 = vld [vmem:[#allocation37_spill] sm:$0xff] }
 0x780   :  { %2847 = vmatpush2.bf16.msra.mxu0 %v7424_v61  ;;  %2888 = vmatpush2.bf16.msra.mxu1 %v7425_v21 }
 0x781   :  { %2848 = vmatprep.subr.bf16.mxu0 %v7426_v10  ;;  %2889 = vmatprep.subr.bf16.mxu1 %v7427_v7  ;;  %v7437_v10 = vld [vmem:[#allocation211_spill] sm:$0xff]  ;;  %v7438_v7 = vld [vmem:[#allocation84_spill] sm:$0xff] }
 0x784   :  { %2849 = vmatpush2.bf16.msra.mxu0 %v7428_v8  ;;  %2890 = vmatpush2.bf16.msra.mxu1 %v7429_v48  ;;  %v7439_v8 = vld [vmem:[#allocation86_spill] sm:$0xff] }
 0x785   :  { %2850 = vmatprep.subr.bf16.mxu0 %v7430_v39  ;;  %2891 = vmatprep.subr.bf16.mxu1 %v7431_v52  ;;  %v7440_v52 = vld [vmem:[#allocation85_spill] sm:$0xff]  ;;  %v7449_v39 = vld [vmem:[#allocation95_spill] sm:$0xff] }
 0x788   :  { %2851 = vmatpush2.bf16.msra.mxu0 %v7432_v57  ;;  %2892 = vmatpush2.bf16.msra.mxu1 %v7433_v32  ;;  %v7441_v57 = vld [vmem:[#allocation87_spill] sm:$0xff]  ;;  %v7442_v32 = vld [vmem:[#allocation88_spill] sm:$0xff] }
 0x789   :  { %2852 = vmatprep.subr.bf16.mxu0 %v7434_v17  ;;  %2893 = vmatprep.subr.bf16.mxu1 %v7435_v44  ;;  %v7443_v17 = vld [vmem:[#allocation89_spill] sm:$0xff]  ;;  %v7444_v44 = vld [vmem:[#allocation90_spill] sm:$0xff] }
 0x78c   :  { %2853 = vmatpush2.bf16.msra.mxu0 %v7436_v27  ;;  %2894 = vmatpush2.bf16.msra.mxu1 %v7437_v10  ;;  %v7445_v27 = vld [vmem:[#allocation91_spill] sm:$0xff]  ;;  %v7446_v10 = vld [vmem:[#allocation92_spill] sm:$0xff] }
 0x78d   :  { %2973 = vmatprep.subr.bf16.mxu0 %v7438_v7  ;;  %3014 = vmatprep.subr.bf16.mxu1 %v7439_v8  ;;  %v7447_v7 = vld [vmem:[#allocation93_spill] sm:$0xff]  ;;  %v7448_v8 = vld [vmem:[#allocation94_spill] sm:$0xff] }
 0x78f   :  { %2855 = vmatmul.mubr.bf16.vlgmr.msra.gmra.mxu0 %v6093_v45  ;;  %2896 = vmatmul.mubr.bf16.vlgmr.msra.gmra.mxu1 %v6093_v45  ;;  %v7450_v45 = vld [vmem:[#allocation96_spill] sm:$0xff] }
 0x790   :  { %2974 = vmatpush1.bf16.msra.mxu0 %v7440_v52  ;;  %3015 = vmatpush1.bf16.msra.mxu1 %v7441_v57  ;;  %v7451_v52 = vld [vmem:[#allocation97_spill] sm:$0xff]  ;;  %v7452_v57 = vld [vmem:[#allocation98_spill] sm:$0xff] }
 0x791   :  { %2975 = vmatprep.subr.bf16.mxu0 %v7442_v32  ;;  %3016 = vmatprep.subr.bf16.mxu1 %v7443_v17  ;;  %v7453_v32 = vld [vmem:[#allocation99_spill] sm:$0xff]  ;;  %v7454_v17 = vld [vmem:[#allocation100_spill] sm:$0xff] }
 0x794   :  { %2976 = vmatpush1.bf16.msra.mxu0 %v7444_v44  ;;  %3017 = vmatpush1.bf16.msra.mxu1 %v7445_v27  ;;  %v7455_v44 = vld [vmem:[#allocation101_spill] sm:$0xff]  ;;  %v7456_v27 = vld [vmem:[#allocation102_spill] sm:$0xff] }
 0x795   :  { %2977 = vmatprep.subr.bf16.mxu0 %v7446_v10  ;;  %3018 = vmatprep.subr.bf16.mxu1 %v7447_v7  ;;  %v7457_v10 = vld [vmem:[#allocation103_spill] sm:$0xff]  ;;  %v7458_v7 = vld [vmem:[#allocation104_spill] sm:$0xff] }
 0x798   :  { %2978 = vmatpush1.bf16.msra.mxu0 %v7448_v8  ;;  %3019 = vmatpush1.bf16.msra.mxu1 %v7449_v39  ;;  %v7459_v8 = vld [vmem:[#allocation105_spill] sm:$0xff]  ;;  %v7460_v39 = vld [vmem:[#allocation106_spill] sm:$0xff] }
 0x799   :  { %2979 = vmatprep.subr.bf16.mxu0 %v7450_v45  ;;  %3020 = vmatprep.subr.bf16.mxu1 %v7451_v52  ;;  %v7461_v45 = vld [vmem:[#allocation107_spill] sm:$0xff]  ;;  %v7462_v52 = vld [vmem:[#allocation108_spill] sm:$0xff] }
 0x79c   :  { %2980 = vmatpush1.bf16.msra.mxu0 %v7452_v57  ;;  %3021 = vmatpush1.bf16.msra.mxu1 %v7453_v32  ;;  %v7463_v57 = vld [vmem:[#allocation109_spill] sm:$0xff]  ;;  %v7464_v32 = vld [vmem:[#allocation110_spill] sm:$0xff] }
 0x79d   :  { %2981 = vmatprep.subr.bf16.mxu0 %v7454_v17  ;;  %3022 = vmatprep.subr.bf16.mxu1 %v7455_v44  ;;  %v7465_v17 = vld [vmem:[#allocation111_spill] sm:$0xff]  ;;  %v7466_v44 = vld [vmem:[#allocation112_spill] sm:$0xff] }
 0x7a0   :  { %2982 = vmatpush1.bf16.msra.mxu0 %v7456_v27  ;;  %3023 = vmatpush1.bf16.msra.mxu1 %v7457_v10  ;;  %v7467_v27 = vld [vmem:[#allocation113_spill] sm:$0xff]  ;;  %v7468_v10 = vld [vmem:[#allocation114_spill] sm:$0xff] }
 0x7a1   :  { %2983 = vmatprep.subr.bf16.mxu0 %v7458_v7  ;;  %3024 = vmatprep.subr.bf16.mxu1 %v7459_v8  ;;  %v7469_v7 = vld [vmem:[#allocation115_spill] sm:$0xff]  ;;  %v7470_v8 = vld [vmem:[#allocation116_spill] sm:$0xff] }
 0x7a4   :  { %2984 = vmatpush1.bf16.msra.mxu0 %v7460_v39  ;;  %3025 = vmatpush1.bf16.msra.mxu1 %v7461_v45  ;;  %v7471_v39 = vld [vmem:[#allocation117_spill] sm:$0xff]  ;;  %v7472_v45 = vld [vmem:[#allocation118_spill] sm:$0xff] }
 0x7a5   :  { %2985 = vmatprep.subr.bf16.mxu0 %v7462_v52  ;;  %3026 = vmatprep.subr.bf16.mxu1 %v7463_v57  ;;  %v7473_v52 = vld [vmem:[#allocation119_spill] sm:$0xff]  ;;  %v7474_v57 = vld [vmem:[#allocation120_spill] sm:$0xff] }
 0x7a8   :  { %2986 = vmatpush1.bf16.msra.mxu0 %v7464_v32  ;;  %3027 = vmatpush1.bf16.msra.mxu1 %v7465_v17  ;;  %v7475_v32 = vld [vmem:[#allocation121_spill] sm:$0xff]  ;;  %v7476_v17 = vld [vmem:[#allocation122_spill] sm:$0xff] }
 0x7a9   :  { %2987 = vmatprep.subr.bf16.mxu0 %v7466_v44  ;;  %3028 = vmatprep.subr.bf16.mxu1 %v7467_v27  ;;  %v7477_v44 = vld [vmem:[#allocation123_spill] sm:$0xff]  ;;  %v7478_v27 = vld [vmem:[#allocation124_spill] sm:$0xff] }
 0x7ac   :  { %2988 = vmatpush1.bf16.msra.mxu0 %v7468_v10  ;;  %3029 = vmatpush1.bf16.msra.mxu1 %v7469_v7  ;;  %v7479_v10 = vld [vmem:[#allocation125_spill] sm:$0xff]  ;;  %v7480_v7 = vld [vmem:[#allocation126_spill] sm:$0xff] }
 0x7ad   :  { %2989 = vmatprep.subr.bf16.mxu0 %v7470_v8  ;;  %3030 = vmatprep.subr.bf16.mxu1 %v7471_v39  ;;  %v7481_v8 = vld [vmem:[#allocation127_spill] sm:$0xff]  ;;  %v7482_v39 = vld [vmem:[#allocation128_spill] sm:$0xff] }
 0x7b0   :  { %2990 = vmatpush2.bf16.msra.mxu0 %v7472_v45  ;;  %3031 = vmatpush2.bf16.msra.mxu1 %v7473_v52  ;;  %v7483_v45 = vld [vmem:[#allocation129_spill] sm:$0xff]  ;;  %v7484_v52 = vld [vmem:[#allocation130_spill] sm:$0xff] }
 0x7b1   :  { %2991 = vmatprep.subr.bf16.mxu0 %v7474_v57  ;;  %3032 = vmatprep.subr.bf16.mxu1 %v7475_v32  ;;  %v7485_v57 = vld [vmem:[#allocation131_spill] sm:$0xff]  ;;  %v7486_v32 = vld [vmem:[#allocation132_spill] sm:$0xff] }
 0x7b4   :  { %2992 = vmatpush2.bf16.msra.mxu0 %v7476_v17  ;;  %3033 = vmatpush2.bf16.msra.mxu1 %v7477_v44  ;;  %v7487_v17 = vld [vmem:[#allocation133_spill] sm:$0xff]  ;;  %v7488_v44 = vld [vmem:[#allocation134_spill] sm:$0xff] }
 0x7b5   :  { %2993 = vmatprep.subr.bf16.mxu0 %v7478_v27  ;;  %3034 = vmatprep.subr.bf16.mxu1 %v7479_v10  ;;  %v7489_v27 = vld [vmem:[#allocation135_spill] sm:$0xff]  ;;  %v7490_v10 = vld [vmem:[#allocation136_spill] sm:$0xff] }
 0x7b8   :  { %2994 = vmatpush2.bf16.msra.mxu0 %v7480_v7  ;;  %3035 = vmatpush2.bf16.msra.mxu1 %v7481_v8  ;;  %v7491_v7 = vld [vmem:[#allocation137_spill] sm:$0xff]  ;;  %v7492_v8 = vld [vmem:[#allocation138_spill] sm:$0xff] }
 0x7b9   :  { %2995 = vmatprep.subr.bf16.mxu0 %v7482_v39  ;;  %3036 = vmatprep.subr.bf16.mxu1 %v7483_v45  ;;  %v7493_v39 = vld [vmem:[#allocation139_spill] sm:$0xff]  ;;  %v7494_v45 = vld [vmem:[#allocation140_spill] sm:$0xff] }
 0x7bc   :  { %2996 = vmatpush2.bf16.msra.mxu0 %v7484_v52  ;;  %3037 = vmatpush2.bf16.msra.mxu1 %v7485_v57  ;;  %v7495_v52 = vld [vmem:[#allocation141_spill] sm:$0xff]  ;;  %v7496_v57 = vld [vmem:[#allocation142_spill] sm:$0xff] }
 0x7bd   :  { %2997 = vmatprep.subr.bf16.mxu0 %v7486_v32  ;;  %3038 = vmatprep.subr.bf16.mxu1 %v7487_v17  ;;  %v7497_v32 = vld [vmem:[#allocation143_spill] sm:$0xff]  ;;  %v7498_v17 = vld [vmem:[#allocation144_spill] sm:$0xff] }
 0x7c0   :  { %2998 = vmatpush2.bf16.msra.mxu0 %v7488_v44  ;;  %3039 = vmatpush2.bf16.msra.mxu1 %v7489_v27  ;;  %v7499_v44 = vld [vmem:[#allocation145_spill] sm:$0xff]  ;;  %v7500_v27 = vld [vmem:[#allocation146_spill] sm:$0xff] }
 0x7c1   :  { %2999 = vmatprep.subr.bf16.mxu0 %v7490_v10  ;;  %3040 = vmatprep.subr.bf16.mxu1 %v7491_v7  ;;  %v7501_v10 = vld [vmem:[#allocation147_spill] sm:$0xff]  ;;  %v7502_v7 = vld [vmem:[#allocation148_spill] sm:$0xff] }
 0x7c4   :  { %3000 = vmatpush2.bf16.msra.mxu0 %v7492_v8  ;;  %3041 = vmatpush2.bf16.msra.mxu1 %v7493_v39  ;;  %v7503_v8 = vld [vmem:[#allocation149_spill] sm:$0xff] }
 0x7c5   :  { %3001 = vmatprep.subr.bf16.mxu0 %v7494_v45  ;;  %3042 = vmatprep.subr.bf16.mxu1 %v7495_v52 }
 0x7c8   :  { %3002 = vmatpush2.bf16.msra.mxu0 %v7496_v57  ;;  %3043 = vmatpush2.bf16.msra.mxu1 %v7497_v32 }
 0x7c9   :  { %3003 = vmatprep.subr.bf16.mxu0 %v7498_v17  ;;  %3044 = vmatprep.subr.bf16.mxu1 %v7499_v44 }
 0x7cc   :  { %3004 = vmatpush2.bf16.msra.mxu0 %v7500_v27  ;;  %3045 = vmatpush2.bf16.msra.mxu1 %v7501_v10  ;;  %v7507_v10 = vld [vmem:[#allocation39_spill] sm:$0xff] }
 0x7cd   :  { %3055 = vmatprep.subr.bf16.mxu0 %v7502_v7  ;;  %3096 = vmatprep.subr.bf16.mxu1 %v7503_v8 }
 0x80f   :  { %v2774_v39 = vpop.f32.mrf.mxu0  ;;  %v2815_v45 = vpop.f32.mrf.mxu1 }
 0x810   :  { %v2904_v17 = vadd.f32 %v2774_v39, %v7504_v37  ;;  %v2906_v44 = vadd.f32 %v2815_v45, %v7505_v0 }
 0x811   :  { %v2776_v48 = vpop.f32.mrf.mxu0  ;;  %v2817_v52 = vpop.f32.mrf.mxu1 }
 0x812   :  { %v2905_v27 = vadd.f32 %v2776_v48, %v7506_v60  ;;  %v4236_v35 = vmul.f32 -1.442695, %v2904_v17  ;;  %v2907_v13 = vadd.f32 %v2817_v52, %v7507_v10  ;;  %v4238_v7 = vmul.f32 -1.442695, %v2906_v44  ;;  %v7508_v10 = vld [vmem:[#allocation68_spill] sm:$0xff]  ;;  %v7509_v17 = vld [vmem:[#allocation69_spill] sm:$0xff] }
 0x813   :  { %v2778_v21 = vpop.f32.mrf.mxu0  ;;  %v2819_v57 = vpop.f32.mrf.mxu1 }
 0x814   :  { %v4237_v16 = vmul.f32 -1.442695, %v2905_v27  ;;  %4495 = vpow2.f32 %v4236_v35  ;;  %v4239_v8 = vmul.f32 -1.442695, %v2907_v13  ;;  %v7511_v27 = vld [vmem:[#allocation71_spill] sm:$0xff] }
 0x815   :  { %v2779_v61 = vpop.f32.mrf.mxu0  ;;  %v2820_v32 = vpop.f32.mrf.mxu1  ;;  %4497 = vpow2.f32 %v4238_v7 }
 0x816   :  { %4499 = vpow2.f32 %v4237_v16 }
 0x817   :  { %4501 = vpow2.f32 %v4239_v8  ;;  %v7510_v8 = vld [vmem:[#allocation70_spill] sm:$0xff] }
 0x821   :  { %v4496_v21 = vpop.eup %4495 }
 0x822   :  { %v4498_v57 = vpop.eup %4497  ;;  %v2918_v32 = vadd.f32 1.0, %v4496_v21 }
 0x823   :  { %v4500_v61 = vpop.eup %4499  ;;  %v2930_v37 = vadd.f32 1.0, %v4498_v57 }
 0x824   :  { %v4502_v54 = vpop.eup %4501  ;;  %v2919_v39 = vadd.f32 1.0, %v4500_v61  ;;  %4503 = vrcp.f32 %v2918_v32 }
 0x825   :  { %v2931_v0 = vadd.f32 1.0, %v4502_v54  ;;  %4505 = vrcp.f32 %v2930_v37 }
 0x826   :  { %4507 = vrcp.f32 %v2919_v39 }
 0x831   :  { %v4504_v37 = vpop.eup %4503 }
 0x84f   :  { %v2856_v60 = vpop.f32.mrf.mxu0  ;;  %v2897_v48 = vpop.f32.mrf.mxu1 }
 0x850   :  { %v2908_v52 = vadd.f32 %v2856_v60, %v7508_v10  ;;  %v2910_v35 = vadd.f32 %v2897_v48, %v7509_v17  ;;  %v4506_v60 = vpop.eup %4505 }
 0x851   :  { %v2858_v13 = vpop.f32.mrf.mxu0  ;;  %v2899_v16 = vpop.f32.mrf.mxu1 }
 0x852   :  { %4509 = vtanh.f32 %v2908_v52  ;;  %v4240_v7 = vmul.f32 -1.442695, %v2910_v35  ;;  %v2909_v44 = vadd.f32 %v2858_v13, %v7510_v8  ;;  %v2911_v45 = vadd.f32 %v2899_v16, %v7511_v27  ;;  %v4508_v39 = vpop.eup %4507 }
 0x853   :  { %4511 = vrcp.f32 %v2931_v0  ;;  %v2860_v21 = vpop.f32.mrf.mxu0  ;;  %v2901_v57 = vpop.f32.mrf.mxu1  ;;  %v2950_v52 = vmul.f32 %v4506_v60, %v6086_v20 }
 0x854   :  { %4513 = vpow2.f32 %v4240_v7  ;;  %v4241_v54 = vmul.f32 -1.442695, %v2911_v45 }
 0x855   :  { %4515 = vtanh.f32 %v2909_v44  ;;  %v2861_v61 = vpop.f32.mrf.mxu0  ;;  %v2902_v32 = vpop.f32.mrf.mxu1 }
 0x856   :  { %4517 = vpow2.f32 %v4241_v54 }
 0x85f   :  { %v4510_v48 = vpop.eup %4509 }
 0x860   :  { %v4512_v10 = vpop.eup %4511  ;;  %v2952_v17 = vmul.f32 %v4510_v48, %v4504_v37  ;;  %v7514_v48 = vld [vmem:[#allocation193_spill] sm:$0xff] }
 0x861   :  { %v4514_v35 = vpop.eup %4513  ;;  %v2951_v7 = vmul.f32 %v4512_v10, %v6090_v26  ;;  %v7512_v26 = vld [vmem:[#allocation191_spill] sm:$0xff]  ;;  %v7515_v10 = vld [vmem:[#allocation194_spill] sm:$0xff] }
 0x862   :  { %v4516_v13 = vpop.eup %4515  ;;  %v6236_v16 = vadd.f32 %v2952_v17, %v2950_v52  ;;  %v2944_v0 = vadd.f32 1.0, %v4514_v35  ;;  %v7516_v52 = vld [vmem:[#allocation195_spill] sm:$0xff]  ;;  %v7517_v17 = vld [vmem:[#allocation196_spill] sm:$0xff]  ;;  %v7518_v35 = vld [vmem:[#allocation197_spill] sm:$0xff] }
 0x863   :  { %v4518_v8 = vpop.eup %4517  ;;  %v2953_v44 = vmul.f32 %v4516_v13, %v4508_v39  ;;  %v7513_v39 = vld [vmem:[#allocation192_spill] sm:$0xff]  ;;  %v7519_v13 = vld [vmem:[#allocation198_spill] sm:$0xff] }
 0x864   :  { %4519 = vtanh.f32 %v6236_v16  ;;  %v2945_v27 = vadd.f32 1.0, %v4518_v8  ;;  %v7521_v8 = vld [vmem:[#allocation200_spill] sm:$0xff] }
 0x865   :  { %4521 = vrcp.f32 %v2944_v0  ;;  %v6240_v45 = vadd.f32 %v2953_v44, %v2951_v7  ;;  %v7520_v0 = vld [vmem:[#allocation199_spill] sm:$0xff]  ;;  %v7522_v7 = vld [vmem:[#allocation201_spill] sm:$0xff]  ;;  %v7523_v44 = vld [vmem:[#allocation202_spill] sm:$0xff] }
 0x866   :  { %4523 = vrcp.f32 %v2945_v27  ;;  %v7524_v27 = vld [vmem:[#allocation203_spill] sm:$0xff] }
 0x867   :  { %4525 = vtanh.f32 %v6240_v45 }
 0x871   :  { %v4520_v20 = vpop.eup %4519 }
 0x872   :  { %v4522_v21 = vpop.eup %4521 }
 0x873   :  { %v4524_v57 = vpop.eup %4523  ;;  %v2958_v61 = vmul.f32 %v4522_v21, %v4520_v20  ;;  %v7525_v20 = vld [vmem:[#allocation204_spill] sm:$0xff]  ;;  %v7526_v21 = vld [vmem:[#allocation205_spill] sm:$0xff] }
 0x874   :  { %v4526_v54 = vpop.eup %4525 }
 0x875   :  { %v2959_v32 = vmul.f32 %v4526_v54, %v4524_v57  ;;  %v6243_v60 = vpack.c.bf16 %v2958_v61, %v2958_v61  ;;  %v7527_v57 = vld [vmem:[#allocation206_spill] sm:$0xff]  ;;  %v7528_v54 = vld [vmem:[#allocation207_spill] sm:$0xff]  ;;  %v7529_v61 = vld [vmem:[#allocation208_spill] sm:$0xff] }
 0x877   :  { %v2972_v37 = vpack.c.bf16 %v2959_v32, %v2959_v32  ;;  %v7530_v32 = vld [vmem:[#allocation209_spill] sm:$0xff] }
 0x879   :  { %3005 = vmatprep.mubr.bf16.mxu0 %v2972_v37  ;;  %3046 = vmatprep.mubr.bf16.mxu1 %v2972_v37 }
 0x87a   :  { %3006 = vmatmul.mubr.bf16.vlgmr.msra.gmra.mxu0 %v6243_v60  ;;  %3047 = vmatmul.mubr.bf16.vlgmr.msra.gmra.mxu1 %v6243_v60 }
 0x87b   :  { %3056 = vmatpush1.bf16.msra.mxu0 %v7134_v55  ;;  %3097 = vmatpush1.bf16.msra.mxu1 %v7135_v6 }
 0x87c   :  { %3087 = vmatprep.mubr.bf16.mxu0 %v2972_v37  ;;  %3128 = vmatprep.mubr.bf16.mxu1 %v2972_v37  ;;  %v7531_v37 = vld [vmem:[#allocation210_spill] sm:$0xff] }
 0x87d   :  { %3057 = vmatprep.subr.bf16.mxu0 %v7136_v12  ;;  %3098 = vmatprep.subr.bf16.mxu1 %v7137_v47 }
 0x87f   :  { %3058 = vmatpush1.bf16.msra.mxu0 %v7138_v11  ;;  %3099 = vmatpush1.bf16.msra.mxu1 %v7139_v38 }
 0x880   :  { %3059 = vmatprep.subr.bf16.mxu0 %v7140_v58  ;;  %3100 = vmatprep.subr.bf16.mxu1 %v7227_v36 }
 0x883   :  { %3060 = vmatpush1.bf16.msra.mxu0 %v7228_v62  ;;  %3101 = vmatpush1.bf16.msra.mxu1 %v7229_v63 }
 0x884   :  { %3061 = vmatprep.subr.bf16.mxu0 %v7230_v2  ;;  %3102 = vmatprep.subr.bf16.mxu1 %v7231_v9 }
 0x887   :  { %3062 = vmatpush1.bf16.msra.mxu0 %v7232_v51  ;;  %3103 = vmatpush1.bf16.msra.mxu1 %v7233_v56 }
 0x888   :  { %3063 = vmatprep.subr.bf16.mxu0 %v7234_v18  ;;  %3104 = vmatprep.subr.bf16.mxu1 %v7235_v46 }
 0x88b   :  { %3064 = vmatpush1.bf16.msra.mxu0 %v7322_v41  ;;  %3105 = vmatpush1.bf16.msra.mxu1 %v7323_v31 }
 0x88c   :  { %3065 = vmatprep.subr.bf16.mxu0 %v7324_v28  ;;  %3106 = vmatprep.subr.bf16.mxu1 %v7325_v22 }
 0x88f   :  { %3066 = vmatpush1.bf16.msra.mxu0 %v7326_v23  ;;  %3107 = vmatpush1.bf16.msra.mxu1 %v7327_v19 }
 0x890   :  { %3067 = vmatprep.subr.bf16.mxu0 %v7328_v49  ;;  %3108 = vmatprep.subr.bf16.mxu1 %v7329_v4 }
 0x893   :  { %3068 = vmatpush1.bf16.msra.mxu0 %v7330_v5  ;;  %3109 = vmatpush1.bf16.msra.mxu1 %v7331_v14 }
 0x894   :  { %3069 = vmatprep.subr.bf16.mxu0 %v7246_v30  ;;  %3110 = vmatprep.subr.bf16.mxu1 %v7247_v42 }
 0x897   :  { %3070 = vmatpush1.bf16.msra.mxu0 %v7248_v1  ;;  %3111 = vmatpush1.bf16.msra.mxu1 %v7332_v34 }
 0x898   :  { %3071 = vmatprep.subr.bf16.mxu0 %v7250_v25  ;;  %3112 = vmatprep.subr.bf16.mxu1 %v7251_v33 }
 0x89b   :  { %3072 = vmatpush2.bf16.msra.mxu0 %v7252_v29  ;;  %3113 = vmatpush2.bf16.msra.mxu1 %v7253_v15 }
 0x89c   :  { %3073 = vmatprep.subr.bf16.mxu0 %v7254_v3  ;;  %3114 = vmatprep.subr.bf16.mxu1 %v7255_v59 }
 0x89f   :  { %3074 = vmatpush2.bf16.msra.mxu0 %v7256_v53  ;;  %3115 = vmatpush2.bf16.msra.mxu1 %v7171_v43 }
 0x8a0   :  { %3075 = vmatprep.subr.bf16.mxu0 %v7172_v40  ;;  %3116 = vmatprep.subr.bf16.mxu1 %v7173_v24 }
 0x8a3   :  { %3076 = vmatpush2.bf16.msra.mxu0 %v7257_v50  ;;  %3117 = vmatpush2.bf16.msra.mxu1 %v7512_v26 }
 0x8a4   :  { %3077 = vmatprep.subr.bf16.mxu0 %v7513_v39  ;;  %3118 = vmatprep.subr.bf16.mxu1 %v7514_v48 }
 0x8a7   :  { %3078 = vmatpush2.bf16.msra.mxu0 %v7515_v10  ;;  %3119 = vmatpush2.bf16.msra.mxu1 %v7516_v52  ;;  %v7601_v52 = vld [vmem:[#allocation42_spill] sm:$0xff] }
 0x8a8   :  { %3079 = vmatprep.subr.bf16.mxu0 %v7517_v17  ;;  %3120 = vmatprep.subr.bf16.mxu1 %v7518_v35  ;;  %v7599_v35 = vld [vmem:[#allocation40_spill] sm:$0xff]  ;;  %v7600_v17 = vld [vmem:[#allocation41_spill] sm:$0xff] }
 0x8ab   :  { %3080 = vmatpush2.bf16.msra.mxu0 %v7519_v13  ;;  %3121 = vmatpush2.bf16.msra.mxu1 %v7520_v0 }
 0x8ac   :  { %3081 = vmatprep.subr.bf16.mxu0 %v7521_v8  ;;  %3122 = vmatprep.subr.bf16.mxu1 %v7522_v7  ;;  %v7532_v8 = vld [vmem:[#allocation211_spill] sm:$0xff]  ;;  %v7533_v7 = vld [vmem:[#allocation84_spill] sm:$0xff] }
 0x8af   :  { %3082 = vmatpush2.bf16.msra.mxu0 %v7523_v44  ;;  %3123 = vmatpush2.bf16.msra.mxu1 %v7524_v27  ;;  %v7534_v44 = vld [vmem:[#allocation86_spill] sm:$0xff] }
 0x8b0   :  { %3083 = vmatprep.subr.bf16.mxu0 %v7525_v20  ;;  %3124 = vmatprep.subr.bf16.mxu1 %v7526_v21  ;;  %v7535_v21 = vld [vmem:[#allocation85_spill] sm:$0xff]  ;;  %v7544_v20 = vld [vmem:[#allocation95_spill] sm:$0xff] }
 0x8b3   :  { %3084 = vmatpush2.bf16.msra.mxu0 %v7527_v57  ;;  %3125 = vmatpush2.bf16.msra.mxu1 %v7528_v54  ;;  %v7536_v57 = vld [vmem:[#allocation87_spill] sm:$0xff]  ;;  %v7537_v54 = vld [vmem:[#allocation88_spill] sm:$0xff] }
 0x8b4   :  { %3085 = vmatprep.subr.bf16.mxu0 %v7529_v61  ;;  %3126 = vmatprep.subr.bf16.mxu1 %v7530_v32  ;;  %v7538_v61 = vld [vmem:[#allocation89_spill] sm:$0xff]  ;;  %v7539_v32 = vld [vmem:[#allocation90_spill] sm:$0xff] }
 0x8b7   :  { %3086 = vmatpush2.bf16.msra.mxu0 %v7531_v37  ;;  %3127 = vmatpush2.bf16.msra.mxu1 %v7532_v8  ;;  %v7540_v37 = vld [vmem:[#allocation91_spill] sm:$0xff]  ;;  %v7541_v8 = vld [vmem:[#allocation92_spill] sm:$0xff] }
 0x8b8   :  { %3206 = vmatprep.subr.bf16.mxu0 %v7533_v7  ;;  %3247 = vmatprep.subr.bf16.mxu1 %v7534_v44  ;;  %v7542_v7 = vld [vmem:[#allocation93_spill] sm:$0xff]  ;;  %v7543_v44 = vld [vmem:[#allocation94_spill] sm:$0xff] }
 0x8ba   :  { %3088 = vmatmul.mubr.bf16.vlgmr.msra.gmra.mxu0 %v6243_v60  ;;  %3129 = vmatmul.mubr.bf16.vlgmr.msra.gmra.mxu1 %v6243_v60  ;;  %v7545_v60 = vld [vmem:[#allocation96_spill] sm:$0xff] }
 0x8bb   :  { %3207 = vmatpush1.bf16.msra.mxu0 %v7535_v21  ;;  %3248 = vmatpush1.bf16.msra.mxu1 %v7536_v57  ;;  %v7546_v21 = vld [vmem:[#allocation97_spill] sm:$0xff]  ;;  %v7547_v57 = vld [vmem:[#allocation98_spill] sm:$0xff] }
 0x8bc   :  { %3208 = vmatprep.subr.bf16.mxu0 %v7537_v54  ;;  %3249 = vmatprep.subr.bf16.mxu1 %v7538_v61  ;;  %v7548_v54 = vld [vmem:[#allocation99_spill] sm:$0xff]  ;;  %v7549_v61 = vld [vmem:[#allocation100_spill] sm:$0xff] }
 0x8bf   :  { %3209 = vmatpush1.bf16.msra.mxu0 %v7539_v32  ;;  %3250 = vmatpush1.bf16.msra.mxu1 %v7540_v37  ;;  %v7550_v32 = vld [vmem:[#allocation101_spill] sm:$0xff]  ;;  %v7551_v37 = vld [vmem:[#allocation102_spill] sm:$0xff] }
 0x8c0   :  { %3210 = vmatprep.subr.bf16.mxu0 %v7541_v8  ;;  %3251 = vmatprep.subr.bf16.mxu1 %v7542_v7  ;;  %v7552_v8 = vld [vmem:[#allocation103_spill] sm:$0xff]  ;;  %v7553_v7 = vld [vmem:[#allocation104_spill] sm:$0xff] }
 0x8c3   :  { %3211 = vmatpush1.bf16.msra.mxu0 %v7543_v44  ;;  %3252 = vmatpush1.bf16.msra.mxu1 %v7544_v20  ;;  %v7554_v44 = vld [vmem:[#allocation105_spill] sm:$0xff]  ;;  %v7555_v20 = vld [vmem:[#allocation106_spill] sm:$0xff] }
 0x8c4   :  { %3212 = vmatprep.subr.bf16.mxu0 %v7545_v60  ;;  %3253 = vmatprep.subr.bf16.mxu1 %v7546_v21  ;;  %v7556_v60 = vld [vmem:[#allocation107_spill] sm:$0xff]  ;;  %v7557_v21 = vld [vmem:[#allocation108_spill] sm:$0xff] }
 0x8c7   :  { %3213 = vmatpush1.bf16.msra.mxu0 %v7547_v57  ;;  %3254 = vmatpush1.bf16.msra.mxu1 %v7548_v54  ;;  %v7558_v57 = vld [vmem:[#allocation109_spill] sm:$0xff]  ;;  %v7559_v54 = vld [vmem:[#allocation110_spill] sm:$0xff] }
 0x8c8   :  { %3214 = vmatprep.subr.bf16.mxu0 %v7549_v61  ;;  %3255 = vmatprep.subr.bf16.mxu1 %v7550_v32  ;;  %v7560_v61 = vld [vmem:[#allocation111_spill] sm:$0xff]  ;;  %v7561_v32 = vld [vmem:[#allocation112_spill] sm:$0xff] }
 0x8cb   :  { %3215 = vmatpush1.bf16.msra.mxu0 %v7551_v37  ;;  %3256 = vmatpush1.bf16.msra.mxu1 %v7552_v8  ;;  %v7562_v37 = vld [vmem:[#allocation113_spill] sm:$0xff]  ;;  %v7563_v8 = vld [vmem:[#allocation114_spill] sm:$0xff] }
 0x8cc   :  { %3216 = vmatprep.subr.bf16.mxu0 %v7553_v7  ;;  %3257 = vmatprep.subr.bf16.mxu1 %v7554_v44  ;;  %v7564_v7 = vld [vmem:[#allocation115_spill] sm:$0xff]  ;;  %v7565_v44 = vld [vmem:[#allocation116_spill] sm:$0xff] }
 0x8cf   :  { %3217 = vmatpush1.bf16.msra.mxu0 %v7555_v20  ;;  %3258 = vmatpush1.bf16.msra.mxu1 %v7556_v60  ;;  %v7566_v20 = vld [vmem:[#allocation117_spill] sm:$0xff]  ;;  %v7567_v60 = vld [vmem:[#allocation118_spill] sm:$0xff] }
 0x8d0   :  { %3218 = vmatprep.subr.bf16.mxu0 %v7557_v21  ;;  %3259 = vmatprep.subr.bf16.mxu1 %v7558_v57  ;;  %v7568_v21 = vld [vmem:[#allocation119_spill] sm:$0xff]  ;;  %v7569_v57 = vld [vmem:[#allocation120_spill] sm:$0xff] }
 0x8d3   :  { %3219 = vmatpush1.bf16.msra.mxu0 %v7559_v54  ;;  %3260 = vmatpush1.bf16.msra.mxu1 %v7560_v61  ;;  %v7570_v54 = vld [vmem:[#allocation121_spill] sm:$0xff]  ;;  %v7571_v61 = vld [vmem:[#allocation122_spill] sm:$0xff] }
 0x8d4   :  { %3220 = vmatprep.subr.bf16.mxu0 %v7561_v32  ;;  %3261 = vmatprep.subr.bf16.mxu1 %v7562_v37  ;;  %v7572_v32 = vld [vmem:[#allocation123_spill] sm:$0xff]  ;;  %v7573_v37 = vld [vmem:[#allocation124_spill] sm:$0xff] }
 0x8d7   :  { %3221 = vmatpush1.bf16.msra.mxu0 %v7563_v8  ;;  %3262 = vmatpush1.bf16.msra.mxu1 %v7564_v7  ;;  %v7574_v8 = vld [vmem:[#allocation125_spill] sm:$0xff]  ;;  %v7575_v7 = vld [vmem:[#allocation126_spill] sm:$0xff] }
 0x8d8   :  { %3222 = vmatprep.subr.bf16.mxu0 %v7565_v44  ;;  %3263 = vmatprep.subr.bf16.mxu1 %v7566_v20  ;;  %v7576_v44 = vld [vmem:[#allocation127_spill] sm:$0xff]  ;;  %v7577_v20 = vld [vmem:[#allocation128_spill] sm:$0xff] }
 0x8db   :  { %3223 = vmatpush2.bf16.msra.mxu0 %v7567_v60  ;;  %3264 = vmatpush2.bf16.msra.mxu1 %v7568_v21  ;;  %v7578_v60 = vld [vmem:[#allocation129_spill] sm:$0xff]  ;;  %v7579_v21 = vld [vmem:[#allocation130_spill] sm:$0xff] }
 0x8dc   :  { %3224 = vmatprep.subr.bf16.mxu0 %v7569_v57  ;;  %3265 = vmatprep.subr.bf16.mxu1 %v7570_v54  ;;  %v7580_v57 = vld [vmem:[#allocation131_spill] sm:$0xff]  ;;  %v7581_v54 = vld [vmem:[#allocation132_spill] sm:$0xff] }
 0x8df   :  { %3225 = vmatpush2.bf16.msra.mxu0 %v7571_v61  ;;  %3266 = vmatpush2.bf16.msra.mxu1 %v7572_v32  ;;  %v7582_v61 = vld [vmem:[#allocation133_spill] sm:$0xff]  ;;  %v7583_v32 = vld [vmem:[#allocation134_spill] sm:$0xff] }
 0x8e0   :  { %3226 = vmatprep.subr.bf16.mxu0 %v7573_v37  ;;  %3267 = vmatprep.subr.bf16.mxu1 %v7574_v8  ;;  %v7584_v37 = vld [vmem:[#allocation135_spill] sm:$0xff]  ;;  %v7585_v8 = vld [vmem:[#allocation136_spill] sm:$0xff] }
 0x8e3   :  { %3227 = vmatpush2.bf16.msra.mxu0 %v7575_v7  ;;  %3268 = vmatpush2.bf16.msra.mxu1 %v7576_v44  ;;  %v7586_v7 = vld [vmem:[#allocation137_spill] sm:$0xff]  ;;  %v7587_v44 = vld [vmem:[#allocation138_spill] sm:$0xff] }
 0x8e4   :  { %3228 = vmatprep.subr.bf16.mxu0 %v7577_v20  ;;  %3269 = vmatprep.subr.bf16.mxu1 %v7578_v60  ;;  %v7588_v20 = vld [vmem:[#allocation139_spill] sm:$0xff]  ;;  %v7589_v60 = vld [vmem:[#allocation140_spill] sm:$0xff] }
 0x8e7   :  { %3229 = vmatpush2.bf16.msra.mxu0 %v7579_v21  ;;  %3270 = vmatpush2.bf16.msra.mxu1 %v7580_v57  ;;  %v7590_v21 = vld [vmem:[#allocation141_spill] sm:$0xff]  ;;  %v7591_v57 = vld [vmem:[#allocation142_spill] sm:$0xff] }
 0x8e8   :  { %3230 = vmatprep.subr.bf16.mxu0 %v7581_v54  ;;  %3271 = vmatprep.subr.bf16.mxu1 %v7582_v61  ;;  %v7592_v54 = vld [vmem:[#allocation143_spill] sm:$0xff]  ;;  %v7593_v61 = vld [vmem:[#allocation144_spill] sm:$0xff] }
 0x8eb   :  { %3231 = vmatpush2.bf16.msra.mxu0 %v7583_v32  ;;  %3272 = vmatpush2.bf16.msra.mxu1 %v7584_v37  ;;  %v7594_v32 = vld [vmem:[#allocation145_spill] sm:$0xff]  ;;  %v7595_v37 = vld [vmem:[#allocation146_spill] sm:$0xff] }
 0x8ec   :  { %3232 = vmatprep.subr.bf16.mxu0 %v7585_v8  ;;  %3273 = vmatprep.subr.bf16.mxu1 %v7586_v7  ;;  %v7596_v8 = vld [vmem:[#allocation147_spill] sm:$0xff]  ;;  %v7597_v7 = vld [vmem:[#allocation148_spill] sm:$0xff] }
 0x8ef   :  { %3233 = vmatpush2.bf16.msra.mxu0 %v7587_v44  ;;  %3274 = vmatpush2.bf16.msra.mxu1 %v7588_v20  ;;  %v7598_v44 = vld [vmem:[#allocation149_spill] sm:$0xff] }
 0x8f0   :  { %3234 = vmatprep.subr.bf16.mxu0 %v7589_v60  ;;  %3275 = vmatprep.subr.bf16.mxu1 %v7590_v21 }
 0x8f3   :  { %3235 = vmatpush2.bf16.msra.mxu0 %v7591_v57  ;;  %3276 = vmatpush2.bf16.msra.mxu1 %v7592_v54 }
 0x8f4   :  { %3236 = vmatprep.subr.bf16.mxu0 %v7593_v61  ;;  %3277 = vmatprep.subr.bf16.mxu1 %v7594_v32 }
 0x8f7   :  { %3237 = vmatpush2.bf16.msra.mxu0 %v7595_v37  ;;  %3278 = vmatpush2.bf16.msra.mxu1 %v7596_v8  ;;  %v7602_v8 = vld [vmem:[#allocation43_spill] sm:$0xff] }
 0x8f8   :  { %3288 = vmatprep.subr.bf16.mxu0 %v7597_v7  ;;  %3329 = vmatprep.subr.bf16.mxu1 %v7598_v44 }
 0x93a   :  { %v3007_v20 = vpop.f32.mrf.mxu0  ;;  %v3048_v60 = vpop.f32.mrf.mxu1 }
 0x93b   :  { %v3137_v61 = vadd.f32 %v3007_v20, %v7599_v35  ;;  %v3139_v32 = vadd.f32 %v3048_v60, %v7600_v17 }
 0x93c   :  { %v3009_v27 = vpop.f32.mrf.mxu0  ;;  %v3050_v21 = vpop.f32.mrf.mxu1 }
 0x93d   :  { %v3138_v37 = vadd.f32 %v3009_v27, %v7601_v52  ;;  %v4242_v10 = vmul.f32 -1.442695, %v3137_v61  ;;  %v3140_v48 = vadd.f32 %v3050_v21, %v7602_v8  ;;  %v4244_v7 = vmul.f32 -1.442695, %v3139_v32  ;;  %v7603_v8 = vld [vmem:[#allocation72_spill] sm:$0xff]  ;;  %v7604_v61 = vld [vmem:[#allocation73_spill] sm:$0xff] }
 0x93e   :  { %v3011_v0 = vpop.f32.mrf.mxu0  ;;  %v3052_v57 = vpop.f32.mrf.mxu1 }
 0x93f   :  { %v4243_v39 = vmul.f32 -1.442695, %v3138_v37  ;;  %4527 = vpow2.f32 %v4242_v10  ;;  %v4245_v44 = vmul.f32 -1.442695, %v3140_v48  ;;  %v7606_v37 = vld [vmem:[#allocation75_spill] sm:$0xff] }
 0x940   :  { %v3012_v13 = vpop.f32.mrf.mxu0  ;;  %v3053_v54 = vpop.f32.mrf.mxu1  ;;  %4529 = vpow2.f32 %v4244_v7 }
 0x941   :  { %4531 = vpow2.f32 %v4243_v39 }
 0x942   :  { %4533 = vpow2.f32 %v4245_v44  ;;  %v7605_v44 = vld [vmem:[#allocation74_spill] sm:$0xff] }
 0x94c   :  { %v4528_v0 = vpop.eup %4527 }
 0x94d   :  { %v4530_v57 = vpop.eup %4529  ;;  %v3151_v54 = vadd.f32 1.0, %v4528_v0 }
 0x94e   :  { %v4532_v13 = vpop.eup %4531  ;;  %v3163_v35 = vadd.f32 1.0, %v4530_v57 }
 0x94f   :  { %v4534_v26 = vpop.eup %4533  ;;  %v3152_v20 = vadd.f32 1.0, %v4532_v13  ;;  %4535 = vrcp.f32 %v3151_v54 }
 0x950   :  { %v3164_v17 = vadd.f32 1.0, %v4534_v26  ;;  %4537 = vrcp.f32 %v3163_v35 }
 0x951   :  { %4539 = vrcp.f32 %v3152_v20 }
 0x95c   :  { %v4536_v35 = vpop.eup %4535 }
 0x97a   :  { %v3089_v52 = vpop.f32.mrf.mxu0  ;;  %v3130_v27 = vpop.f32.mrf.mxu1 }
 0x97b   :  { %v3141_v21 = vadd.f32 %v3089_v52, %v7603_v8  ;;  %v3143_v10 = vadd.f32 %v3130_v27, %v7604_v61  ;;  %v4538_v52 = vpop.eup %4537 }
 0x97c   :  { %v3091_v48 = vpop.f32.mrf.mxu0  ;;  %v3132_v39 = vpop.f32.mrf.mxu1 }
 0x97d   :  { %4541 = vtanh.f32 %v3141_v21  ;;  %v4246_v7 = vmul.f32 -1.442695, %v3143_v10  ;;  %v3142_v32 = vadd.f32 %v3091_v48, %v7605_v44  ;;  %v3144_v60 = vadd.f32 %v3132_v39, %v7606_v37  ;;  %v4540_v20 = vpop.eup %4539 }
 0x97e   :  { %4543 = vrcp.f32 %v3164_v17  ;;  %v3093_v0 = vpop.f32.mrf.mxu0  ;;  %v3134_v57 = vpop.f32.mrf.mxu1  ;;  %v3183_v21 = vmul.f32 %v4538_v52, %v6236_v16 }
 0x97f   :  { %4545 = vpow2.f32 %v4246_v7  ;;  %v4247_v26 = vmul.f32 -1.442695, %v3144_v60 }
 0x980   :  { %4547 = vtanh.f32 %v3142_v32  ;;  %v3094_v13 = vpop.f32.mrf.mxu0  ;;  %v3135_v54 = vpop.f32.mrf.mxu1 }
 0x981   :  { %4549 = vpow2.f32 %v4247_v26 }
 0x98a   :  { %v4542_v27 = vpop.eup %4541 }
 0x98b   :  { %v4544_v8 = vpop.eup %4543  ;;  %v3185_v61 = vmul.f32 %v4542_v27, %v4536_v35  ;;  %v7609_v27 = vld [vmem:[#allocation193_spill] sm:$0xff] }
 0x98c   :  { %v4546_v10 = vpop.eup %4545  ;;  %v3184_v7 = vmul.f32 %v4544_v8, %v6240_v45  ;;  %v7607_v45 = vld [vmem:[#allocation191_spill] sm:$0xff]  ;;  %v7610_v8 = vld [vmem:[#allocation194_spill] sm:$0xff] }
 0x98d   :  { %v4548_v48 = vpop.eup %4547  ;;  %v6386_v39 = vadd.f32 %v3185_v61, %v3183_v21  ;;  %v3177_v17 = vadd.f32 1.0, %v4546_v10  ;;  %v7611_v21 = vld [vmem:[#allocation195_spill] sm:$0xff]  ;;  %v7612_v61 = vld [vmem:[#allocation196_spill] sm:$0xff]  ;;  %v7613_v10 = vld [vmem:[#allocation197_spill] sm:$0xff] }
 0x98e   :  { %v4550_v44 = vpop.eup %4549  ;;  %v3186_v32 = vmul.f32 %v4548_v48, %v4540_v20  ;;  %v7608_v20 = vld [vmem:[#allocation192_spill] sm:$0xff]  ;;  %v7614_v48 = vld [vmem:[#allocation198_spill] sm:$0xff] }
 0x98f   :  { %4551 = vtanh.f32 %v6386_v39  ;;  %v3178_v37 = vadd.f32 1.0, %v4550_v44  ;;  %v7616_v44 = vld [vmem:[#allocation200_spill] sm:$0xff] }
 0x990   :  { %4553 = vrcp.f32 %v3177_v17  ;;  %v6390_v60 = vadd.f32 %v3186_v32, %v3184_v7  ;;  %v7615_v17 = vld [vmem:[#allocation199_spill] sm:$0xff]  ;;  %v7617_v7 = vld [vmem:[#allocation201_spill] sm:$0xff]  ;;  %v7618_v32 = vld [vmem:[#allocation202_spill] sm:$0xff] }
 0x991   :  { %4555 = vrcp.f32 %v3178_v37  ;;  %v7619_v37 = vld [vmem:[#allocation203_spill] sm:$0xff] }
 0x992   :  { %4557 = vtanh.f32 %v6390_v60 }
 0x99c   :  { %v4552_v16 = vpop.eup %4551 }
 0x99d   :  { %v4554_v0 = vpop.eup %4553 }
 0x99e   :  { %v4556_v57 = vpop.eup %4555  ;;  %v3191_v13 = vmul.f32 %v4554_v0, %v4552_v16  ;;  %v7620_v16 = vld [vmem:[#allocation204_spill] sm:$0xff]  ;;  %v7621_v0 = vld [vmem:[#allocation205_spill] sm:$0xff] }
 0x99f   :  { %v4558_v26 = vpop.eup %4557 }
 0x9a0   :  { %v3192_v54 = vmul.f32 %v4558_v26, %v4556_v57  ;;  %v6393_v52 = vpack.c.bf16 %v3191_v13, %v3191_v13  ;;  %v7622_v57 = vld [vmem:[#allocation206_spill] sm:$0xff]  ;;  %v7623_v26 = vld [vmem:[#allocation207_spill] sm:$0xff]  ;;  %v7624_v13 = vld [vmem:[#allocation208_spill] sm:$0xff] }
 0x9a2   :  { %v3205_v35 = vpack.c.bf16 %v3192_v54, %v3192_v54  ;;  %v7625_v54 = vld [vmem:[#allocation209_spill] sm:$0xff] }
 0x9a4   :  { %3238 = vmatprep.mubr.bf16.mxu0 %v3205_v35  ;;  %3279 = vmatprep.mubr.bf16.mxu1 %v3205_v35 }
 0x9a5   :  { %3239 = vmatmul.mubr.bf16.vlgmr.msra.gmra.mxu0 %v6393_v52  ;;  %3280 = vmatmul.mubr.bf16.vlgmr.msra.gmra.mxu1 %v6393_v52 }
 0x9a6   :  { %3289 = vmatpush1.bf16.msra.mxu0 %v7134_v55  ;;  %3330 = vmatpush1.bf16.msra.mxu1 %v7135_v6 }
 0x9a7   :  { %3320 = vmatprep.mubr.bf16.mxu0 %v3205_v35  ;;  %3361 = vmatprep.mubr.bf16.mxu1 %v3205_v35  ;;  %v7626_v35 = vld [vmem:[#allocation210_spill] sm:$0xff] }
 0x9a8   :  { %3290 = vmatprep.subr.bf16.mxu0 %v7136_v12  ;;  %3331 = vmatprep.subr.bf16.mxu1 %v7137_v47 }
 0x9aa   :  { %3291 = vmatpush1.bf16.msra.mxu0 %v7138_v11  ;;  %3332 = vmatpush1.bf16.msra.mxu1 %v7139_v38 }
 0x9ab   :  { %3292 = vmatprep.subr.bf16.mxu0 %v7140_v58  ;;  %3333 = vmatprep.subr.bf16.mxu1 %v7227_v36 }
 0x9ae   :  { %3293 = vmatpush1.bf16.msra.mxu0 %v7228_v62  ;;  %3334 = vmatpush1.bf16.msra.mxu1 %v7229_v63 }
 0x9af   :  { %3294 = vmatprep.subr.bf16.mxu0 %v7230_v2  ;;  %3335 = vmatprep.subr.bf16.mxu1 %v7231_v9 }
 0x9b2   :  { %3295 = vmatpush1.bf16.msra.mxu0 %v7232_v51  ;;  %3336 = vmatpush1.bf16.msra.mxu1 %v7233_v56 }
 0x9b3   :  { %3296 = vmatprep.subr.bf16.mxu0 %v7234_v18  ;;  %3337 = vmatprep.subr.bf16.mxu1 %v7235_v46 }
 0x9b6   :  { %3297 = vmatpush1.bf16.msra.mxu0 %v7322_v41  ;;  %3338 = vmatpush1.bf16.msra.mxu1 %v7323_v31 }
 0x9b7   :  { %3298 = vmatprep.subr.bf16.mxu0 %v7324_v28  ;;  %3339 = vmatprep.subr.bf16.mxu1 %v7325_v22 }
 0x9ba   :  { %3299 = vmatpush1.bf16.msra.mxu0 %v7326_v23  ;;  %3340 = vmatpush1.bf16.msra.mxu1 %v7327_v19 }
 0x9bb   :  { %3300 = vmatprep.subr.bf16.mxu0 %v7328_v49  ;;  %3341 = vmatprep.subr.bf16.mxu1 %v7329_v4 }
 0x9be   :  { %3301 = vmatpush1.bf16.msra.mxu0 %v7330_v5  ;;  %3342 = vmatpush1.bf16.msra.mxu1 %v7331_v14 }
 0x9bf   :  { %3302 = vmatprep.subr.bf16.mxu0 %v7246_v30  ;;  %3343 = vmatprep.subr.bf16.mxu1 %v7247_v42 }
 0x9c2   :  { %3303 = vmatpush1.bf16.msra.mxu0 %v7248_v1  ;;  %3344 = vmatpush1.bf16.msra.mxu1 %v7332_v34 }
 0x9c3   :  { %3304 = vmatprep.subr.bf16.mxu0 %v7250_v25  ;;  %3345 = vmatprep.subr.bf16.mxu1 %v7251_v33 }
 0x9c6   :  { %3305 = vmatpush2.bf16.msra.mxu0 %v7252_v29  ;;  %3346 = vmatpush2.bf16.msra.mxu1 %v7253_v15 }
 0x9c7   :  { %3306 = vmatprep.subr.bf16.mxu0 %v7254_v3  ;;  %3347 = vmatprep.subr.bf16.mxu1 %v7255_v59 }
 0x9ca   :  { %3307 = vmatpush2.bf16.msra.mxu0 %v7256_v53  ;;  %3348 = vmatpush2.bf16.msra.mxu1 %v7171_v43 }
 0x9cb   :  { %3308 = vmatprep.subr.bf16.mxu0 %v7172_v40  ;;  %3349 = vmatprep.subr.bf16.mxu1 %v7173_v24 }
 0x9ce   :  { %3309 = vmatpush2.bf16.msra.mxu0 %v7257_v50  ;;  %3350 = vmatpush2.bf16.msra.mxu1 %v7607_v45 }
 0x9cf   :  { %3310 = vmatprep.subr.bf16.mxu0 %v7608_v20  ;;  %3351 = vmatprep.subr.bf16.mxu1 %v7609_v27 }
 0x9d2   :  { %3311 = vmatpush2.bf16.msra.mxu0 %v7610_v8  ;;  %3352 = vmatpush2.bf16.msra.mxu1 %v7611_v21  ;;  %v7696_v21 = vld [vmem:[#allocation46_spill] sm:$0xff] }
 0x9d3   :  { %3312 = vmatprep.subr.bf16.mxu0 %v7612_v61  ;;  %3353 = vmatprep.subr.bf16.mxu1 %v7613_v10  ;;  %v7694_v10 = vld [vmem:[#allocation44_spill] sm:$0xff]  ;;  %v7695_v61 = vld [vmem:[#allocation45_spill] sm:$0xff] }
 0x9d6   :  { %3313 = vmatpush2.bf16.msra.mxu0 %v7614_v48  ;;  %3354 = vmatpush2.bf16.msra.mxu1 %v7615_v17 }
 0x9d7   :  { %3314 = vmatprep.subr.bf16.mxu0 %v7616_v44  ;;  %3355 = vmatprep.subr.bf16.mxu1 %v7617_v7  ;;  %v7627_v44 = vld [vmem:[#allocation211_spill] sm:$0xff]  ;;  %v7628_v7 = vld [vmem:[#allocation84_spill] sm:$0xff] }
 0x9da   :  { %3315 = vmatpush2.bf16.msra.mxu0 %v7618_v32  ;;  %3356 = vmatpush2.bf16.msra.mxu1 %v7619_v37  ;;  %v7629_v32 = vld [vmem:[#allocation86_spill] sm:$0xff] }
 0x9db   :  { %3316 = vmatprep.subr.bf16.mxu0 %v7620_v16  ;;  %3357 = vmatprep.subr.bf16.mxu1 %v7621_v0  ;;  %v7630_v0 = vld [vmem:[#allocation85_spill] sm:$0xff]  ;;  %v7639_v16 = vld [vmem:[#allocation95_spill] sm:$0xff] }
 0x9de   :  { %3317 = vmatpush2.bf16.msra.mxu0 %v7622_v57  ;;  %3358 = vmatpush2.bf16.msra.mxu1 %v7623_v26  ;;  %v7631_v57 = vld [vmem:[#allocation87_spill] sm:$0xff]  ;;  %v7632_v26 = vld [vmem:[#allocation88_spill] sm:$0xff] }
 0x9df   :  { %3318 = vmatprep.subr.bf16.mxu0 %v7624_v13  ;;  %3359 = vmatprep.subr.bf16.mxu1 %v7625_v54  ;;  %v7633_v13 = vld [vmem:[#allocation89_spill] sm:$0xff]  ;;  %v7634_v54 = vld [vmem:[#allocation90_spill] sm:$0xff] }
 0x9e2   :  { %3319 = vmatpush2.bf16.msra.mxu0 %v7626_v35  ;;  %3360 = vmatpush2.bf16.msra.mxu1 %v7627_v44  ;;  %v7635_v35 = vld [vmem:[#allocation91_spill] sm:$0xff]  ;;  %v7636_v44 = vld [vmem:[#allocation92_spill] sm:$0xff] }
 0x9e3   :  { %3439 = vmatprep.subr.bf16.mxu0 %v7628_v7  ;;  %3480 = vmatprep.subr.bf16.mxu1 %v7629_v32  ;;  %v7637_v7 = vld [vmem:[#allocation93_spill] sm:$0xff]  ;;  %v7638_v32 = vld [vmem:[#allocation94_spill] sm:$0xff] }
 0x9e5   :  { %3321 = vmatmul.mubr.bf16.vlgmr.msra.gmra.mxu0 %v6393_v52  ;;  %3362 = vmatmul.mubr.bf16.vlgmr.msra.gmra.mxu1 %v6393_v52  ;;  %v7640_v52 = vld [vmem:[#allocation96_spill] sm:$0xff] }
 0x9e6   :  { %3440 = vmatpush1.bf16.msra.mxu0 %v7630_v0  ;;  %3481 = vmatpush1.bf16.msra.mxu1 %v7631_v57  ;;  %v7641_v0 = vld [vmem:[#allocation97_spill] sm:$0xff]  ;;  %v7642_v57 = vld [vmem:[#allocation98_spill] sm:$0xff] }
 0x9e7   :  { %3441 = vmatprep.subr.bf16.mxu0 %v7632_v26  ;;  %3482 = vmatprep.subr.bf16.mxu1 %v7633_v13  ;;  %v7643_v26 = vld [vmem:[#allocation99_spill] sm:$0xff]  ;;  %v7644_v13 = vld [vmem:[#allocation100_spill] sm:$0xff] }
 0x9ea   :  { %3442 = vmatpush1.bf16.msra.mxu0 %v7634_v54  ;;  %3483 = vmatpush1.bf16.msra.mxu1 %v7635_v35  ;;  %v7645_v54 = vld [vmem:[#allocation101_spill] sm:$0xff]  ;;  %v7646_v35 = vld [vmem:[#allocation102_spill] sm:$0xff] }
 0x9eb   :  { %3443 = vmatprep.subr.bf16.mxu0 %v7636_v44  ;;  %3484 = vmatprep.subr.bf16.mxu1 %v7637_v7  ;;  %v7647_v44 = vld [vmem:[#allocation103_spill] sm:$0xff]  ;;  %v7648_v7 = vld [vmem:[#allocation104_spill] sm:$0xff] }
 0x9ee   :  { %3444 = vmatpush1.bf16.msra.mxu0 %v7638_v32  ;;  %3485 = vmatpush1.bf16.msra.mxu1 %v7639_v16  ;;  %v7649_v32 = vld [vmem:[#allocation105_spill] sm:$0xff]  ;;  %v7650_v16 = vld [vmem:[#allocation106_spill] sm:$0xff] }
 0x9ef   :  { %3445 = vmatprep.subr.bf16.mxu0 %v7640_v52  ;;  %3486 = vmatprep.subr.bf16.mxu1 %v7641_v0  ;;  %v7651_v52 = vld [vmem:[#allocation107_spill] sm:$0xff]  ;;  %v7652_v0 = vld [vmem:[#allocation108_spill] sm:$0xff] }
 0x9f2   :  { %3446 = vmatpush1.bf16.msra.mxu0 %v7642_v57  ;;  %3487 = vmatpush1.bf16.msra.mxu1 %v7643_v26  ;;  %v7653_v57 = vld [vmem:[#allocation109_spill] sm:$0xff]  ;;  %v7654_v26 = vld [vmem:[#allocation110_spill] sm:$0xff] }
 0x9f3   :  { %3447 = vmatprep.subr.bf16.mxu0 %v7644_v13  ;;  %3488 = vmatprep.subr.bf16.mxu1 %v7645_v54  ;;  %v7655_v13 = vld [vmem:[#allocation111_spill] sm:$0xff]  ;;  %v7656_v54 = vld [vmem:[#allocation112_spill] sm:$0xff] }
 0x9f6   :  { %3448 = vmatpush1.bf16.msra.mxu0 %v7646_v35  ;;  %3489 = vmatpush1.bf16.msra.mxu1 %v7647_v44  ;;  %v7657_v35 = vld [vmem:[#allocation113_spill] sm:$0xff]  ;;  %v7658_v44 = vld [vmem:[#allocation114_spill] sm:$0xff] }
 0x9f7   :  { %3449 = vmatprep.subr.bf16.mxu0 %v7648_v7  ;;  %3490 = vmatprep.subr.bf16.mxu1 %v7649_v32  ;;  %v7659_v7 = vld [vmem:[#allocation115_spill] sm:$0xff]  ;;  %v7660_v32 = vld [vmem:[#allocation116_spill] sm:$0xff] }
 0x9fa   :  { %3450 = vmatpush1.bf16.msra.mxu0 %v7650_v16  ;;  %3491 = vmatpush1.bf16.msra.mxu1 %v7651_v52  ;;  %v7661_v16 = vld [vmem:[#allocation117_spill] sm:$0xff]  ;;  %v7662_v52 = vld [vmem:[#allocation118_spill] sm:$0xff] }
 0x9fb   :  { %3451 = vmatprep.subr.bf16.mxu0 %v7652_v0  ;;  %3492 = vmatprep.subr.bf16.mxu1 %v7653_v57  ;;  %v7663_v0 = vld [vmem:[#allocation119_spill] sm:$0xff]  ;;  %v7664_v57 = vld [vmem:[#allocation120_spill] sm:$0xff] }
 0x9fe   :  { %3452 = vmatpush1.bf16.msra.mxu0 %v7654_v26  ;;  %3493 = vmatpush1.bf16.msra.mxu1 %v7655_v13  ;;  %v7665_v26 = vld [vmem:[#allocation121_spill] sm:$0xff]  ;;  %v7666_v13 = vld [vmem:[#allocation122_spill] sm:$0xff] }
 0x9ff   :  { %3453 = vmatprep.subr.bf16.mxu0 %v7656_v54  ;;  %3494 = vmatprep.subr.bf16.mxu1 %v7657_v35  ;;  %v7667_v54 = vld [vmem:[#allocation123_spill] sm:$0xff]  ;;  %v7668_v35 = vld [vmem:[#allocation124_spill] sm:$0xff] }
 0xa02   :  { %3454 = vmatpush1.bf16.msra.mxu0 %v7658_v44  ;;  %3495 = vmatpush1.bf16.msra.mxu1 %v7659_v7  ;;  %v7669_v44 = vld [vmem:[#allocation125_spill] sm:$0xff]  ;;  %v7670_v7 = vld [vmem:[#allocation126_spill] sm:$0xff] }
 0xa03   :  { %3455 = vmatprep.subr.bf16.mxu0 %v7660_v32  ;;  %3496 = vmatprep.subr.bf16.mxu1 %v7661_v16  ;;  %v7671_v32 = vld [vmem:[#allocation127_spill] sm:$0xff]  ;;  %v7672_v16 = vld [vmem:[#allocation128_spill] sm:$0xff] }
 0xa06   :  { %3456 = vmatpush2.bf16.msra.mxu0 %v7662_v52  ;;  %3497 = vmatpush2.bf16.msra.mxu1 %v7663_v0  ;;  %v7673_v52 = vld [vmem:[#allocation129_spill] sm:$0xff]  ;;  %v7674_v0 = vld [vmem:[#allocation130_spill] sm:$0xff] }
 0xa07   :  { %3457 = vmatprep.subr.bf16.mxu0 %v7664_v57  ;;  %3498 = vmatprep.subr.bf16.mxu1 %v7665_v26  ;;  %v7675_v57 = vld [vmem:[#allocation131_spill] sm:$0xff]  ;;  %v7676_v26 = vld [vmem:[#allocation132_spill] sm:$0xff] }
 0xa0a   :  { %3458 = vmatpush2.bf16.msra.mxu0 %v7666_v13  ;;  %3499 = vmatpush2.bf16.msra.mxu1 %v7667_v54  ;;  %v7677_v13 = vld [vmem:[#allocation133_spill] sm:$0xff]  ;;  %v7678_v54 = vld [vmem:[#allocation134_spill] sm:$0xff] }
 0xa0b   :  { %3459 = vmatprep.subr.bf16.mxu0 %v7668_v35  ;;  %3500 = vmatprep.subr.bf16.mxu1 %v7669_v44  ;;  %v7679_v35 = vld [vmem:[#allocation135_spill] sm:$0xff]  ;;  %v7680_v44 = vld [vmem:[#allocation136_spill] sm:$0xff] }
 0xa0e   :  { %3460 = vmatpush2.bf16.msra.mxu0 %v7670_v7  ;;  %3501 = vmatpush2.bf16.msra.mxu1 %v7671_v32  ;;  %v7681_v7 = vld [vmem:[#allocation137_spill] sm:$0xff]  ;;  %v7682_v32 = vld [vmem:[#allocation138_spill] sm:$0xff] }
 0xa0f   :  { %3461 = vmatprep.subr.bf16.mxu0 %v7672_v16  ;;  %3502 = vmatprep.subr.bf16.mxu1 %v7673_v52  ;;  %v7683_v16 = vld [vmem:[#allocation139_spill] sm:$0xff]  ;;  %v7684_v52 = vld [vmem:[#allocation140_spill] sm:$0xff] }
 0xa12   :  { %3462 = vmatpush2.bf16.msra.mxu0 %v7674_v0  ;;  %3503 = vmatpush2.bf16.msra.mxu1 %v7675_v57  ;;  %v7685_v0 = vld [vmem:[#allocation141_spill] sm:$0xff]  ;;  %v7686_v57 = vld [vmem:[#allocation142_spill] sm:$0xff] }
 0xa13   :  { %3463 = vmatprep.subr.bf16.mxu0 %v7676_v26  ;;  %3504 = vmatprep.subr.bf16.mxu1 %v7677_v13  ;;  %v7687_v26 = vld [vmem:[#allocation143_spill] sm:$0xff]  ;;  %v7688_v13 = vld [vmem:[#allocation144_spill] sm:$0xff] }
 0xa16   :  { %3464 = vmatpush2.bf16.msra.mxu0 %v7678_v54  ;;  %3505 = vmatpush2.bf16.msra.mxu1 %v7679_v35  ;;  %v7689_v54 = vld [vmem:[#allocation145_spill] sm:$0xff]  ;;  %v7690_v35 = vld [vmem:[#allocation146_spill] sm:$0xff] }
 0xa17   :  { %3465 = vmatprep.subr.bf16.mxu0 %v7680_v44  ;;  %3506 = vmatprep.subr.bf16.mxu1 %v7681_v7  ;;  %v7691_v44 = vld [vmem:[#allocation147_spill] sm:$0xff]  ;;  %v7692_v7 = vld [vmem:[#allocation148_spill] sm:$0xff] }
 0xa1a   :  { %3466 = vmatpush2.bf16.msra.mxu0 %v7682_v32  ;;  %3507 = vmatpush2.bf16.msra.mxu1 %v7683_v16  ;;  %v7693_v32 = vld [vmem:[#allocation149_spill] sm:$0xff] }
 0xa1b   :  { %3467 = vmatprep.subr.bf16.mxu0 %v7684_v52  ;;  %3508 = vmatprep.subr.bf16.mxu1 %v7685_v0 }
 0xa1e   :  { %3468 = vmatpush2.bf16.msra.mxu0 %v7686_v57  ;;  %3509 = vmatpush2.bf16.msra.mxu1 %v7687_v26 }
 0xa1f   :  { %3469 = vmatprep.subr.bf16.mxu0 %v7688_v13  ;;  %3510 = vmatprep.subr.bf16.mxu1 %v7689_v54 }
 0xa22   :  { %3470 = vmatpush2.bf16.msra.mxu0 %v7690_v35  ;;  %3511 = vmatpush2.bf16.msra.mxu1 %v7691_v44  ;;  %v7697_v44 = vld [vmem:[#allocation47_spill] sm:$0xff] }
 0xa23   :  { %3521 = vmatprep.subr.bf16.mxu0 %v7692_v7  ;;  %3562 = vmatprep.subr.bf16.mxu1 %v7693_v32 }
 0xa65   :  { %v3240_v16 = vpop.f32.mrf.mxu0  ;;  %v3281_v52 = vpop.f32.mrf.mxu1 }
 0xa66   :  { %v3370_v13 = vadd.f32 %v3240_v16, %v7694_v10  ;;  %v3372_v54 = vadd.f32 %v3281_v52, %v7695_v61  ;;  %v7698_v52 = vld [vmem:[#allocation76_spill] sm:$0xff] }
 0xa67   :  { %v3242_v37 = vpop.f32.mrf.mxu0  ;;  %v3283_v0 = vpop.f32.mrf.mxu1 }
 0xa68   :  { %v3371_v35 = vadd.f32 %v3242_v37, %v7696_v21  ;;  %v4248_v8 = vmul.f32 -1.442695, %v3370_v13  ;;  %v3373_v27 = vadd.f32 %v3283_v0, %v7697_v44  ;;  %v4250_v7 = vmul.f32 -1.442695, %v3372_v54  ;;  %v7699_v13 = vld [vmem:[#allocation77_spill] sm:$0xff] }
 0xa69   :  { %v3244_v17 = vpop.f32.mrf.mxu0  ;;  %v3285_v57 = vpop.f32.mrf.mxu1 }
 0xa6a   :  { %v4249_v20 = vmul.f32 -1.442695, %v3371_v35  ;;  %4559 = vpow2.f32 %v4248_v8  ;;  %v4251_v32 = vmul.f32 -1.442695, %v3373_v27  ;;  %v7700_v35 = vld [vmem:[#allocation78_spill] sm:$0xff] }
 0xa6b   :  { %v3245_v48 = vpop.f32.mrf.mxu0  ;;  %v3286_v26 = vpop.f32.mrf.mxu1  ;;  %4561 = vpow2.f32 %v4250_v7  ;;  %v7701_v7 = vld [vmem:[#allocation79_spill] sm:$0xff] }
 0xa6c   :  { %4563 = vpow2.f32 %v4249_v20 }
 0xa6d   :  { %4565 = vpow2.f32 %v4251_v32 }
 0xa77   :  { %v4560_v17 = vpop.eup %4559 }
 0xa78   :  { %v4562_v57 = vpop.eup %4561  ;;  %v3384_v26 = vadd.f32 1.0, %v4560_v17 }
 0xa79   :  { %v4564_v48 = vpop.eup %4563  ;;  %v3396_v10 = vadd.f32 1.0, %v4562_v57 }
 0xa7a   :  { %v4566_v45 = vpop.eup %4565  ;;  %v3385_v16 = vadd.f32 1.0, %v4564_v48  ;;  %4567 = vrcp.f32 %v3384_v26 }
 0xa7b   :  { %v3397_v61 = vadd.f32 1.0, %v4566_v45  ;;  %4569 = vrcp.f32 %v3396_v10 }
 0xa7c   :  { %4571 = vrcp.f32 %v3385_v16 }
 0xa87   :  { %v4568_v10 = vpop.eup %4567 }
 0xaa5   :  { %v3322_v21 = vpop.f32.mrf.mxu0  ;;  %v3363_v37 = vpop.f32.mrf.mxu1 }
 0xaa6   :  { %v3374_v0 = vadd.f32 %v3322_v21, %v7698_v52  ;;  %v3376_v8 = vadd.f32 %v3363_v37, %v7699_v13  ;;  %v4570_v21 = vpop.eup %4569 }
 0xaa7   :  { %v3324_v27 = vpop.f32.mrf.mxu0  ;;  %v3365_v20 = vpop.f32.mrf.mxu1 }
 0xaa8   :  { %4573 = vtanh.f32 %v3374_v0  ;;  %v4252_v54 = vmul.f32 -1.442695, %v3376_v8  ;;  %v3375_v44 = vadd.f32 %v3324_v27, %v7700_v35  ;;  %v3377_v32 = vadd.f32 %v3365_v20, %v7701_v7  ;;  %v4572_v16 = vpop.eup %4571 }
 0xaa9   :  { %4575 = vrcp.f32 %v3397_v61  ;;  %v3326_v17 = vpop.f32.mrf.mxu0  ;;  %v3367_v57 = vpop.f32.mrf.mxu1  ;;  %v3416_v0 = vmul.f32 %v4570_v21, %v6386_v39 }
 0xaaa   :  { %4577 = vpow2.f32 %v4252_v54  ;;  %v4253_v45 = vmul.f32 -1.442695, %v3377_v32 }
 0xaab   :  { %4579 = vtanh.f32 %v3375_v44  ;;  %v3327_v48 = vpop.f32.mrf.mxu0  ;;  %v3368_v26 = vpop.f32.mrf.mxu1 }
 0xaac   :  { %4581 = vpow2.f32 %v4253_v45 }
 0xab5   :  { %v4574_v37 = vpop.eup %4573 }
 0xab6   :  { %v4576_v52 = vpop.eup %4575  ;;  %v3418_v13 = vmul.f32 %v4574_v37, %v4568_v10 }
 0xab7   :  { %v4578_v8 = vpop.eup %4577  ;;  %v3417_v54 = vmul.f32 %v4576_v52, %v6390_v60 }
 0xab8   :  { %v4580_v27 = vpop.eup %4579  ;;  %v6536_v20 = vadd.f32 %v3418_v13, %v3416_v0  ;;  %v3410_v61 = vadd.f32 1.0, %v4578_v8 }
 0xab9   :  { %v4582_v35 = vpop.eup %4581  ;;  %v3419_v44 = vmul.f32 %v4580_v27, %v4572_v16 }
 0xaba   :  { %4583 = vtanh.f32 %v6536_v20  ;;  %v3411_v7 = vadd.f32 1.0, %v4582_v35 }
 0xabb   :  { %4585 = vrcp.f32 %v3410_v61  ;;  %v6540_v32 = vadd.f32 %v3419_v44, %v3417_v54  ;;  %v7727_v54 = vld [vmem:[#allocation80_spill] sm:$0xff] }
 0xabc   :  { %4587 = vrcp.f32 %v3411_v7  ;;  %v7728_v7 = vld [vmem:[#allocation81_spill] sm:$0xff] }
 0xabd   :  { %4589 = vtanh.f32 %v6540_v32 }
 0xac7   :  { %v4584_v39 = vpop.eup %4583 }
 0xac8   :  { %v4586_v17 = vpop.eup %4585 }
 0xac9   :  { %v4588_v57 = vpop.eup %4587  ;;  %v3424_v48 = vmul.f32 %v4586_v17, %v4584_v39 }
 0xaca   :  { %v4590_v45 = vpop.eup %4589 }
 0xacb   :  { %v3425_v26 = vmul.f32 %v4590_v45, %v4588_v57  ;;  %v6543_v21 = vpack.c.bf16 %v3424_v48, %v3424_v48  ;;  %v7729_v48 = vld [vmem:[#allocation82_spill] sm:$0xff] }
 0xacd   :  { %v3438_v10 = vpack.c.bf16 %v3425_v26, %v3425_v26 }
 0xacf   :  { %3471 = vmatprep.mubr.bf16.mxu0 %v3438_v10  ;;  %3512 = vmatprep.mubr.bf16.mxu1 %v3438_v10 }
 0xad0   :  { %3472 = vmatmul.mubr.bf16.vlgmr.msra.gmra.mxu0 %v6543_v21  ;;  %3513 = vmatmul.mubr.bf16.vlgmr.msra.gmra.mxu1 %v6543_v21 }
 0xad1   :  { %3522 = vmatpush1.bf16.msra.mxu0 %v7134_v55  ;;  %3563 = vmatpush1.bf16.msra.mxu1 %v7135_v6  ;;  %v7702_v55 = vld [vmem:[#allocation191_spill] sm:$0xff]  ;;  %v7703_v6 = vld [vmem:[#allocation192_spill] sm:$0xff] }
 0xad2   :  { %3553 = vmatprep.mubr.bf16.mxu0 %v3438_v10  ;;  %3594 = vmatprep.mubr.bf16.mxu1 %v3438_v10  ;;  %v7730_v10 = vld [vmem:[#allocation83_spill] sm:$0xff] }
 0xad3   :  { %3523 = vmatprep.subr.bf16.mxu0 %v7136_v12  ;;  %3564 = vmatprep.subr.bf16.mxu1 %v7137_v47  ;;  %v7704_v12 = vld [vmem:[#allocation193_spill] sm:$0xff]  ;;  %v7705_v47 = vld [vmem:[#allocation194_spill] sm:$0xff] }
 0xad5   :  { %3524 = vmatpush1.bf16.msra.mxu0 %v7138_v11  ;;  %3565 = vmatpush1.bf16.msra.mxu1 %v7139_v38  ;;  %v7706_v11 = vld [vmem:[#allocation195_spill] sm:$0xff]  ;;  %v7707_v38 = vld [vmem:[#allocation196_spill] sm:$0xff] }
 0xad6   :  { %3525 = vmatprep.subr.bf16.mxu0 %v7140_v58  ;;  %3566 = vmatprep.subr.bf16.mxu1 %v7227_v36  ;;  %v7708_v58 = vld [vmem:[#allocation197_spill] sm:$0xff] }
 0xad7   :  { %v7712_v36 = vld [vmem:[#allocation201_spill] sm:$0xff] }
 0xad9   :  { %3526 = vmatpush1.bf16.msra.mxu0 %v7228_v62  ;;  %3567 = vmatpush1.bf16.msra.mxu1 %v7229_v63  ;;  %v7713_v62 = vld [vmem:[#allocation202_spill] sm:$0xff]  ;;  %v7714_v63 = vld [vmem:[#allocation203_spill] sm:$0xff] }
 0xada   :  { %3527 = vmatprep.subr.bf16.mxu0 %v7230_v2  ;;  %3568 = vmatprep.subr.bf16.mxu1 %v7231_v9  ;;  %v7715_v2 = vld [vmem:[#allocation204_spill] sm:$0xff]  ;;  %v7716_v9 = vld [vmem:[#allocation205_spill] sm:$0xff] }
 0xadd   :  { %3528 = vmatpush1.bf16.msra.mxu0 %v7232_v51  ;;  %3569 = vmatpush1.bf16.msra.mxu1 %v7233_v56  ;;  %v7717_v51 = vld [vmem:[#allocation206_spill] sm:$0xff]  ;;  %v7718_v56 = vld [vmem:[#allocation207_spill] sm:$0xff] }
 0xade   :  { %3529 = vmatprep.subr.bf16.mxu0 %v7234_v18  ;;  %3570 = vmatprep.subr.bf16.mxu1 %v7235_v46  ;;  %v7719_v18 = vld [vmem:[#allocation208_spill] sm:$0xff]  ;;  %v7720_v46 = vld [vmem:[#allocation209_spill] sm:$0xff] }
 0xae1   :  { %3530 = vmatpush1.bf16.msra.mxu0 %v7322_v41  ;;  %3571 = vmatpush1.bf16.msra.mxu1 %v7323_v31  ;;  %v7724_v31 = vld [vmem:[#allocation49_spill] sm:$0xff] }
 0xae2   :  { %3531 = vmatprep.subr.bf16.mxu0 %v7324_v28  ;;  %3572 = vmatprep.subr.bf16.mxu1 %v7325_v22  ;;  %v7725_v22 = vld [vmem:[#allocation50_spill] sm:$0xff] }
 0xae5   :  { %3532 = vmatpush1.bf16.msra.mxu0 %v7326_v23  ;;  %3573 = vmatpush1.bf16.msra.mxu1 %v7327_v19 }
 0xae6   :  { %3533 = vmatprep.subr.bf16.mxu0 %v7328_v49  ;;  %3574 = vmatprep.subr.bf16.mxu1 %v7329_v4  ;;  %v7726_v49 = vld [vmem:[#allocation51_spill] sm:$0xff] }
 0xae9   :  { %3534 = vmatpush1.bf16.msra.mxu0 %v7330_v5  ;;  %3575 = vmatpush1.bf16.msra.mxu1 %v7331_v14 }
 0xaea   :  { %3535 = vmatprep.subr.bf16.mxu0 %v7246_v30  ;;  %3576 = vmatprep.subr.bf16.mxu1 %v7247_v42  ;;  %v7721_v42 = vld [vmem:[#allocation210_spill] sm:$0xff]  ;;  %v7723_v30 = vld [vmem:[#allocation48_spill] sm:$0xff] }
 0xaed   :  { %3536 = vmatpush1.bf16.msra.mxu0 %v7248_v1  ;;  %3577 = vmatpush1.bf16.msra.mxu1 %v7332_v34  ;;  %v7722_v1 = vld [vmem:[#allocation211_spill] sm:$0xff] }
 0xaee   :  { %3537 = vmatprep.subr.bf16.mxu0 %v7250_v25  ;;  %3578 = vmatprep.subr.bf16.mxu1 %v7251_v33 }
 0xaf1   :  { %3538 = vmatpush2.bf16.msra.mxu0 %v7252_v29  ;;  %3579 = vmatpush2.bf16.msra.mxu1 %v7253_v15 }
 0xaf2   :  { %3539 = vmatprep.subr.bf16.mxu0 %v7254_v3  ;;  %3580 = vmatprep.subr.bf16.mxu1 %v7255_v59 }
 0xaf5   :  { %3540 = vmatpush2.bf16.msra.mxu0 %v7256_v53  ;;  %3581 = vmatpush2.bf16.msra.mxu1 %v7171_v43  ;;  %v7709_v43 = vld [vmem:[#allocation198_spill] sm:$0xff] }
 0xaf6   :  { %3541 = vmatprep.subr.bf16.mxu0 %v7172_v40  ;;  %3582 = vmatprep.subr.bf16.mxu1 %v7173_v24  ;;  %v7710_v40 = vld [vmem:[#allocation199_spill] sm:$0xff]  ;;  %v7711_v24 = vld [vmem:[#allocation200_spill] sm:$0xff] }
 0xaf9   :  { %3542 = vmatpush2.bf16.msra.mxu0 %v7257_v50  ;;  %3583 = vmatpush2.bf16.msra.mxu1 %v7702_v55 }
 0xafa   :  { %3543 = vmatprep.subr.bf16.mxu0 %v7703_v6  ;;  %3584 = vmatprep.subr.bf16.mxu1 %v7704_v12 }
 0xafd   :  { %3544 = vmatpush2.bf16.msra.mxu0 %v7705_v47  ;;  %3585 = vmatpush2.bf16.msra.mxu1 %v7706_v11 }
 0xafe   :  { %3545 = vmatprep.subr.bf16.mxu0 %v7707_v38  ;;  %3586 = vmatprep.subr.bf16.mxu1 %v7708_v58 }
 0xb01   :  { %3546 = vmatpush2.bf16.msra.mxu0 %v7709_v43  ;;  %3587 = vmatpush2.bf16.msra.mxu1 %v7710_v40 }
 0xb02   :  { %3547 = vmatprep.subr.bf16.mxu0 %v7711_v24  ;;  %3588 = vmatprep.subr.bf16.mxu1 %v7712_v36 }
 0xb05   :  { %3548 = vmatpush2.bf16.msra.mxu0 %v7713_v62  ;;  %3589 = vmatpush2.bf16.msra.mxu1 %v7714_v63 }
 0xb06   :  { %3549 = vmatprep.subr.bf16.mxu0 %v7715_v2  ;;  %3590 = vmatprep.subr.bf16.mxu1 %v7716_v9 }
 0xb09   :  { %3550 = vmatpush2.bf16.msra.mxu0 %v7717_v51  ;;  %3591 = vmatpush2.bf16.msra.mxu1 %v7718_v56 }
 0xb0a   :  { %3551 = vmatprep.subr.bf16.mxu0 %v7719_v18  ;;  %3592 = vmatprep.subr.bf16.mxu1 %v7720_v46 }
 0xb0d   :  { %3552 = vmatpush2.bf16.msra.mxu0 %v7721_v42  ;;  %3593 = vmatpush2.bf16.msra.mxu1 %v7722_v1 }
 0xb10   :  { %3554 = vmatmul.mubr.bf16.vlgmr.msra.gmra.mxu0 %v6543_v21  ;;  %3595 = vmatmul.mubr.bf16.vlgmr.msra.gmra.mxu1 %v6543_v21 }
 0xb90   :  { %v3473_v50 = vpop.f32.mrf.mxu0  ;;  %v3514_v25 = vpop.f32.mrf.mxu1 }
 0xb91   :  { %v3603_v41 = vadd.f32 %v3473_v50, %v7723_v30  ;;  %v3605_v28 = vadd.f32 %v3514_v25, %v7724_v31 }
 0xb92   :  { %v3475_v33 = vpop.f32.mrf.mxu0  ;;  %v3516_v29 = vpop.f32.mrf.mxu1 }
 0xb93   :  { %v3604_v23 = vadd.f32 %v3475_v33, %v7725_v22  ;;  %v4254_v19 = vmul.f32 -1.442695, %v3603_v41  ;;  %v3606_v4 = vadd.f32 %v3516_v29, %v7726_v49  ;;  %v4256_v5 = vmul.f32 -1.442695, %v3605_v28 }
 0xb94   :  { %v3477_v15 = vpop.f32.mrf.mxu0  ;;  %v3518_v3 = vpop.f32.mrf.mxu1 }
 0xb95   :  { %v4255_v14 = vmul.f32 -1.442695, %v3604_v23  ;;  %4591 = vpow2.f32 %v4254_v19  ;;  %v4257_v34 = vmul.f32 -1.442695, %v3606_v4 }
 0xb96   :  { %v3478_v59 = vpop.f32.mrf.mxu0  ;;  %v3519_v53 = vpop.f32.mrf.mxu1  ;;  %4593 = vpow2.f32 %v4256_v5 }
 0xb97   :  { %4595 = vpow2.f32 %v4255_v14 }
 0xb98   :  { %4597 = vpow2.f32 %v4257_v34 }
 0xba2   :  { %v4592_v60 = vpop.eup %4591 }
 0xba3   :  { %v4594_v16 = vpop.eup %4593  ;;  %v3617_v52 = vadd.f32 1.0, %v4592_v60 }
 0xba4   :  { %v4596_v37 = vpop.eup %4595  ;;  %v3629_v13 = vadd.f32 1.0, %v4594_v16 }
 0xba5   :  { %v4598_v0 = vpop.eup %4597  ;;  %v3618_v8 = vadd.f32 1.0, %v4596_v37  ;;  %4599 = vrcp.f32 %v3617_v52 }
 0xba6   :  { %v3630_v27 = vadd.f32 1.0, %v4598_v0  ;;  %4601 = vrcp.f32 %v3629_v13 }
 0xba7   :  { %4603 = vrcp.f32 %v3618_v8 }
 0xbb2   :  { %v4600_v38 = vpop.eup %4599 }
 0xbb3   :  { %v4602_v58 = vpop.eup %4601 }
 0xbb4   :  { %v4604_v43 = vpop.eup %4603  ;;  %v3649_v36 = vmul.f32 %v4602_v58, %v6536_v20 }
 0xbd0   :  { %v3555_v61 = vpop.f32.mrf.mxu0  ;;  %v3596_v35 = vpop.f32.mrf.mxu1 }
 0xbd1   :  { %v3607_v44 = vadd.f32 %v3555_v61, %v7727_v54  ;;  %v3609_v39 = vadd.f32 %v3596_v35, %v7728_v7 }
 0xbd2   :  { %v3557_v17 = vpop.f32.mrf.mxu0  ;;  %v3598_v57 = vpop.f32.mrf.mxu1 }
 0xbd3   :  { %4605 = vtanh.f32 %v3607_v44  ;;  %v4258_v45 = vmul.f32 -1.442695, %v3609_v39  ;;  %v3608_v26 = vadd.f32 %v3557_v17, %v7729_v48  ;;  %v3610_v21 = vadd.f32 %v3598_v57, %v7730_v10 }
 0xbd4   :  { %4607 = vrcp.f32 %v3630_v27  ;;  %v3559_v55 = vpop.f32.mrf.mxu0  ;;  %v3600_v6 = vpop.f32.mrf.mxu1 }
 0xbd5   :  { %4609 = vpow2.f32 %v4258_v45  ;;  %v4259_v12 = vmul.f32 -1.442695, %v3610_v21 }
 0xbd6   :  { %4611 = vtanh.f32 %v3608_v26  ;;  %v3560_v47 = vpop.f32.mrf.mxu0  ;;  %v3601_v11 = vpop.f32.mrf.mxu1 }
 0xbd7   :  { %4613 = vpow2.f32 %v4259_v12 }
 0xbe0   :  { %v4606_v40 = vpop.eup %4605 }
 0xbe1   :  { %v4608_v24 = vpop.eup %4607  ;;  %v3651_v62 = vmul.f32 %v4606_v40, %v4600_v38 }
 0xbe2   :  { %v4610_v63 = vpop.eup %4609  ;;  %v3650_v18 = vmul.f32 %v4608_v24, %v6540_v32 }
 0xbe3   :  { %v4612_v2 = vpop.eup %4611  ;;  %v3653_v9 = vadd.f32 %v3651_v62, %v3649_v36  ;;  %v3643_v51 = vadd.f32 1.0, %v4610_v63 }
 0xbe4   :  { %v4614_v56 = vpop.eup %4613  ;;  %v3652_v46 = vmul.f32 %v4612_v2, %v4604_v43 }
 0xbe5   :  { %4615 = vtanh.f32 %v3653_v9  ;;  %v3644_v42 = vadd.f32 1.0, %v4614_v56 }
 0xbe6   :  { %4617 = vrcp.f32 %v3643_v51  ;;  %v3654_v1 = vadd.f32 %v3652_v46, %v3650_v18 }
 0xbe7   :  { %4619 = vrcp.f32 %v3644_v42 }
 0xbe8   :  { %4621 = vtanh.f32 %v3654_v1 }
 0xbf2   :  { %v4616_v50 = vpop.eup %4615 }
 0xbf3   :  { %v4618_v25 = vpop.eup %4617 }
 0xbf4   :  { %v4620_v33 = vpop.eup %4619  ;;  %v3657_v29 = vmul.f32 %v4618_v25, %v4616_v50 }
 0xbf5   :  { %v4622_v20 = vpop.eup %4621 }
 0xbf6   :  { %v3658_v15 = vmul.f32 %v4622_v20, %v4620_v33 }
 0xbf7   :  { %4715 = dma.done.wait [#allocation6 + $0x1], 2048 }
 0xbf8   :  { %4716 = vsyncadd [#allocation6 + $0x1], 4294965248 }
 0xbf9   :  { %4717 = dma.done.wait [#allocation6 + $0x2], 1024 }
 0xbfa   :  { %4718 = vsyncadd [#allocation6 + $0x2], 4294966272  ;;  %v3671_v3 = vpack.c.bf16 %v3658_v15, %v3658_v15  ;;  %v4725_v59 = vmov 0.0   ;;  %v4623_v32 = vld [vmem:[#allocation4 + $0x78] sm:$0xff]   ;;  %v4625_v30 = vld [vmem:[#allocation4 + $0x70] sm:$0xff]   ;;  %v3670_v8 = vpack.c.bf16 %v3657_v29, %v3657_v29  ;;  %vm4726_vm0 = vmmov 0  }
 0xbfb   :  { %4323 = vmatprep.subr.bf16.mxu1 %v4725_v59  ;;  %v4624_v53 = vld [vmem:[#allocation4 + $0x38] sm:$0xff]   ;;  %4292 = vmatprep.subr.bf16.mxu0 %v4623_v32  ;;  %v4626_v41 = vld [vmem:[#allocation4 + $0x30] sm:$0xff]   ;;  %v4627_v31 = vld [vmem:[#allocation4 + $0x68] sm:$0xff]  }
 0xbfc   :  { %3836 = vmatprep.mubr.bf16.mxu0 %v3671_v3  ;;  %4293 = vmatpush3.bf16.msra.mxu0 %v4624_v53  ;;  %v4628_v28 = vld [vmem:[#allocation4 + $0x28] sm:$0xff]   ;;  %v4629_v22 = vld [vmem:[#allocation4 + $0x60] sm:$0xff]   ;;  %v4631_v19 = vld [vmem:[#allocation4 + $0x58] sm:$0xff]  }
 0xbfd   :  { %4294 = vmatprep.subr.bf16.mxu0 %v4625_v30  ;;  %v4630_v23 = vld [vmem:[#allocation4 + $0x20] sm:$0xff]   ;;  %v4632_v49 = vld [vmem:[#allocation4 + $0x18] sm:$0xff]   ;;  %v4633_v4 = vld [vmem:[#allocation4 + $0x50] sm:$0xff]   ;;  %4339 = vmatprep.mubr.msk.bf16.mxu1 %vm4726_vm0, %v4725_v59 }
 0xbfe   :  { %v4639_v5 = vld [vmem:[#allocation5 + $0x38] sm:$0xff]   ;;  %v4634_v14 = vld [vmem:[#allocation4 + $0x10] sm:$0xff]   ;;  %v4635_v60 = vld [vmem:[#allocation4 + $0x48] sm:$0xff]  }
 0xbff   :  { %4324 = vmatpush3.bf16.msra.mxu1 %v4639_v5  ;;  %v4640_v34 = vld [vmem:[#allocation5 + $0x30] sm:$0xff]   ;;  %v4641_v16 = vld [vmem:[#allocation5 + $0x28] sm:$0xff]   ;;  %v4637_v52 = vld [vmem:[#allocation4 + $0x40] sm:$0xff]  }
 0xc00   :  { %4295 = vmatpush3.bf16.msra.mxu0 %v4626_v41  ;;  %4325 = vmatprep.subr.bf16.mxu1 %v4725_v59  ;;  %v4636_v37 = vld [vmem:[#allocation4 + $0x8] sm:$0xff]   ;;  %v4642_v0 = vld [vmem:[#allocation5 + $0x20] sm:$0xff]   ;;  %v4643_v27 = vld [vmem:[#allocation5 + $0x18] sm:$0xff]  }
 0xc01   :  { %4296 = vmatprep.subr.bf16.mxu0 %v4627_v31  ;;  %v4638_v13 = vld [vmem:[#allocation4] sm:$0xff]   ;;  %v4644_v61 = vld [vmem:[#allocation5 + $0x10] sm:$0xff]   ;;  %v4645_v35 = vld [vmem:[#allocation5 + $0x8] sm:$0xff]  }
 0xc02   :  { %v4646_v54 = vld [vmem:[#allocation5] sm:$0xff]  }
 0xc03   :  { %4326 = vmatpush3.bf16.msra.mxu1 %v4640_v34  ;;  %v4260_v7 = vld [vmem:[%s6637_s1 + $0x2] ss:$0 sm:$0xff]  ;;  %v4277_v55 = vld [vmem:[%s6637_s1 + $0x3] ss:$0 sm:$0xff]  ;;  %v4286_v38 = vld [vmem:[%s6637_s1 + $0x5] ss:$0 sm:$0xff] }
 0xc04   :  { %4297 = vmatpush3.bf16.msra.mxu0 %v4628_v28  ;;  %4327 = vmatprep.subr.bf16.mxu1 %v4725_v59  ;;  %v4287_v36 = vld [vmem:[%s6637_s1 + $0x4] ss:$0 sm:$0xff] }
 0xc05   :  { %4298 = vmatprep.subr.bf16.mxu0 %v4629_v22 }
 0xc07   :  { %4328 = vmatpush3.bf16.msra.mxu1 %v4641_v16 }
 0xc08   :  { %4299 = vmatpush3.bf16.msra.mxu0 %v4630_v23  ;;  %4329 = vmatprep.subr.bf16.mxu1 %v4725_v59 }
 0xc09   :  { %4300 = vmatprep.subr.bf16.mxu0 %v4631_v19 }
 0xc0b   :  { %4330 = vmatpush3.bf16.msra.mxu1 %v4642_v0 }
 0xc0c   :  { %4301 = vmatpush3.bf16.msra.mxu0 %v4632_v49  ;;  %4331 = vmatprep.subr.bf16.mxu1 %v4725_v59 }
 0xc0d   :  { %4302 = vmatprep.subr.bf16.mxu0 %v4633_v4 }
 0xc0f   :  { %4332 = vmatpush3.bf16.msra.mxu1 %v4643_v27 }
 0xc10   :  { %4303 = vmatpush3.bf16.msra.mxu0 %v4634_v14  ;;  %4333 = vmatprep.subr.bf16.mxu1 %v4725_v59 }
 0xc11   :  { %4304 = vmatprep.subr.bf16.mxu0 %v4635_v60 }
 0xc13   :  { %4334 = vmatpush3.bf16.msra.mxu1 %v4644_v61 }
 0xc14   :  { %4305 = vmatpush3.bf16.msra.mxu0 %v4636_v37  ;;  %4335 = vmatprep.subr.bf16.mxu1 %v4725_v59 }
 0xc15   :  { %4306 = vmatprep.subr.bf16.mxu0 %v4637_v52 }
 0xc17   :  { %4336 = vmatpush3.bf16.msra.mxu1 %v4645_v35 }
 0xc18   :  { %4307 = vmatpush3.bf16.msra.mxu0 %v4638_v13  ;;  %4337 = vmatprep.subr.bf16.mxu1 %v4725_v59 }
 0xc1b   :  { %3837 = vmatmul.mubr.bf16.vlgmr.msra.gmra.mxu0 %v3670_v8  ;;  %4338 = vmatpush3.bf16.msra.mxu1 %v4646_v54 }
 0xcdb   :  { %v4308_v44 = vpop.f32.mrf.mxu0 }
 0xcdd   :  { %v4309_v39 = vpop.f32.mrf.mxu0 }
 0xcde   :  { %v4310_v17 = vadd.f32 %v4309_v39, %v4308_v44 }
 0xcdf   :  { %v4311_v57 = vpop.f32.mrf.mxu0 }
 0xce0   :  { %v3839_v45 = vadd.f32 %v4310_v17, %v4260_v7 }
 0xce1   :  { %v4312_v48 = vpop.f32.mrf.mxu0 }
 0xce2   :  { %v3845_v26 = vmul.f32 0.01, %v3839_v45  ;;  %vm3844_vm1 = vcmp.gt.f32.partialorder %v3839_v45, 0.0 }
 0xce4   :  { %v3846_v10 = vsel %vm3844_vm1, %v3839_v45, %v3845_v26 }
 0xce5   :  { %v3847_v21 = vpack.c.bf16 %v3846_v10, %v3846_v10 }
 0xce7   :  { %4340 = vmatmul.mubr.bf16.vlgmr.msra.gmra.mxu1 %v3847_v21 }
 0xda7   :  { %v3950_v6 = vpop.f32.mrf.mxu1 }
 0xda8   :  { %v3951_v12 = vadd.f32 %v4277_v55, %v3950_v6 }
 0xda9   :  { %v4341_v47 = vpop.f32.mrf.mxu1 }
 0xdaa   :  { %v3957_v11 = vmul.f32 0.01, %v3951_v12  ;;  %vm3956_vm2 = vcmp.gt.f32.partialorder %v3951_v12, 0.0 }
 0xdab   :  { %v3953_v58 = vpop.f32.mrf.mxu1 }
 0xdac   :  { %v3958_v43 = vsel %vm3956_vm2, %v3951_v12, %v3957_v11 }
 0xdad   :  { %v4342_v40 = vpop.f32.mrf.mxu1  ;;  %v3963_v24 = vmul.f32 %v4286_v38, %v3958_v43 }
 0xdaf   :  { %3964 = vadd.xlane.f32.xlu0 %v3963_v24 }
 0xe38   :  { %v3965_v62 = vpop.xlane.xlu0 %3964 }
 0xe39   :  { %v3970_v63 = vadd.f32 %v4287_v36, %v3965_v62 }
 0xe3b   :  { %v4288_v2 = vmul.f32 -1.442695, %v3970_v63 }
 0xe3d   :  { %4647 = vpow2.f32 %v4288_v2 }
 0xe4a   :  { %v4648_v9 = vpop.eup %4647 }
 0xe4b   :  { %v3974_v51 = vadd.f32 1.0, %v4648_v9 }
 0xe4d   :  { %4649 = vrcp.f32 %v3974_v51 }
 0xe5a   :  { %v4650_v56 = vpop.eup %4649 }
 0xe5b   :  { %3977 = vst [vmem:[%s6643_s7] sm:$0xff] %v4650_v56 }
 0xe5c   :  { %3982 = vsyncpa [#allocation8], 1 }
 0xe5d   :  { %3983 = vsyncmov [#allocation6] }
 0xe60   :  { %s3984_s11 = vpop.sfrf %3983 }
 0xe61   :  { %p4289_p1 = scmp.ne.s32.totalorder %s3984_s11, 0 }
 0xe63   :  { %3988 = shalt.err (%p4289_p1)  }
 0xe64   :  { %3990 = vsyncmov [#allocation6 + $0x1] }
 0xe67   :  { %s3991_s12 = vpop.sfrf %3990 }
 0xe68   :  { %p4290_p2 = scmp.ne.s32.totalorder %s3991_s12, 0 }
 0xe6a   :  { %3995 = shalt.err (%p4290_p2)  }
 0xe6b   :  { %3997 = vsyncmov [#allocation6 + $0x2] }
 0xe6e   :  { %s3998_s1 = vpop.sfrf %3997 }
 0xe6f   :  { %p4291_p3 = scmp.ne.s32.totalorder %s3998_s1, 0 }
 0xe71   :  { %4002 = shalt.err (%p4291_p3)  }

</bundles_post_ra>
